<compile_context>
chip_gen: v5e
topology: v5e:2x2
jax: 0.10.0
libtpu: 0.0.40
codegen_flags: <defaults>
</compile_context>

<pallas_src>
import functools

import jax
import jax.numpy as jnp
from jax import lax
from jax.experimental import pallas as pl
from jax.experimental.pallas import tpu as pltpu

EPS = 1e-5
VMEM_LIMIT = 32 * 1024 * 1024   # explicit scoped-VMEM budget (safe on v5e/v6e/v7x)


# ----------------------------------------------------------------------------- helpers
def _round_up(x, m):
    return ((x + m - 1) // m) * m


def _pick_row_tile(m):
    """Largest row tile (multiple of 8, <=512) dividing M with >=2 grid steps."""
    for t in (512, 256, 128, 64, 32, 16, 8):
        if m % t == 0 and m // t >= 2:
            return t
    return m


def _row_spec(tm, c):
    return pl.BlockSpec((tm, c), lambda i: (i, 0))


def _full_spec(shape):
    return pl.BlockSpec(shape, lambda i: (0,) * len(shape))


def _mosaic(semantics):
    return pltpu.CompilerParams(dimension_semantics=semantics,
                                vmem_limit_bytes=VMEM_LIMIT)


# ----------------------------------------------------------------------------- kernels
def _conv1_kernel(x_ref, w1_ref, y1_ref, s1_ref, q1_ref, sx_ref, g_ref):
    """1x1 conv on one M-tile; accumulate BN1 sum/sumsq and x moments (for BN_sc fold)."""
    i = pl.program_id(0)
    x = x_ref[...]
    y1 = jnp.dot(x, w1_ref[...], preferred_element_type=jnp.float32)
    y1_ref[...] = y1

    @pl.when(i == 0)
    def _():
        s1_ref[...] = jnp.zeros_like(s1_ref)
        q1_ref[...] = jnp.zeros_like(q1_ref)
        sx_ref[...] = jnp.zeros_like(sx_ref)
        g_ref[...] = jnp.zeros_like(g_ref)

    s1_ref[...] += jnp.sum(y1, axis=0, keepdims=True)
    q1_ref[...] += jnp.sum(y1 * y1, axis=0, keepdims=True)
    sx_ref[...] += jnp.sum(x, axis=0, keepdims=True)
    g_ref[...] += jnp.dot(x.T, x, preferred_element_type=jnp.float32)   # X^T X (Cin x Cin)


def _conv2_kernel(y1_ref, sc1_ref, sh1_ref, w2_ref,
                  y2_ref, s2_ref, q2_ref, hpad_ref, acc_ref):
    """Per image: bn1 affine + relu on the fly, 3x3 conv as 9 shifted-window matmuls."""
    n = pl.program_id(0)
    _, H, W, PP = y1_ref.shape
    HW = H * W
    C0 = 8   # sublane-aligned column offset of the image inside the halo scratch

    @pl.when(n == 0)
    def _():
        # Halo border stays zero across images: only the interior is rewritten below.
        hpad_ref[...] = jnp.zeros_like(hpad_ref)
        s2_ref[...] = jnp.zeros_like(s2_ref)
        q2_ref[...] = jnp.zeros_like(q2_ref)

    # bn1 affine + relu fused into the read of y1 (no separate normalize pass)
    h1 = jnp.maximum(y1_ref[...].reshape(HW, PP) * sc1_ref[...] + sh1_ref[...], 0.0)
    hpad_ref[1:H + 1, C0:C0 + W, :] = h1.reshape(H, W, PP)

    # 3x3 SAME conv = 9 accumulated matmuls over shifted windows (no HBM im2col)
    first = True
    for ki in range(3):
        for kj in range(3):
            win = hpad_ref[ki:ki + H, C0 - 1 + kj:C0 - 1 + kj + W, :].reshape(HW, PP)
            contrib = jnp.dot(win, w2_ref[ki * 3 + kj],
                              preferred_element_type=jnp.float32)
            if first:
                acc_ref[...] = contrib
                first = False
            else:
                acc_ref[...] += contrib

    y2 = acc_ref[...]
    y2_ref[...] = y2.reshape(1, H, W, PP)
    s2_ref[...] += jnp.sum(y2, axis=0, keepdims=True)
    q2_ref[...] += jnp.sum(y2 * y2, axis=0, keepdims=True)


def _conv3_kernel(y2_ref, sc2_ref, sh2_ref, w3_ref, y3_ref, s3_ref, q3_ref):
    """bn2 affine + relu on the fly, 1x1 conv3; accumulate BN3 sum / sumsq."""
    i = pl.program_id(0)
    h2 = jnp.maximum(y2_ref[...] * sc2_ref[...] + sh2_ref[...], 0.0)
    y3 = jnp.dot(h2, w3_ref[...], preferred_element_type=jnp.float32)
    y3_ref[...] = y3

    @pl.when(i == 0)
    def _():
        s3_ref[...] = jnp.zeros_like(s3_ref)
        q3_ref[...] = jnp.zeros_like(q3_ref)

    s3_ref[...] += jnp.sum(y3, axis=0, keepdims=True)
    q3_ref[...] += jnp.sum(y3 * y3, axis=0, keepdims=True)


def _residual_out_kernel(x_ref, y3_ref, ws_ref,
                         sc3_ref, sh3_ref, scs_ref, shs_ref, o_ref):
    """Shortcut 1x1 conv (recomputed, never stored) + bn3 + bn_sc + residual add + relu."""
    ys = jnp.dot(x_ref[...], ws_ref[...], preferred_element_type=jnp.float32)
    o_ref[...] = jnp.maximum(
        y3_ref[...] * sc3_ref[...] + sh3_ref[...]
        + ys * scs_ref[...] + shs_ref[...], 0.0)


# ----------------------------------------------------------------------------- pallas_call wrappers
def _conv1(xf, w1, tm):
    M, Cin = xf.shape
    PP = w1.shape[1]
    return pl.pallas_call(
        _conv1_kernel,
        grid=(M // tm,),
        in_specs=[_row_spec(tm, Cin), _full_spec(w1.shape)],
        out_specs=[_row_spec(tm, PP),
                   _full_spec((1, PP)), _full_spec((1, PP)),
                   _full_spec((1, Cin)), _full_spec((Cin, Cin))],
        out_shape=[jax.ShapeDtypeStruct((M, PP), jnp.float32),
                   jax.ShapeDtypeStruct((1, PP), jnp.float32),
                   jax.ShapeDtypeStruct((1, PP), jnp.float32),
                   jax.ShapeDtypeStruct((1, Cin), jnp.float32),
                   jax.ShapeDtypeStruct((Cin, Cin), jnp.float32)],
        compiler_params=_mosaic(("arbitrary",)),
    )(xf, w1)


def _conv2(y1_nhwc, sc1, sh1, w2):
    N, H, W, PP = y1_nhwc.shape
    img_spec = pl.BlockSpec((1, H, W, PP), lambda n: (n, 0, 0, 0))
    return pl.pallas_call(
        _conv2_kernel,
        grid=(N,),
        in_specs=[img_spec, _full_spec((1, PP)), _full_spec((1, PP)),
                  _full_spec(w2.shape)],
        out_specs=[img_spec, _full_spec((1, PP)), _full_spec((1, PP))],
        out_shape=[jax.ShapeDtypeStruct((N, H, W, PP), jnp.float32),
                   jax.ShapeDtypeStruct((1, PP), jnp.float32),
                   jax.ShapeDtypeStruct((1, PP), jnp.float32)],
        scratch_shapes=[pltpu.VMEM((H + 2, W + 16, PP), jnp.float32),   # zero halo
                        pltpu.VMEM((H * W, PP), jnp.float32)],          # f32 accumulator
        compiler_params=_mosaic(("arbitrary",)),
    )(y1_nhwc, sc1, sh1, w2)


def _conv3(y2f, sc2, sh2, w3, tm):
    M, PP = y2f.shape
    OP = w3.shape[1]
    return pl.pallas_call(
        _conv3_kernel,
        grid=(M // tm,),
        in_specs=[_row_spec(tm, PP), _full_spec((1, PP)), _full_spec((1, PP)),
                  _full_spec(w3.shape)],
        out_specs=[_row_spec(tm, OP), _full_spec((1, OP)), _full_spec((1, OP))],
        out_shape=[jax.ShapeDtypeStruct((M, OP), jnp.float32),
                   jax.ShapeDtypeStruct((1, OP), jnp.float32),
                   jax.ShapeDtypeStruct((1, OP), jnp.float32)],
        compiler_params=_mosaic(("arbitrary",)),
    )(y2f, sc2, sh2, w3)


def _residual_out(xf, y3, ws, sc3, sh3, scs, shs, tm):
    M, OP = y3.shape
    Cin = xf.shape[1]
    return pl.pallas_call(
        _residual_out_kernel,
        grid=(M // tm,),
        in_specs=[_row_spec(tm, Cin), _row_spec(tm, OP), _full_spec(ws.shape),
                  _full_spec((1, OP)), _full_spec((1, OP)),
                  _full_spec((1, OP)), _full_spec((1, OP))],
        out_specs=_row_spec(tm, OP),
        out_shape=jax.ShapeDtypeStruct((M, OP), jnp.float32),
        compiler_params=_mosaic(("parallel",)),   # pure per-row -> megacore-splittable
    )(xf, y3, ws, sc3, sh3, scs, shs)


# ----------------------------------------------------------------------------- BN fold glue
def _bn_fold(s, q, count, gamma, beta):
    """Fold batch stats (sum, sumsq) + affine into per-channel (scale, shift)."""
    mean = s / count
    var = jnp.maximum(q / count - mean * mean, 0.0)     # biased variance (PyTorch fwd)
    scale = gamma * lax.rsqrt(var + EPS)
    shift = beta - mean * scale
    return scale, shift


# ----------------------------------------------------------------------------- forward
@functools.partial(jax.jit, static_argnames=("out_planes",))
def bottleneck_forward(x_nchw, p, *, out_planes):
    """Bottleneck forward. x: (N, Cin, H, W) f32 -> (N, 4*planes, H, W)."""
    N, _, H, W = x_nchw.shape
    x = jnp.transpose(x_nchw, (0, 2, 3, 1)).astype(jnp.float32)     # NHWC
    M = N * H * W
    xf = x.reshape(M, x.shape[-1])
    PP = p["w1"].shape[1]
    OP = p["ws"].shape[1]
    tm = _pick_row_tile(M)

    # pass 1: conv1 (1x1); BN1 stats + x first/second moments accumulated in-kernel
    y1, s1, q1, sx, gram = _conv1(xf, p["w1"], tm)
    sc1, sh1 = _bn_fold(s1, q1, M, p["g1"], p["b1"])
    # shortcut-BN batch stats derived exactly from x moments (ys is never materialized):
    #   sum(x@ws) = (sum x) @ ws ;  sum((x@ws)^2) = diag(ws^T (X^T X) ws)
    s_sc = sx @ p["ws"]                                              # (1, OP)
    q_sc = jnp.sum(p["ws"] * (gram @ p["ws"]), axis=0, keepdims=True)
    scs, shs = _bn_fold(s_sc, q_sc, M, p["gs"], p["bs"])

    # pass 2: conv2 (3x3, pad=1) with bn1 affine + relu fused into its input read
    y2, s2, q2 = _conv2(y1.reshape(N, H, W, PP), sc1, sh1, p["w2"])
    sc2, sh2 = _bn_fold(s2, q2, M, p["g2"], p["b2"])

    # pass 3: conv3 (1x1) with bn2 affine + relu fused into its input read
    y3, s3, q3 = _conv3(y2.reshape(M, PP), sc2, sh2, p["w3"], tm)
    sc3, sh3 = _bn_fold(s3, q3, M, p["g3"], p["b3"])

    # pass 4: shortcut conv (from x) + bn3 + bn_sc + residual add + relu
    out = _residual_out(xf, y3, p["ws"], sc3, sh3, scs, shs, tm)     # (M, OP)
    out = out.reshape(N, H, W, OP)[..., :out_planes]
    return jnp.transpose(out, (0, 3, 1, 2))                         # back to NCHW


# ----------------------------------------------------------------------------- params
def init_params(key, in_planes, planes, expansion=4):
    ks = jax.random.split(key, 8)
    out_planes = expansion * planes

    def bn(k, c):
        k1, k2 = jax.random.split(k)
        g = 1.0 + 0.1 * jax.random.normal(k1, (1, c), jnp.float32)
        b = 0.1 * jax.random.normal(k2, (1, c), jnp.float32)
        return g, b

    g1, b1 = bn(ks[4], planes)
    g2, b2 = bn(ks[5], planes)
    g3, b3 = bn(ks[6], out_planes)
    gs, bs = bn(ks[7], out_planes)
    return dict(
        w1=0.1 * jax.random.normal(ks[0], (in_planes, planes), jnp.float32),
        w2_hwio=0.1 * jax.random.normal(ks[1], (3, 3, planes, planes), jnp.float32),
        w3=0.1 * jax.random.normal(ks[2], (planes, out_planes), jnp.float32),
        ws=0.1 * jax.random.normal(ks[3], (in_planes, out_planes), jnp.float32),
        g1=g1, b1=b1, g2=g2, b2=b2, g3=g3, b3=b3, gs=gs, bs=bs,
    )


def pad_params(raw, in_planes, planes, expansion=4):
    """Zero-pad channel dims to 128-lane multiples (done once, outside the kernels)."""
    del in_planes  # input-channel dim is left unpadded (only output lanes matter for stores)
    PP = max(128, _round_up(planes, 128))
    OP = max(128, _round_up(expansion * planes, 128))
    out_planes = expansion * planes

    def pad_cols(a, c):
        return jnp.pad(a, ((0, 0), (0, c - a.shape[1])))

    w2 = jnp.pad(raw["w2_hwio"],
                 ((0, 0), (0, 0), (0, PP - planes), (0, PP - planes)))
    return dict(
        w1=pad_cols(raw["w1"], PP),                                        # (Cin, PP)
        w2=w2.reshape(9, PP, PP),                                          # tap-major ki*3+kj
        w3=jnp.pad(raw["w3"], ((0, PP - planes), (0, OP - out_planes))),   # (PP, OP)
        ws=pad_cols(raw["ws"], OP),                                        # (Cin, OP)
        g1=pad_cols(raw["g1"], PP), b1=pad_cols(raw["b1"], PP),
        g2=pad_cols(raw["g2"], PP), b2=pad_cols(raw["b2"], PP),
        g3=pad_cols(raw["g3"], OP), b3=pad_cols(raw["b3"], OP),
        gs=pad_cols(raw["gs"], OP), bs=pad_cols(raw["bs"], OP),
    )


# ----------------------------------------------------------------------------- reference
def _bn_train_ref(y, g, b):
    m = y.mean(axis=(0, 1, 2))
    v = ((y - m) ** 2).mean(axis=(0, 1, 2))
    return (y - m) / jnp.sqrt(v + EPS) * g + b


def reference_forward(x_nchw, p):
    x = jnp.transpose(x_nchw, (0, 2, 3, 1)).astype(jnp.float32)
    o = jax.nn.relu(_bn_train_ref(jnp.einsum("nhwc,cd->nhwd", x, p["w1"]), p["g1"], p["b1"]))
    o = lax.conv_general_dilated(o, p["w2_hwio"], (1, 1), "SAME",
                                 dimension_numbers=("NHWC", "HWIO", "NHWC"))
    o = jax.nn.relu(_bn_train_ref(o, p["g2"], p["b2"]))
    o = _bn_train_ref(jnp.einsum("nhwc,cd->nhwd", o, p["w3"]), p["g3"], p["b3"])
    s = _bn_train_ref(jnp.einsum("nhwc,cd->nhwd", x, p["ws"]), p["gs"], p["bs"])
    return jnp.transpose(jax.nn.relu(o + s), (0, 3, 1, 2))


# ----------------------------------------------------------------------------- main
if __name__ == "__main__":
    N, IN_PLANES, PLANES, H, W = 2, 16, 8, 16, 16     # stride=1 (module default)
    key = jax.random.PRNGKey(0)
    kx, kp = jax.random.split(key)
    x = jax.random.normal(kx, (N, IN_PLANES, H, W), jnp.float32)    # NCHW like PyTorch
    raw = init_params(kp, IN_PLANES, PLANES)
    padded = pad_params(raw, IN_PLANES, PLANES)

    out = jax.block_until_ready(bottleneck_forward(x, padded, out_planes=4 * PLANES))
    ref = jax.block_until_ready(reference_forward(x, raw))

    assert out.shape == (N, 4 * PLANES, H, W), out.shape
    max_err = float(jnp.max(jnp.abs(out - ref)))
    assert max_err < 2e-3, f"mismatch vs reference: {max_err}"
    print("KERNEL_OK")
</pallas_src>

<mosaic_0001>
module attributes {stable_mosaic.version = 11 : i64} {
  func.func @_conv1_kernel(%arg0: i32, %arg1: memref<256x16xf32, #tpu.memory_space<vmem>>, %arg2: memref<16x128xf32, #tpu.memory_space<vmem>>, %arg3: memref<256x128xf32, #tpu.memory_space<vmem>>, %arg4: memref<1x128xf32, #tpu.memory_space<vmem>>, %arg5: memref<1x128xf32, #tpu.memory_space<vmem>>, %arg6: memref<1x16xf32, #tpu.memory_space<vmem>>, %arg7: memref<16x16xf32, #tpu.memory_space<vmem>>) attributes {dimension_semantics = [#tpu.dimension_semantics<arbitrary>], iteration_bounds = array<i64: 2>, scalar_prefetch = 0 : i64, scratch_operands = 0 : i64, tpu.core_type = #tpu.core_type<tc>, window_params = [{transform_indices = @transform_0, window_bounds = array<i64: 256, 16>}, {pipeline_mode = #tpu.pipeline_mode<synchronous>, transform_indices = @transform_1, window_bounds = array<i64: 16, 128>}, {transform_indices = @transform_2, window_bounds = array<i64: 256, 128>}, {pipeline_mode = #tpu.pipeline_mode<synchronous>, transform_indices = @transform_3, window_bounds = array<i64: 1, 128>}, {pipeline_mode = #tpu.pipeline_mode<synchronous>, transform_indices = @transform_4, window_bounds = array<i64: 1, 128>}, {pipeline_mode = #tpu.pipeline_mode<synchronous>, transform_indices = @transform_5, window_bounds = array<i64: 1, 16>}, {pipeline_mode = #tpu.pipeline_mode<synchronous>, transform_indices = @transform_6, window_bounds = array<i64: 16, 16>}]} {
    %c0 = arith.constant 0 : index
    %c0_0 = arith.constant 0 : index
    %0 = vector.load %arg1[%c0, %c0_0] : memref<256x16xf32, #tpu.memory_space<vmem>>, vector<256x16xf32>
    %c0_1 = arith.constant 0 : index
    %c0_2 = arith.constant 0 : index
    %1 = vector.load %arg2[%c0_1, %c0_2] : memref<16x128xf32, #tpu.memory_space<vmem>>, vector<16x128xf32>
    %cst = arith.constant dense<0.000000e+00> : vector<256x128xf32>
    %2 = tpu.matmul %0, %1, %cst {dimension_numbers = #tpu.dot_dimension_numbers<[1], [0], [0], [1], [0, 0, 1, 1], [], []>} : vector<256x16xf32>, vector<16x128xf32>, vector<256x128xf32> -> vector<256x128xf32>
    %c0_3 = arith.constant 0 : index
    %c0_4 = arith.constant 0 : index
    %3 = vector.load %arg3[%c0_3, %c0_4] : memref<256x128xf32, #tpu.memory_space<vmem>>, vector<256x128xf32>
    tpu.vector_store %arg3[%c0_3, %c0_4], %2 {strides = array<i32>} : memref<256x128xf32, #tpu.memory_space<vmem>>, vector<256x128xf32>,
    %c0_i32 = arith.constant 0 : i32
    %4 = arith.cmpi eq, %arg0, %c0_i32 : i32
    %5 = arith.extui %4 : i1 to i32
    %c0_i32_5 = arith.constant 0 : i32
    %6 = arith.cmpi ne, %5, %c0_i32_5 : i32
    scf.if %6 {
      %cst_26 = arith.constant 0.000000e+00 : f32
      %28 = vector.broadcast %cst_26 : f32 to vector<1x128xf32>
      %c0_27 = arith.constant 0 : index
      %c0_28 = arith.constant 0 : index
      %29 = vector.load %arg4[%c0_27, %c0_28] : memref<1x128xf32, #tpu.memory_space<vmem>>, vector<1x128xf32>
      tpu.vector_store %arg4[%c0_27, %c0_28], %28 {strides = array<i32>} : memref<1x128xf32, #tpu.memory_space<vmem>>, vector<1x128xf32>,
      %cst_29 = arith.constant 0.000000e+00 : f32
      %30 = vector.broadcast %cst_29 : f32 to vector<1x128xf32>
      %c0_30 = arith.constant 0 : index
      %c0_31 = arith.constant 0 : index
      %31 = vector.load %arg5[%c0_30, %c0_31] : memref<1x128xf32, #tpu.memory_space<vmem>>, vector<1x128xf32>
      tpu.vector_store %arg5[%c0_30, %c0_31], %30 {strides = array<i32>} : memref<1x128xf32, #tpu.memory_space<vmem>>, vector<1x128xf32>,
      %cst_32 = arith.constant 0.000000e+00 : f32
      %32 = vector.broadcast %cst_32 : f32 to vector<1x16xf32>
      %c0_33 = arith.constant 0 : index
      %c0_34 = arith.constant 0 : index
      %33 = vector.load %arg6[%c0_33, %c0_34] : memref<1x16xf32, #tpu.memory_space<vmem>>, vector<1x16xf32>
      tpu.vector_store %arg6[%c0_33, %c0_34], %32 {strides = array<i32>} : memref<1x16xf32, #tpu.memory_space<vmem>>, vector<1x16xf32>,
      %cst_35 = arith.constant 0.000000e+00 : f32
      %34 = vector.broadcast %cst_35 : f32 to vector<16x16xf32>
      %c0_36 = arith.constant 0 : index
      %c0_37 = arith.constant 0 : index
      %35 = vector.load %arg7[%c0_36, %c0_37] : memref<16x16xf32, #tpu.memory_space<vmem>>, vector<16x16xf32>
      tpu.vector_store %arg7[%c0_36, %c0_37], %34 {strides = array<i32>} : memref<16x16xf32, #tpu.memory_space<vmem>>, vector<16x16xf32>,
    } else {
    }
    %c0_6 = arith.constant 0 : index
    %c0_7 = arith.constant 0 : index
    %7 = vector.load %arg4[%c0_6, %c0_7] : memref<1x128xf32, #tpu.memory_space<vmem>>, vector<1x128xf32>
    %cst_8 = arith.constant dense<0.000000e+00> : vector<128xf32>
    %8 = vector.multi_reduction <add>, %2, %cst_8 [0] : vector<256x128xf32> to vector<128xf32>
    %9 = vector.shape_cast %8 : vector<128xf32> to vector<1x128xf32>
    %10 = arith.addf %7, %9 : vector<1x128xf32>
    %c0_9 = arith.constant 0 : index
    %c0_10 = arith.constant 0 : index
    %11 = vector.load %arg4[%c0_9, %c0_10] : memref<1x128xf32, #tpu.memory_space<vmem>>, vector<1x128xf32>
    tpu.vector_store %arg4[%c0_9, %c0_10], %10 {strides = array<i32>} : memref<1x128xf32, #tpu.memory_space<vmem>>, vector<1x128xf32>,
    %c0_11 = arith.constant 0 : index
    %c0_12 = arith.constant 0 : index
    %12 = vector.load %arg5[%c0_11, %c0_12] : memref<1x128xf32, #tpu.memory_space<vmem>>, vector<1x128xf32>
    %13 = arith.mulf %2, %2 : vector<256x128xf32>
    %cst_13 = arith.constant dense<0.000000e+00> : vector<128xf32>
    %14 = vector.multi_reduction <add>, %13, %cst_13 [0] : vector<256x128xf32> to vector<128xf32>
    %15 = vector.shape_cast %14 : vector<128xf32> to vector<1x128xf32>
    %16 = arith.addf %12, %15 : vector<1x128xf32>
    %c0_14 = arith.constant 0 : index
    %c0_15 = arith.constant 0 : index
    %17 = vector.load %arg5[%c0_14, %c0_15] : memref<1x128xf32, #tpu.memory_space<vmem>>, vector<1x128xf32>
    tpu.vector_store %arg5[%c0_14, %c0_15], %16 {strides = array<i32>} : memref<1x128xf32, #tpu.memory_space<vmem>>, vector<1x128xf32>,
    %c0_16 = arith.constant 0 : index
    %c0_17 = arith.constant 0 : index
    %18 = vector.load %arg6[%c0_16, %c0_17] : memref<1x16xf32, #tpu.memory_space<vmem>>, vector<1x16xf32>
    %cst_18 = arith.constant dense<0.000000e+00> : vector<16xf32>
    %19 = vector.multi_reduction <add>, %0, %cst_18 [0] : vector<256x16xf32> to vector<16xf32>
    %20 = vector.shape_cast %19 : vector<16xf32> to vector<1x16xf32>
    %21 = arith.addf %18, %20 : vector<1x16xf32>
    %c0_19 = arith.constant 0 : index
    %c0_20 = arith.constant 0 : index
    %22 = vector.load %arg6[%c0_19, %c0_20] : memref<1x16xf32, #tpu.memory_space<vmem>>, vector<1x16xf32>
    tpu.vector_store %arg6[%c0_19, %c0_20], %21 {strides = array<i32>} : memref<1x16xf32, #tpu.memory_space<vmem>>, vector<1x16xf32>,
    %c0_21 = arith.constant 0 : index
    %c0_22 = arith.constant 0 : index
    %23 = vector.load %arg7[%c0_21, %c0_22] : memref<16x16xf32, #tpu.memory_space<vmem>>, vector<16x16xf32>
    %24 = tpu.transpose %0, [1, 0] : vector<256x16xf32> -> vector<16x256xf32>
    %cst_23 = arith.constant dense<0.000000e+00> : vector<16x16xf32>
    %25 = tpu.matmul %24, %0, %cst_23 {dimension_numbers = #tpu.dot_dimension_numbers<[1], [0], [0], [1], [0, 0, 1, 1], [], []>} : vector<16x256xf32>, vector<256x16xf32>, vector<16x16xf32> -> vector<16x16xf32>
    %26 = arith.addf %23, %25 : vector<16x16xf32>
    %c0_24 = arith.constant 0 : index
    %c0_25 = arith.constant 0 : index
    %27 = vector.load %arg7[%c0_24, %c0_25] : memref<16x16xf32, #tpu.memory_space<vmem>>, vector<16x16xf32>
    tpu.vector_store %arg7[%c0_24, %c0_25], %26 {strides = array<i32>} : memref<16x16xf32, #tpu.memory_space<vmem>>, vector<16x16xf32>,
    return
  }
  func.func @transform_0(%arg0: i32) -> (i32, i32) {
    %c0_i32 = arith.constant 0 : i32
    %c0_i32_0 = arith.constant 0 : i32
    return %arg0, %c0_i32 : i32, i32
  }
  func.func @transform_1(%arg0: i32) -> (i32, i32) {
    %c0_i32 = arith.constant 0 : i32
    %c0_i32_0 = arith.constant 0 : i32
    %c0_i32_1 = arith.constant 0 : i32
    return %c0_i32, %c0_i32_0 : i32, i32
  }
  func.func @transform_2(%arg0: i32) -> (i32, i32) {
    %c0_i32 = arith.constant 0 : i32
    %c0_i32_0 = arith.constant 0 : i32
    return %arg0, %c0_i32 : i32, i32
  }
  func.func @transform_3(%arg0: i32) -> (i32, i32) {
    %c0_i32 = arith.constant 0 : i32
    %c0_i32_0 = arith.constant 0 : i32
    %c0_i32_1 = arith.constant 0 : i32
    return %c0_i32, %c0_i32_0 : i32, i32
  }
  func.func @transform_4(%arg0: i32) -> (i32, i32) {
    %c0_i32 = arith.constant 0 : i32
    %c0_i32_0 = arith.constant 0 : i32
    %c0_i32_1 = arith.constant 0 : i32
    return %c0_i32, %c0_i32_0 : i32, i32
  }
  func.func @transform_5(%arg0: i32) -> (i32, i32) {
    %c0_i32 = arith.constant 0 : i32
    %c0_i32_0 = arith.constant 0 : i32
    %c0_i32_1 = arith.constant 0 : i32
    return %c0_i32, %c0_i32_0 : i32, i32
  }
  func.func @transform_6(%arg0: i32) -> (i32, i32) {
    %c0_i32 = arith.constant 0 : i32
    %c0_i32_0 = arith.constant 0 : i32
    %c0_i32_1 = arith.constant 0 : i32
    return %c0_i32, %c0_i32_0 : i32, i32
  }
}

module attributes {stable_mosaic.version = 11 : i64} {
  func.func @_conv3_kernel(%arg0: i32, %arg1: memref<256x128xf32, #tpu.memory_space<vmem>>, %arg2: memref<1x128xf32, #tpu.memory_space<vmem>>, %arg3: memref<1x128xf32, #tpu.memory_space<vmem>>, %arg4: memref<128x128xf32, #tpu.memory_space<vmem>>, %arg5: memref<256x128xf32, #tpu.memory_space<vmem>>, %arg6: memref<1x128xf32, #tpu.memory_space<vmem>>, %arg7: memref<1x128xf32, #tpu.memory_space<vmem>>) attributes {dimension_semantics = [#tpu.dimension_semantics<arbitrary>], iteration_bounds = array<i64: 2>, scalar_prefetch = 0 : i64, scratch_operands = 0 : i64, tpu.core_type = #tpu.core_type<tc>, window_params = [{transform_indices = @transform_0, window_bounds = array<i64: 256, 128>}, {pipeline_mode = #tpu.pipeline_mode<synchronous>, transform_indices = @transform_1, window_bounds = array<i64: 1, 128>}, {pipeline_mode = #tpu.pipeline_mode<synchronous>, transform_indices = @transform_2, window_bounds = array<i64: 1, 128>}, {pipeline_mode = #tpu.pipeline_mode<synchronous>, transform_indices = @transform_3, window_bounds = array<i64: 128, 128>}, {transform_indices = @transform_4, window_bounds = array<i64: 256, 128>}, {pipeline_mode = #tpu.pipeline_mode<synchronous>, transform_indices = @transform_5, window_bounds = array<i64: 1, 128>}, {pipeline_mode = #tpu.pipeline_mode<synchronous>, transform_indices = @transform_6, window_bounds = array<i64: 1, 128>}]} {
    %c0 = arith.constant 0 : index
    %c0_0 = arith.constant 0 : index
    %0 = vector.load %arg1[%c0, %c0_0] : memref<256x128xf32, #tpu.memory_space<vmem>>, vector<256x128xf32>
    %c0_1 = arith.constant 0 : index
    %c0_2 = arith.constant 0 : index
    %1 = vector.load %arg2[%c0_1, %c0_2] : memref<1x128xf32, #tpu.memory_space<vmem>>, vector<1x128xf32>
    %2 = vector.broadcast %1 : vector<1x128xf32> to vector<256x128xf32>
    %3 = arith.mulf %0, %2 : vector<256x128xf32>
    %c0_3 = arith.constant 0 : index
    %c0_4 = arith.constant 0 : index
    %4 = vector.load %arg3[%c0_3, %c0_4] : memref<1x128xf32, #tpu.memory_space<vmem>>, vector<1x128xf32>
    %5 = vector.broadcast %4 : vector<1x128xf32> to vector<256x128xf32>
    %6 = arith.addf %3, %5 : vector<256x128xf32>
    %cst = arith.constant 0.000000e+00 : f32
    %7 = vector.broadcast %cst : f32 to vector<256x128xf32>
    %8 = arith.maximumf %6, %7 : vector<256x128xf32>
    %c0_5 = arith.constant 0 : index
    %c0_6 = arith.constant 0 : index
    %9 = vector.load %arg4[%c0_5, %c0_6] : memref<128x128xf32, #tpu.memory_space<vmem>>, vector<128x128xf32>
    %cst_7 = arith.constant dense<0.000000e+00> : vector<256x128xf32>
    %10 = tpu.matmul %8, %9, %cst_7 {dimension_numbers = #tpu.dot_dimension_numbers<[1], [0], [0], [1], [0, 0, 1, 1], [], []>} : vector<256x128xf32>, vector<128x128xf32>, vector<256x128xf32> -> vector<256x128xf32>
    %c0_8 = arith.constant 0 : index
    %c0_9 = arith.constant 0 : index
    %11 = vector.load %arg5[%c0_8, %c0_9] : memref<256x128xf32, #tpu.memory_space<vmem>>, vector<256x128xf32>
    tpu.vector_store %arg5[%c0_8, %c0_9], %10 {strides = array<i32>} : memref<256x128xf32, #tpu.memory_space<vmem>>, vector<256x128xf32>,
    %c0_i32 = arith.constant 0 : i32
    %12 = arith.cmpi eq, %arg0, %c0_i32 : i32
    %13 = arith.extui %12 : i1 to i32
    %c0_i32_10 = arith.constant 0 : i32
    %14 = arith.cmpi ne, %13, %c0_i32_10 : i32
    scf.if %14 {
      %cst_21 = arith.constant 0.000000e+00 : f32
      %26 = vector.broadcast %cst_21 : f32 to vector<1x128xf32>
      %c0_22 = arith.constant 0 : index
      %c0_23 = arith.constant 0 : index
      %27 = vector.load %arg6[%c0_22, %c0_23] : memref<1x128xf32, #tpu.memory_space<vmem>>, vector<1x128xf32>
      tpu.vector_store %arg6[%c0_22, %c0_23], %26 {strides = array<i32>} : memref<1x128xf32, #tpu.memory_space<vmem>>, vector<1x128xf32>,
      %cst_24 = arith.constant 0.000000e+00 : f32
      %28 = vector.broadcast %cst_24 : f32 to vector<1x128xf32>
      %c0_25 = arith.constant 0 : index
      %c0_26 = arith.constant 0 : index
      %29 = vector.load %arg7[%c0_25, %c0_26] : memref<1x128xf32, #tpu.memory_space<vmem>>, vector<1x128xf32>
      tpu.vector_store %arg7[%c0_25, %c0_26], %28 {strides = array<i32>} : memref<1x128xf32, #tpu.memory_space<vmem>>, vector<1x128xf32>,
    } else {
    }
    %c0_11 = arith.constant 0 : index
    %c0_12 = arith.constant 0 : index
    %15 = vector.load %arg6[%c0_11, %c0_12] : memref<1x128xf32, #tpu.memory_space<vmem>>, vector<1x128xf32>
    %cst_13 = arith.constant dense<0.000000e+00> : vector<128xf32>
    %16 = vector.multi_reduction <add>, %10, %cst_13 [0] : vector<256x128xf32> to vector<128xf32>
    %17 = vector.shape_cast %16 : vector<128xf32> to vector<1x128xf32>
    %18 = arith.addf %15, %17 : vector<1x128xf32>
    %c0_14 = arith.constant 0 : index
    %c0_15 = arith.constant 0 : index
    %19 = vector.load %arg6[%c0_14, %c0_15] : memref<1x128xf32, #tpu.memory_space<vmem>>, vector<1x128xf32>
    tpu.vector_store %arg6[%c0_14, %c0_15], %18 {strides = array<i32>} : memref<1x128xf32, #tpu.memory_space<vmem>>, vector<1x128xf32>,
    %c0_16 = arith.constant 0 : index
    %c0_17 = arith.constant 0 : index
    %20 = vector.load %arg7[%c0_16, %c0_17] : memref<1x128xf32, #tpu.memory_space<vmem>>, vector<1x128xf32>
    %21 = arith.mulf %10, %10 : vector<256x128xf32>
    %cst_18 = arith.constant dense<0.000000e+00> : vector<128xf32>
    %22 = vector.multi_reduction <add>, %21, %cst_18 [0] : vector<256x128xf32> to vector<128xf32>
    %23 = vector.shape_cast %22 : vector<128xf32> to vector<1x128xf32>
    %24 = arith.addf %20, %23 : vector<1x128xf32>
    %c0_19 = arith.constant 0 : index
    %c0_20 = arith.constant 0 : index
    %25 = vector.load %arg7[%c0_19, %c0_20] : memref<1x128xf32, #tpu.memory_space<vmem>>, vector<1x128xf32>
    tpu.vector_store %arg7[%c0_19, %c0_20], %24 {strides = array<i32>} : memref<1x128xf32, #tpu.memory_space<vmem>>, vector<1x128xf32>,
    return
  }
  func.func @transform_0(%arg0: i32) -> (i32, i32) {
    %c0_i32 = arith.constant 0 : i32
    %c0_i32_0 = arith.constant 0 : i32
    return %arg0, %c0_i32 : i32, i32
  }
  func.func @transform_1(%arg0: i32) -> (i32, i32) {
    %c0_i32 = arith.constant 0 : i32
    %c0_i32_0 = arith.constant 0 : i32
    %c0_i32_1 = arith.constant 0 : i32
    return %c0_i32, %c0_i32_0 : i32, i32
  }
  func.func @transform_2(%arg0: i32) -> (i32, i32) {
    %c0_i32 = arith.constant 0 : i32
    %c0_i32_0 = arith.constant 0 : i32
    %c0_i32_1 = arith.constant 0 : i32
    return %c0_i32, %c0_i32_0 : i32, i32
  }
  func.func @transform_3(%arg0: i32) -> (i32, i32) {
    %c0_i32 = arith.constant 0 : i32
    %c0_i32_0 = arith.constant 0 : i32
    %c0_i32_1 = arith.constant 0 : i32
    return %c0_i32, %c0_i32_0 : i32, i32
  }
  func.func @transform_4(%arg0: i32) -> (i32, i32) {
    %c0_i32 = arith.constant 0 : i32
    %c0_i32_0 = arith.constant 0 : i32
    return %arg0, %c0_i32 : i32, i32
  }
  func.func @transform_5(%arg0: i32) -> (i32, i32) {
    %c0_i32 = arith.constant 0 : i32
    %c0_i32_0 = arith.constant 0 : i32
    %c0_i32_1 = arith.constant 0 : i32
    return %c0_i32, %c0_i32_0 : i32, i32
  }
  func.func @transform_6(%arg0: i32) -> (i32, i32) {
    %c0_i32 = arith.constant 0 : i32
    %c0_i32_0 = arith.constant 0 : i32
    %c0_i32_1 = arith.constant 0 : i32
    return %c0_i32, %c0_i32_0 : i32, i32
  }
}

module attributes {stable_mosaic.version = 11 : i64} {
  func.func @_conv2_kernel(%arg0: i32, %arg1: memref<1x16x16x128xf32, #tpu.memory_space<vmem>>, %arg2: memref<1x128xf32, #tpu.memory_space<vmem>>, %arg3: memref<1x128xf32, #tpu.memory_space<vmem>>, %arg4: memref<9x128x128xf32, #tpu.memory_space<vmem>>, %arg5: memref<1x16x16x128xf32, #tpu.memory_space<vmem>>, %arg6: memref<1x128xf32, #tpu.memory_space<vmem>>, %arg7: memref<1x128xf32, #tpu.memory_space<vmem>>, %arg8: memref<18x32x128xf32, #tpu.memory_space<vmem>>, %arg9: memref<256x128xf32, #tpu.memory_space<vmem>>) attributes {dimension_semantics = [#tpu.dimension_semantics<arbitrary>], iteration_bounds = array<i64: 2>, scalar_prefetch = 0 : i64, scratch_operands = 2 : i64, tpu.core_type = #tpu.core_type<tc>, window_params = [{transform_indices = @transform_0, window_bounds = array<i64: 1, 16, 16, 128>}, {pipeline_mode = #tpu.pipeline_mode<synchronous>, transform_indices = @transform_1, window_bounds = array<i64: 1, 128>}, {pipeline_mode = #tpu.pipeline_mode<synchronous>, transform_indices = @transform_2, window_bounds = array<i64: 1, 128>}, {pipeline_mode = #tpu.pipeline_mode<synchronous>, transform_indices = @transform_3, window_bounds = array<i64: 9, 128, 128>}, {transform_indices = @transform_4, window_bounds = array<i64: 1, 16, 16, 128>}, {pipeline_mode = #tpu.pipeline_mode<synchronous>, transform_indices = @transform_5, window_bounds = array<i64: 1, 128>}, {pipeline_mode = #tpu.pipeline_mode<synchronous>, transform_indices = @transform_6, window_bounds = array<i64: 1, 128>}]} {
    %c0_i32 = arith.constant 0 : i32
    %0 = arith.cmpi eq, %arg0, %c0_i32 : i32
    %1 = arith.extui %0 : i1 to i32
    %c0_i32_0 = arith.constant 0 : i32
    %2 = arith.cmpi ne, %1, %c0_i32_0 : i32
    scf.if %2 {
      %cst_115 = arith.constant 0.000000e+00 : f32
      %99 = vector.broadcast %cst_115 : f32 to vector<18x32x128xf32>
      %c0_116 = arith.constant 0 : index
      %c0_117 = arith.constant 0 : index
      %c0_118 = arith.constant 0 : index
      %100 = vector.load %arg8[%c0_116, %c0_117, %c0_118] : memref<18x32x128xf32, #tpu.memory_space<vmem>>, vector<18x32x128xf32>
      tpu.vector_store %arg8[%c0_116, %c0_117, %c0_118], %99 {strides = array<i32>} : memref<18x32x128xf32, #tpu.memory_space<vmem>>, vector<18x32x128xf32>,
      %cst_119 = arith.constant 0.000000e+00 : f32
      %101 = vector.broadcast %cst_119 : f32 to vector<1x128xf32>
      %c0_120 = arith.constant 0 : index
      %c0_121 = arith.constant 0 : index
      %102 = vector.load %arg6[%c0_120, %c0_121] : memref<1x128xf32, #tpu.memory_space<vmem>>, vector<1x128xf32>
      tpu.vector_store %arg6[%c0_120, %c0_121], %101 {strides = array<i32>} : memref<1x128xf32, #tpu.memory_space<vmem>>, vector<1x128xf32>,
      %cst_122 = arith.constant 0.000000e+00 : f32
      %103 = vector.broadcast %cst_122 : f32 to vector<1x128xf32>
      %c0_123 = arith.constant 0 : index
      %c0_124 = arith.constant 0 : index
      %104 = vector.load %arg7[%c0_123, %c0_124] : memref<1x128xf32, #tpu.memory_space<vmem>>, vector<1x128xf32>
      tpu.vector_store %arg7[%c0_123, %c0_124], %103 {strides = array<i32>} : memref<1x128xf32, #tpu.memory_space<vmem>>, vector<1x128xf32>,
    } else {
    }
    %c0 = arith.constant 0 : index
    %c0_1 = arith.constant 0 : index
    %c0_2 = arith.constant 0 : index
    %c0_3 = arith.constant 0 : index
    %3 = vector.load %arg1[%c0, %c0_1, %c0_2, %c0_3] : memref<1x16x16x128xf32, #tpu.memory_space<vmem>>, vector<1x16x16x128xf32>
    %4 = vector.shape_cast %3 : vector<1x16x16x128xf32> to vector<256x128xf32>
    %c0_4 = arith.constant 0 : index
    %c0_5 = arith.constant 0 : index
    %5 = vector.load %arg2[%c0_4, %c0_5] : memref<1x128xf32, #tpu.memory_space<vmem>>, vector<1x128xf32>
    %6 = vector.broadcast %5 : vector<1x128xf32> to vector<256x128xf32>
    %7 = arith.mulf %4, %6 : vector<256x128xf32>
    %c0_6 = arith.constant 0 : index
    %c0_7 = arith.constant 0 : index
    %8 = vector.load %arg3[%c0_6, %c0_7] : memref<1x128xf32, #tpu.memory_space<vmem>>, vector<1x128xf32>
    %9 = vector.broadcast %8 : vector<1x128xf32> to vector<256x128xf32>
    %10 = arith.addf %7, %9 : vector<256x128xf32>
    %cst = arith.constant 0.000000e+00 : f32
    %11 = vector.broadcast %cst : f32 to vector<256x128xf32>
    %12 = arith.maximumf %10, %11 : vector<256x128xf32>
    %13 = vector.shape_cast %12 : vector<256x128xf32> to vector<16x16x128xf32>
    %c1 = arith.constant 1 : index
    %c8 = arith.constant 8 : index
    %c0_8 = arith.constant 0 : index
    %14 = vector.load %arg8[%c1, %c8, %c0_8] : memref<18x32x128xf32, #tpu.memory_space<vmem>>, vector<16x16x128xf32>
    tpu.vector_store %arg8[%c1, %c8, %c0_8], %13 {strides = array<i32>} : memref<18x32x128xf32, #tpu.memory_space<vmem>>, vector<16x16x128xf32>,
    %c0_9 = arith.constant 0 : index
    %c7 = arith.constant 7 : index
    %c0_10 = arith.constant 0 : index
    %15 = vector.load %arg8[%c0_9, %c7, %c0_10] : memref<18x32x128xf32, #tpu.memory_space<vmem>>, vector<16x16x128xf32>
    %16 = vector.shape_cast %15 : vector<16x16x128xf32> to vector<256x128xf32>
    %c0_11 = arith.constant 0 : index
    %c0_12 = arith.constant 0 : index
    %c0_13 = arith.constant 0 : index
    %17 = vector.load %arg4[%c0_11, %c0_12, %c0_13] : memref<9x128x128xf32, #tpu.memory_space<vmem>>, vector<1x128x128xf32>
    %18 = vector.shape_cast %17 : vector<1x128x128xf32> to vector<128x128xf32>
    %cst_14 = arith.constant dense<0.000000e+00> : vector<256x128xf32>
    %19 = tpu.matmul %16, %18, %cst_14 {dimension_numbers = #tpu.dot_dimension_numbers<[1], [0], [0], [1], [0, 0, 1, 1], [], []>} : vector<256x128xf32>, vector<128x128xf32>, vector<256x128xf32> -> vector<256x128xf32>
    %c0_15 = arith.constant 0 : index
    %c0_16 = arith.constant 0 : index
    %20 = vector.load %arg9[%c0_15, %c0_16] : memref<256x128xf32, #tpu.memory_space<vmem>>, vector<256x128xf32>
    tpu.vector_store %arg9[%c0_15, %c0_16], %19 {strides = array<i32>} : memref<256x128xf32, #tpu.memory_space<vmem>>, vector<256x128xf32>,
    %c0_17 = arith.constant 0 : index
    %c8_18 = arith.constant 8 : index
    %c0_19 = arith.constant 0 : index
    %21 = vector.load %arg8[%c0_17, %c8_18, %c0_19] : memref<18x32x128xf32, #tpu.memory_space<vmem>>, vector<16x16x128xf32>
    %22 = vector.shape_cast %21 : vector<16x16x128xf32> to vector<256x128xf32>
    %c1_20 = arith.constant 1 : index
    %c0_21 = arith.constant 0 : index
    %c0_22 = arith.constant 0 : index
    %23 = vector.load %arg4[%c1_20, %c0_21, %c0_22] : memref<9x128x128xf32, #tpu.memory_space<vmem>>, vector<1x128x128xf32>
    %24 = vector.shape_cast %23 : vector<1x128x128xf32> to vector<128x128xf32>
    %cst_23 = arith.constant dense<0.000000e+00> : vector<256x128xf32>
    %25 = tpu.matmul %22, %24, %cst_23 {dimension_numbers = #tpu.dot_dimension_numbers<[1], [0], [0], [1], [0, 0, 1, 1], [], []>} : vector<256x128xf32>, vector<128x128xf32>, vector<256x128xf32> -> vector<256x128xf32>
    %c0_24 = arith.constant 0 : index
    %c0_25 = arith.constant 0 : index
    %26 = vector.load %arg9[%c0_24, %c0_25] : memref<256x128xf32, #tpu.memory_space<vmem>>, vector<256x128xf32>
    %27 = arith.addf %26, %25 : vector<256x128xf32>
    %c0_26 = arith.constant 0 : index
    %c0_27 = arith.constant 0 : index
    %28 = vector.load %arg9[%c0_26, %c0_27] : memref<256x128xf32, #tpu.memory_space<vmem>>, vector<256x128xf32>
    tpu.vector_store %arg9[%c0_26, %c0_27], %27 {strides = array<i32>} : memref<256x128xf32, #tpu.memory_space<vmem>>, vector<256x128xf32>,
    %c0_28 = arith.constant 0 : index
    %c9 = arith.constant 9 : index
    %c0_29 = arith.constant 0 : index
    %29 = vector.load %arg8[%c0_28, %c9, %c0_29] : memref<18x32x128xf32, #tpu.memory_space<vmem>>, vector<16x16x128xf32>
    %30 = vector.shape_cast %29 : vector<16x16x128xf32> to vector<256x128xf32>
    %c2 = arith.constant 2 : index
    %c0_30 = arith.constant 0 : index
    %c0_31 = arith.constant 0 : index
    %31 = vector.load %arg4[%c2, %c0_30, %c0_31] : memref<9x128x128xf32, #tpu.memory_space<vmem>>, vector<1x128x128xf32>
    %32 = vector.shape_cast %31 : vector<1x128x128xf32> to vector<128x128xf32>
    %cst_32 = arith.constant dense<0.000000e+00> : vector<256x128xf32>
    %33 = tpu.matmul %30, %32, %cst_32 {dimension_numbers = #tpu.dot_dimension_numbers<[1], [0], [0], [1], [0, 0, 1, 1], [], []>} : vector<256x128xf32>, vector<128x128xf32>, vector<256x128xf32> -> vector<256x128xf32>
    %c0_33 = arith.constant 0 : index
    %c0_34 = arith.constant 0 : index
    %34 = vector.load %arg9[%c0_33, %c0_34] : memref<256x128xf32, #tpu.memory_space<vmem>>, vector<256x128xf32>
    %35 = arith.addf %34, %33 : vector<256x128xf32>
    %c0_35 = arith.constant 0 : index
    %c0_36 = arith.constant 0 : index
    %36 = vector.load %arg9[%c0_35, %c0_36] : memref<256x128xf32, #tpu.memory_space<vmem>>, vector<256x128xf32>
    tpu.vector_store %arg9[%c0_35, %c0_36], %35 {strides = array<i32>} : memref<256x128xf32, #tpu.memory_space<vmem>>, vector<256x128xf32>,
    %c1_37 = arith.constant 1 : index
    %c7_38 = arith.constant 7 : index
    %c0_39 = arith.constant 0 : index
    %37 = vector.load %arg8[%c1_37, %c7_38, %c0_39] : memref<18x32x128xf32, #tpu.memory_space<vmem>>, vector<16x16x128xf32>
    %38 = vector.shape_cast %37 : vector<16x16x128xf32> to vector<256x128xf32>
    %c3 = arith.constant 3 : index
    %c0_40 = arith.constant 0 : index
    %c0_41 = arith.constant 0 : index
    %39 = vector.load %arg4[%c3, %c0_40, %c0_41] : memref<9x128x128xf32, #tpu.memory_space<vmem>>, vector<1x128x128xf32>
    %40 = vector.shape_cast %39 : vector<1x128x128xf32> to vector<128x128xf32>
    %cst_42 = arith.constant dense<0.000000e+00> : vector<256x128xf32>
    %41 = tpu.matmul %38, %40, %cst_42 {dimension_numbers = #tpu.dot_dimension_numbers<[1], [0], [0], [1], [0, 0, 1, 1], [], []>} : vector<256x128xf32>, vector<128x128xf32>, vector<256x128xf32> -> vector<256x128xf32>
    %c0_43 = arith.constant 0 : index
    %c0_44 = arith.constant 0 : index
    %42 = vector.load %arg9[%c0_43, %c0_44] : memref<256x128xf32, #tpu.memory_space<vmem>>, vector<256x128xf32>
    %43 = arith.addf %42, %41 : vector<256x128xf32>
    %c0_45 = arith.constant 0 : index
    %c0_46 = arith.constant 0 : index
    %44 = vector.load %arg9[%c0_45, %c0_46] : memref<256x128xf32, #tpu.memory_space<vmem>>, vector<256x128xf32>
    tpu.vector_store %arg9[%c0_45, %c0_46], %43 {strides = array<i32>} : memref<256x128xf32, #tpu.memory_space<vmem>>, vector<256x128xf32>,
    %c1_47 = arith.constant 1 : index
    %c8_48 = arith.constant 8 : index
    %c0_49 = arith.constant 0 : index
    %45 = vector.load %arg8[%c1_47, %c8_48, %c0_49] : memref<18x32x128xf32, #tpu.memory_space<vmem>>, vector<16x16x128xf32>
    %46 = vector.shape_cast %45 : vector<16x16x128xf32> to vector<256x128xf32>
    %c4 = arith.constant 4 : index
    %c0_50 = arith.constant 0 : index
    %c0_51 = arith.constant 0 : index
    %47 = vector.load %arg4[%c4, %c0_50, %c0_51] : memref<9x128x128xf32, #tpu.memory_space<vmem>>, vector<1x128x128xf32>
    %48 = vector.shape_cast %47 : vector<1x128x128xf32> to vector<128x128xf32>
    %cst_52 = arith.constant dense<0.000000e+00> : vector<256x128xf32>
    %49 = tpu.matmul %46, %48, %cst_52 {dimension_numbers = #tpu.dot_dimension_numbers<[1], [0], [0], [1], [0, 0, 1, 1], [], []>} : vector<256x128xf32>, vector<128x128xf32>, vector<256x128xf32> -> vector<256x128xf32>
    %c0_53 = arith.constant 0 : index
    %c0_54 = arith.constant 0 : index
    %50 = vector.load %arg9[%c0_53, %c0_54] : memref<256x128xf32, #tpu.memory_space<vmem>>, vector<256x128xf32>
    %51 = arith.addf %50, %49 : vector<256x128xf32>
    %c0_55 = arith.constant 0 : index
    %c0_56 = arith.constant 0 : index
    %52 = vector.load %arg9[%c0_55, %c0_56] : memref<256x128xf32, #tpu.memory_space<vmem>>, vector<256x128xf32>
    tpu.vector_store %arg9[%c0_55, %c0_56], %51 {strides = array<i32>} : memref<256x128xf32, #tpu.memory_space<vmem>>, vector<256x128xf32>,
    %c1_57 = arith.constant 1 : index
    %c9_58 = arith.constant 9 : index
    %c0_59 = arith.constant 0 : index
    %53 = vector.load %arg8[%c1_57, %c9_58, %c0_59] : memref<18x32x128xf32, #tpu.memory_space<vmem>>, vector<16x16x128xf32>
    %54 = vector.shape_cast %53 : vector<16x16x128xf32> to vector<256x128xf32>
    %c5 = arith.constant 5 : index
    %c0_60 = arith.constant 0 : index
    %c0_61 = arith.constant 0 : index
    %55 = vector.load %arg4[%c5, %c0_60, %c0_61] : memref<9x128x128xf32, #tpu.memory_space<vmem>>, vector<1x128x128xf32>
    %56 = vector.shape_cast %55 : vector<1x128x128xf32> to vector<128x128xf32>
    %cst_62 = arith.constant dense<0.000000e+00> : vector<256x128xf32>
    %57 = tpu.matmul %54, %56, %cst_62 {dimension_numbers = #tpu.dot_dimension_numbers<[1], [0], [0], [1], [0, 0, 1, 1], [], []>} : vector<256x128xf32>, vector<128x128xf32>, vector<256x128xf32> -> vector<256x128xf32>
    %c0_63 = arith.constant 0 : index
    %c0_64 = arith.constant 0 : index
    %58 = vector.load %arg9[%c0_63, %c0_64] : memref<256x128xf32, #tpu.memory_space<vmem>>, vector<256x128xf32>
    %59 = arith.addf %58, %57 : vector<256x128xf32>
    %c0_65 = arith.constant 0 : index
    %c0_66 = arith.constant 0 : index
    %60 = vector.load %arg9[%c0_65, %c0_66] : memref<256x128xf32, #tpu.memory_space<vmem>>, vector<256x128xf32>
    tpu.vector_store %arg9[%c0_65, %c0_66], %59 {strides = array<i32>} : memref<256x128xf32, #tpu.memory_space<vmem>>, vector<256x128xf32>,
    %c2_67 = arith.constant 2 : index
    %c7_68 = arith.constant 7 : index
    %c0_69 = arith.constant 0 : index
    %61 = vector.load %arg8[%c2_67, %c7_68, %c0_69] : memref<18x32x128xf32, #tpu.memory_space<vmem>>, vector<16x16x128xf32>
    %62 = vector.shape_cast %61 : vector<16x16x128xf32> to vector<256x128xf32>
    %c6 = arith.constant 6 : index
    %c0_70 = arith.constant 0 : index
    %c0_71 = arith.constant 0 : index
    %63 = vector.load %arg4[%c6, %c0_70, %c0_71] : memref<9x128x128xf32, #tpu.memory_space<vmem>>, vector<1x128x128xf32>
    %64 = vector.shape_cast %63 : vector<1x128x128xf32> to vector<128x128xf32>
    %cst_72 = arith.constant dense<0.000000e+00> : vector<256x128xf32>
    %65 = tpu.matmul %62, %64, %cst_72 {dimension_numbers = #tpu.dot_dimension_numbers<[1], [0], [0], [1], [0, 0, 1, 1], [], []>} : vector<256x128xf32>, vector<128x128xf32>, vector<256x128xf32> -> vector<256x128xf32>
    %c0_73 = arith.constant 0 : index
    %c0_74 = arith.constant 0 : index
    %66 = vector.load %arg9[%c0_73, %c0_74] : memref<256x128xf32, #tpu.memory_space<vmem>>, vector<256x128xf32>
    %67 = arith.addf %66, %65 : vector<256x128xf32>
    %c0_75 = arith.constant 0 : index
    %c0_76 = arith.constant 0 : index
    %68 = vector.load %arg9[%c0_75, %c0_76] : memref<256x128xf32, #tpu.memory_space<vmem>>, vector<256x128xf32>
    tpu.vector_store %arg9[%c0_75, %c0_76], %67 {strides = array<i32>} : memref<256x128xf32, #tpu.memory_space<vmem>>, vector<256x128xf32>,
    %c2_77 = arith.constant 2 : index
    %c8_78 = arith.constant 8 : index
    %c0_79 = arith.constant 0 : index
    %69 = vector.load %arg8[%c2_77, %c8_78, %c0_79] : memref<18x32x128xf32, #tpu.memory_space<vmem>>, vector<16x16x128xf32>
    %70 = vector.shape_cast %69 : vector<16x16x128xf32> to vector<256x128xf32>
    %c7_80 = arith.constant 7 : index
    %c0_81 = arith.constant 0 : index
    %c0_82 = arith.constant 0 : index
    %71 = vector.load %arg4[%c7_80, %c0_81, %c0_82] : memref<9x128x128xf32, #tpu.memory_space<vmem>>, vector<1x128x128xf32>
    %72 = vector.shape_cast %71 : vector<1x128x128xf32> to vector<128x128xf32>
    %cst_83 = arith.constant dense<0.000000e+00> : vector<256x128xf32>
    %73 = tpu.matmul %70, %72, %cst_83 {dimension_numbers = #tpu.dot_dimension_numbers<[1], [0], [0], [1], [0, 0, 1, 1], [], []>} : vector<256x128xf32>, vector<128x128xf32>, vector<256x128xf32> -> vector<256x128xf32>
    %c0_84 = arith.constant 0 : index
    %c0_85 = arith.constant 0 : index
    %74 = vector.load %arg9[%c0_84, %c0_85] : memref<256x128xf32, #tpu.memory_space<vmem>>, vector<256x128xf32>
    %75 = arith.addf %74, %73 : vector<256x128xf32>
    %c0_86 = arith.constant 0 : index
    %c0_87 = arith.constant 0 : index
    %76 = vector.load %arg9[%c0_86, %c0_87] : memref<256x128xf32, #tpu.memory_space<vmem>>, vector<256x128xf32>
    tpu.vector_store %arg9[%c0_86, %c0_87], %75 {strides = array<i32>} : memref<256x128xf32, #tpu.memory_space<vmem>>, vector<256x128xf32>,
    %c2_88 = arith.constant 2 : index
    %c9_89 = arith.constant 9 : index
    %c0_90 = arith.constant 0 : index
    %77 = vector.load %arg8[%c2_88, %c9_89, %c0_90] : memref<18x32x128xf32, #tpu.memory_space<vmem>>, vector<16x16x128xf32>
    %78 = vector.shape_cast %77 : vector<16x16x128xf32> to vector<256x128xf32>
    %c8_91 = arith.constant 8 : index
    %c0_92 = arith.constant 0 : index
    %c0_93 = arith.constant 0 : index
    %79 = vector.load %arg4[%c8_91, %c0_92, %c0_93] : memref<9x128x128xf32, #tpu.memory_space<vmem>>, vector<1x128x128xf32>
    %80 = vector.shape_cast %79 : vector<1x128x128xf32> to vector<128x128xf32>
    %cst_94 = arith.constant dense<0.000000e+00> : vector<256x128xf32>
    %81 = tpu.matmul %78, %80, %cst_94 {dimension_numbers = #tpu.dot_dimension_numbers<[1], [0], [0], [1], [0, 0, 1, 1], [], []>} : vector<256x128xf32>, vector<128x128xf32>, vector<256x128xf32> -> vector<256x128xf32>
    %c0_95 = arith.constant 0 : index
    %c0_96 = arith.constant 0 : index
    %82 = vector.load %arg9[%c0_95, %c0_96] : memref<256x128xf32, #tpu.memory_space<vmem>>, vector<256x128xf32>
    %83 = arith.addf %82, %81 : vector<256x128xf32>
    %c0_97 = arith.constant 0 : index
    %c0_98 = arith.constant 0 : index
    %84 = vector.load %arg9[%c0_97, %c0_98] : memref<256x128xf32, #tpu.memory_space<vmem>>, vector<256x128xf32>
    tpu.vector_store %arg9[%c0_97, %c0_98], %83 {strides = array<i32>} : memref<256x128xf32, #tpu.memory_space<vmem>>, vector<256x128xf32>,
    %c0_99 = arith.constant 0 : index
    %c0_100 = arith.constant 0 : index
    %85 = vector.load %arg9[%c0_99, %c0_100] : memref<256x128xf32, #tpu.memory_space<vmem>>, vector<256x128xf32>
    %86 = vector.shape_cast %85 : vector<256x128xf32> to vector<1x16x16x128xf32>
    %c0_101 = arith.constant 0 : index
    %c0_102 = arith.constant 0 : index
    %c0_103 = arith.constant 0 : index
    %c0_104 = arith.constant 0 : index
    %87 = vector.load %arg5[%c0_101, %c0_102, %c0_103, %c0_104] : memref<1x16x16x128xf32, #tpu.memory_space<vmem>>, vector<1x16x16x128xf32>
    tpu.vector_store %arg5[%c0_101, %c0_102, %c0_103, %c0_104], %86 {strides = array<i32>} : memref<1x16x16x128xf32, #tpu.memory_space<vmem>>, vector<1x16x16x128xf32>,
    %c0_105 = arith.constant 0 : index
    %c0_106 = arith.constant 0 : index
    %88 = vector.load %arg6[%c0_105, %c0_106] : memref<1x128xf32, #tpu.memory_space<vmem>>, vector<1x128xf32>
    %cst_107 = arith.constant dense<0.000000e+00> : vector<128xf32>
    %89 = vector.multi_reduction <add>, %85, %cst_107 [0] : vector<256x128xf32> to vector<128xf32>
    %90 = vector.shape_cast %89 : vector<128xf32> to vector<1x128xf32>
    %91 = arith.addf %88, %90 : vector<1x128xf32>
    %c0_108 = arith.constant 0 : index
    %c0_109 = arith.constant 0 : index
    %92 = vector.load %arg6[%c0_108, %c0_109] : memref<1x128xf32, #tpu.memory_space<vmem>>, vector<1x128xf32>
    tpu.vector_store %arg6[%c0_108, %c0_109], %91 {strides = array<i32>} : memref<1x128xf32, #tpu.memory_space<vmem>>, vector<1x128xf32>,
    %c0_110 = arith.constant 0 : index
    %c0_111 = arith.constant 0 : index
    %93 = vector.load %arg7[%c0_110, %c0_111] : memref<1x128xf32, #tpu.memory_space<vmem>>, vector<1x128xf32>
    %94 = arith.mulf %85, %85 : vector<256x128xf32>
    %cst_112 = arith.constant dense<0.000000e+00> : vector<128xf32>
    %95 = vector.multi_reduction <add>, %94, %cst_112 [0] : vector<256x128xf32> to vector<128xf32>
    %96 = vector.shape_cast %95 : vector<128xf32> to vector<1x128xf32>
    %97 = arith.addf %93, %96 : vector<1x128xf32>
    %c0_113 = arith.constant 0 : index
    %c0_114 = arith.constant 0 : index
    %98 = vector.load %arg7[%c0_113, %c0_114] : memref<1x128xf32, #tpu.memory_space<vmem>>, vector<1x128xf32>
    tpu.vector_store %arg7[%c0_113, %c0_114], %97 {strides = array<i32>} : memref<1x128xf32, #tpu.memory_space<vmem>>, vector<1x128xf32>,
    return
  }
  func.func @transform_0(%arg0: i32) -> (i32, i32, i32, i32) {
    %c0_i32 = arith.constant 0 : i32
    %c0_i32_0 = arith.constant 0 : i32
    %c0_i32_1 = arith.constant 0 : i32
    %c0_i32_2 = arith.constant 0 : i32
    return %arg0, %c0_i32, %c0_i32_0, %c0_i32_1 : i32, i32, i32, i32
  }
  func.func @transform_1(%arg0: i32) -> (i32, i32) {
    %c0_i32 = arith.constant 0 : i32
    %c0_i32_0 = arith.constant 0 : i32
    %c0_i32_1 = arith.constant 0 : i32
    return %c0_i32, %c0_i32_0 : i32, i32
  }
  func.func @transform_2(%arg0: i32) -> (i32, i32) {
    %c0_i32 = arith.constant 0 : i32
    %c0_i32_0 = arith.constant 0 : i32
    %c0_i32_1 = arith.constant 0 : i32
    return %c0_i32, %c0_i32_0 : i32, i32
  }
  func.func @transform_3(%arg0: i32) -> (i32, i32, i32) {
    %c0_i32 = arith.constant 0 : i32
    %c0_i32_0 = arith.constant 0 : i32
    %c0_i32_1 = arith.constant 0 : i32
    %c0_i32_2 = arith.constant 0 : i32
    return %c0_i32, %c0_i32_0, %c0_i32_1 : i32, i32, i32
  }
  func.func @transform_4(%arg0: i32) -> (i32, i32, i32, i32) {
    %c0_i32 = arith.constant 0 : i32
    %c0_i32_0 = arith.constant 0 : i32
    %c0_i32_1 = arith.constant 0 : i32
    %c0_i32_2 = arith.constant 0 : i32
    return %arg0, %c0_i32, %c0_i32_0, %c0_i32_1 : i32, i32, i32, i32
  }
  func.func @transform_5(%arg0: i32) -> (i32, i32) {
    %c0_i32 = arith.constant 0 : i32
    %c0_i32_0 = arith.constant 0 : i32
    %c0_i32_1 = arith.constant 0 : i32
    return %c0_i32, %c0_i32_0 : i32, i32
  }
  func.func @transform_6(%arg0: i32) -> (i32, i32) {
    %c0_i32 = arith.constant 0 : i32
    %c0_i32_0 = arith.constant 0 : i32
    %c0_i32_1 = arith.constant 0 : i32
    return %c0_i32, %c0_i32_0 : i32, i32
  }
}

module attributes {stable_mosaic.version = 11 : i64} {
  func.func @_residual_out_kernel(%arg0: i32, %arg1: memref<256x16xf32, #tpu.memory_space<vmem>>, %arg2: memref<256x128xf32, #tpu.memory_space<vmem>>, %arg3: memref<16x128xf32, #tpu.memory_space<vmem>>, %arg4: memref<1x128xf32, #tpu.memory_space<vmem>>, %arg5: memref<1x128xf32, #tpu.memory_space<vmem>>, %arg6: memref<1x128xf32, #tpu.memory_space<vmem>>, %arg7: memref<1x128xf32, #tpu.memory_space<vmem>>, %arg8: memref<256x128xf32, #tpu.memory_space<vmem>>) attributes {dimension_semantics = [#tpu.dimension_semantics<parallel>], iteration_bounds = array<i64: 2>, scalar_prefetch = 0 : i64, scratch_operands = 0 : i64, tpu.core_type = #tpu.core_type<tc>, window_params = [{transform_indices = @transform_0, window_bounds = array<i64: 256, 16>}, {transform_indices = @transform_1, window_bounds = array<i64: 256, 128>}, {pipeline_mode = #tpu.pipeline_mode<synchronous>, transform_indices = @transform_2, window_bounds = array<i64: 16, 128>}, {pipeline_mode = #tpu.pipeline_mode<synchronous>, transform_indices = @transform_3, window_bounds = array<i64: 1, 128>}, {pipeline_mode = #tpu.pipeline_mode<synchronous>, transform_indices = @transform_4, window_bounds = array<i64: 1, 128>}, {pipeline_mode = #tpu.pipeline_mode<synchronous>, transform_indices = @transform_5, window_bounds = array<i64: 1, 128>}, {pipeline_mode = #tpu.pipeline_mode<synchronous>, transform_indices = @transform_6, window_bounds = array<i64: 1, 128>}, {transform_indices = @transform_7, window_bounds = array<i64: 256, 128>}]} {
    %c0 = arith.constant 0 : index
    %c0_0 = arith.constant 0 : index
    %0 = vector.load %arg1[%c0, %c0_0] : memref<256x16xf32, #tpu.memory_space<vmem>>, vector<256x16xf32>
    %c0_1 = arith.constant 0 : index
    %c0_2 = arith.constant 0 : index
    %1 = vector.load %arg3[%c0_1, %c0_2] : memref<16x128xf32, #tpu.memory_space<vmem>>, vector<16x128xf32>
    %cst = arith.constant dense<0.000000e+00> : vector<256x128xf32>
    %2 = tpu.matmul %0, %1, %cst {dimension_numbers = #tpu.dot_dimension_numbers<[1], [0], [0], [1], [0, 0, 1, 1], [], []>} : vector<256x16xf32>, vector<16x128xf32>, vector<256x128xf32> -> vector<256x128xf32>
    %c0_3 = arith.constant 0 : index
    %c0_4 = arith.constant 0 : index
    %3 = vector.load %arg2[%c0_3, %c0_4] : memref<256x128xf32, #tpu.memory_space<vmem>>, vector<256x128xf32>
    %c0_5 = arith.constant 0 : index
    %c0_6 = arith.constant 0 : index
    %4 = vector.load %arg4[%c0_5, %c0_6] : memref<1x128xf32, #tpu.memory_space<vmem>>, vector<1x128xf32>
    %5 = vector.broadcast %4 : vector<1x128xf32> to vector<256x128xf32>
    %6 = arith.mulf %3, %5 : vector<256x128xf32>
    %c0_7 = arith.constant 0 : index
    %c0_8 = arith.constant 0 : index
    %7 = vector.load %arg5[%c0_7, %c0_8] : memref<1x128xf32, #tpu.memory_space<vmem>>, vector<1x128xf32>
    %8 = vector.broadcast %7 : vector<1x128xf32> to vector<256x128xf32>
    %9 = arith.addf %6, %8 : vector<256x128xf32>
    %c0_9 = arith.constant 0 : index
    %c0_10 = arith.constant 0 : index
    %10 = vector.load %arg6[%c0_9, %c0_10] : memref<1x128xf32, #tpu.memory_space<vmem>>, vector<1x128xf32>
    %11 = vector.broadcast %10 : vector<1x128xf32> to vector<256x128xf32>
    %12 = arith.mulf %2, %11 : vector<256x128xf32>
    %13 = arith.addf %9, %12 : vector<256x128xf32>
    %c0_11 = arith.constant 0 : index
    %c0_12 = arith.constant 0 : index
    %14 = vector.load %arg7[%c0_11, %c0_12] : memref<1x128xf32, #tpu.memory_space<vmem>>, vector<1x128xf32>
    %15 = vector.broadcast %14 : vector<1x128xf32> to vector<256x128xf32>
    %16 = arith.addf %13, %15 : vector<256x128xf32>
    %cst_13 = arith.constant 0.000000e+00 : f32
    %17 = vector.broadcast %cst_13 : f32 to vector<256x128xf32>
    %18 = arith.maximumf %16, %17 : vector<256x128xf32>
    %c0_14 = arith.constant 0 : index
    %c0_15 = arith.constant 0 : index
    %19 = vector.load %arg8[%c0_14, %c0_15] : memref<256x128xf32, #tpu.memory_space<vmem>>, vector<256x128xf32>
    tpu.vector_store %arg8[%c0_14, %c0_15], %18 {strides = array<i32>} : memref<256x128xf32, #tpu.memory_space<vmem>>, vector<256x128xf32>,
    return
  }
  func.func @transform_0(%arg0: i32) -> (i32, i32) {
    %c0_i32 = arith.constant 0 : i32
    %c0_i32_0 = arith.constant 0 : i32
    return %arg0, %c0_i32 : i32, i32
  }
  func.func @transform_1(%arg0: i32) -> (i32, i32) {
    %c0_i32 = arith.constant 0 : i32
    %c0_i32_0 = arith.constant 0 : i32
    return %arg0, %c0_i32 : i32, i32
  }
  func.func @transform_2(%arg0: i32) -> (i32, i32) {
    %c0_i32 = arith.constant 0 : i32
    %c0_i32_0 = arith.constant 0 : i32
    %c0_i32_1 = arith.constant 0 : i32
    return %c0_i32, %c0_i32_0 : i32, i32
  }
  func.func @transform_3(%arg0: i32) -> (i32, i32) {
    %c0_i32 = arith.constant 0 : i32
    %c0_i32_0 = arith.constant 0 : i32
    %c0_i32_1 = arith.constant 0 : i32
    return %c0_i32, %c0_i32_0 : i32, i32
  }
  func.func @transform_4(%arg0: i32) -> (i32, i32) {
    %c0_i32 = arith.constant 0 : i32
    %c0_i32_0 = arith.constant 0 : i32
    %c0_i32_1 = arith.constant 0 : i32
    return %c0_i32, %c0_i32_0 : i32, i32
  }
  func.func @transform_5(%arg0: i32) -> (i32, i32) {
    %c0_i32 = arith.constant 0 : i32
    %c0_i32_0 = arith.constant 0 : i32
    %c0_i32_1 = arith.constant 0 : i32
    return %c0_i32, %c0_i32_0 : i32, i32
  }
  func.func @transform_6(%arg0: i32) -> (i32, i32) {
    %c0_i32 = arith.constant 0 : i32
    %c0_i32_0 = arith.constant 0 : i32
    %c0_i32_1 = arith.constant 0 : i32
    return %c0_i32, %c0_i32_0 : i32, i32
  }
  func.func @transform_7(%arg0: i32) -> (i32, i32) {
    %c0_i32 = arith.constant 0 : i32
    %c0_i32_0 = arith.constant 0 : i32
    return %arg0, %c0_i32 : i32, i32
  }
}

</mosaic_0001>

<bundles_post_ra>
// kernel: bottleneck_forward.4
= control target key start
LH: loop header
LB: loop body
LE: loop exit
PB: predicated region body
PF: predicated region fallthrough
CT: control target
= control target key end

     0   :  { %s1062_s21 = smov 0   ;;  %s1661_s0 = inlined_call_operand.vmem [shape: f32[512,16], index: 0, kind: input, shape index: {}]   ;;  %s1662_s1 = inlined_call_operand.vmem [shape: f32[16,128], index: 1, kind: input, shape index: {}]   ;;  %s1663_s2 = inlined_call_operand.vmem [shape: f32[512,128], index: 2, kind: output, shape index: {0}]   ;;  %s1664_s3 = inlined_call_operand.vmem [shape: f32[1,128], index: 3, kind: output, shape index: {1}]   ;;  %s1665_s4 = inlined_call_operand.vmem [shape: f32[1,128], index: 4, kind: output, shape index: {2}]   ;;  %s1666_s5 = inlined_call_operand.vmem [shape: f32[1,16], index: 5, kind: output, shape index: {3}]   ;;  %s1667_s6 = inlined_call_operand.vmem [shape: f32[16,16], index: 6, kind: output, shape index: {4}]  }
   0x1 LB: > { %s911_s22 = sadd.s32 4294967295, %s1024_s21   ;;  %p915_p0 = scmp.ge.s32.totalorder %s1024_s21, 1  ;;  %s1024_s21 = sphi %s1062_s21, %s17_s21  }
   0x2   : > { %p202_p1 = scmp.lt.s32.totalorder %s1024_s21, 3 }
   0x4   : > { %p203_p2 = pnand %p915_p0, %p202_p1 }
   0x6   : > { %206 = sbr.rel (%p203_p2) target bundleno = 545 (0x221), region = 28 }
   0xb   : > { %v277_v0 = vld [vmem:[%s1662_s1 + $0x8] sm:$0xff]  ;;  %v276_v1 = vld [vmem:[%s1662_s1] sm:$0xff]  ;;  %s916_s27 = sshll.u32 %s911_s22, 5  ;;  %vm278_vm0 = vcmask 130048   ;;  %p952_p4 = scmp.ne.s32.totalorder %s911_s22, 0 }
   0xc   : > { %389 = vmatpush.msra.mxu0 %v277_v0  ;;  %957 = vmatpush.msra.mxu3 %v277_v0  ;;  %p233_p3 = scmp.lt.s32.totalorder %s916_s27, 63 }
   0xd   : > { %956 = vmatpush.msra.mxu2 %v277_v0  ;;  %955 = vmatpush.msra.mxu1 %v277_v0 }
   0xe   : > { %390 = vmatpush.msra.mxu0 %v276_v1  ;;  %s1710_s27 = smov (!%p233_p3, %s916_s27), 63  ;;  %960 = vmatpush.msra.mxu3 %v276_v1 }
   0xf   : > { %959 = vmatpush.msra.mxu2 %v276_v1  ;;  %958 = vmatpush.msra.mxu1 %v276_v1  ;;  %s917_s28 = sshll.u32 %s1710_s27, 3 }
  0x10   : > { %s1086_s7 = scalar_lea.vmem %s1661_s0, %s917_s28  ;;  %s1253_s10 = scalar_lea.vmem %s1663_s2, %s917_s28 }
  0x11   : > { %v1089_v2 = vld [vmem:[%s1086_s7] sm:$0xff]  ;;  %v1092_v3 = vld [vmem:[%s1086_s7 + $0xb0] sm:$0xff]  ;;  %v1099_v4 = vld [vmem:[%s1086_s7 + $0x78] sm:$0xff] }
  0x12   : > { %920 = vmatmul.msk.f32.vlgmr.msra.gmra.mxu0 %vm278_vm0, %v1089_v2  ;;  %942 = vmatmul.msk.f32.vlgmr.msra.gmra.mxu3 %vm278_vm0, %v1092_v3  ;;  %v1104_v5 = vld [vmem:[%s1086_s7 + $0x8] sm:$0xff]  ;;  %v1107_v6 = vld [vmem:[%s1086_s7 + $0xb8] sm:$0xff]  ;;  %v1110_v7 = vld [vmem:[%s1086_s7 + $0x80] sm:$0xff] }
  0x13   : > { %935 = vmatmul.msk.f32.vlgmr.msra.gmra.mxu2 %vm278_vm0, %v1099_v4  ;;  %v1119_v8 = vld [vmem:[%s1086_s7 + $0x10] sm:$0xff]  ;;  %v1122_v9 = vld [vmem:[%s1086_s7 + $0xc0] sm:$0xff]  ;;  %v1125_v10 = vld [vmem:[%s1086_s7 + $0x88] sm:$0xff] }
  0x14   : > { %1683 = vst [vmem:[#allocation2_spill] sm:$0xff] %v1122_v9  ;;  %v1134_v11 = vld [vmem:[%s1086_s7 + $0x18] sm:$0xff]  ;;  %v1137_v12 = vld [vmem:[%s1086_s7 + $0xc8] sm:$0xff]  ;;  %v1140_v13 = vld [vmem:[%s1086_s7 + $0x90] sm:$0xff] }
  0x15   : > { %1684 = vst [vmem:[#allocation3_spill] sm:$0xff] %v1125_v10  ;;  %v1143_v14 = vld [vmem:[%s1086_s7 + $0x58] sm:$0xff]  ;;  %v1154_v15 = vld [vmem:[%s1086_s7 + $0x20] sm:$0xff]  ;;  %v1157_v16 = vld [vmem:[%s1086_s7 + $0xd0] sm:$0xff] }
  0x16   : > { %1685 = vst [vmem:[#allocation4_spill] sm:$0xff] %v1137_v12  ;;  %931 = vmatmul.msk.f32.vlgmr.msra.gmra.mxu1 %vm278_vm0, %v1143_v14  ;;  %v1160_v17 = vld [vmem:[%s1086_s7 + $0x98] sm:$0xff]  ;;  %v1163_v18 = vld [vmem:[%s1086_s7 + $0x60] sm:$0xff]  ;;  %v1174_v19 = vld [vmem:[%s1086_s7 + $0x28] sm:$0xff] }
  0x17   : > { %1686 = vst [vmem:[#allocation5_spill] sm:$0xff] %v1140_v13  ;;  %v1177_v20 = vld [vmem:[%s1086_s7 + $0xd8] sm:$0xff]  ;;  %v1180_v21 = vld [vmem:[%s1086_s7 + $0xa0] sm:$0xff]  ;;  %v1183_v22 = vld [vmem:[%s1086_s7 + $0x68] sm:$0xff] }
  0x18   : > { %1687 = vst [vmem:[#allocation6_spill] sm:$0xff] %v1157_v16  ;;  %v1194_v23 = vld [vmem:[%s1086_s7 + $0x30] sm:$0xff]  ;;  %v1197_v24 = vld [vmem:[%s1086_s7 + $0xe0] sm:$0xff]  ;;  %v1200_v25 = vld [vmem:[%s1086_s7 + $0xa8] sm:$0xff] }
  0x19   : > { %1688 = vst [vmem:[#allocation7_spill] sm:$0xff] %v1160_v17  ;;  %v1203_v26 = vld [vmem:[%s1086_s7 + $0x70] sm:$0xff]  ;;  %v1214_v27 = vld [vmem:[%s1086_s7 + $0x38] sm:$0xff]  ;;  %v1217_v28 = vld [vmem:[%s1086_s7 + $0xe8] sm:$0xff] }
  0x1a   : > { %921 = vmatmul.msk.f32.gmra.mxu0 %vm278_vm0, %v1104_v5  ;;  %943 = vmatmul.msk.f32.gmra.mxu3 %vm278_vm0, %v1107_v6  ;;  %1689 = vst [vmem:[#allocation8_spill] sm:$0xff] %v1177_v20  ;;  %v1224_v29 = vld [vmem:[%s1086_s7 + $0x40] sm:$0xff]  ;;  %v1227_v30 = vld [vmem:[%s1086_s7 + $0xf0] sm:$0xff]  ;;  %v1234_v31 = vld [vmem:[%s1086_s7 + $0x48] sm:$0xff] }
  0x1b   : > { %936 = vmatmul.msk.f32.gmra.mxu2 %vm278_vm0, %v1110_v7  ;;  %1690 = vst [vmem:[#allocation9_spill] sm:$0xff] %v1180_v21  ;;  %v1237_v32 = vld [vmem:[%s1086_s7 + $0xf8] sm:$0xff]  ;;  %v1244_v33 = vld [vmem:[%s1086_s7 + $0x50] sm:$0xff] }
  0x1c   : > { %1691 = vst [vmem:[#allocation10_spill] sm:$0xff] %v1197_v24 }
  0x1d   : > { %1692 = vst [vmem:[#allocation11_spill] sm:$0xff] %v1227_v30 }
  0x1e   : > { %932 = vmatmul.msk.f32.gmra.mxu1 %vm278_vm0, %v1163_v18  ;;  %1693 = vst [vmem:[#allocation12_spill] sm:$0xff] %v1237_v32 }
  0x22   : > { %922 = vmatmul.msk.f32.gmra.mxu0 %vm278_vm0, %v1119_v8  ;;  %944 = vmatmul.msk.f32.gmra.mxu3 %vm278_vm0, %v1122_v9 }
  0x23   : > { %937 = vmatmul.msk.f32.gmra.mxu2 %vm278_vm0, %v1125_v10 }
  0x26   : > { %933 = vmatmul.msk.f32.gmra.mxu1 %vm278_vm0, %v1183_v22 }
  0x2a   : > { %923 = vmatmul.msk.f32.gmra.mxu0 %vm278_vm0, %v1134_v11  ;;  %945 = vmatmul.msk.f32.gmra.mxu3 %vm278_vm0, %v1137_v12 }
  0x2b   : > { %938 = vmatmul.msk.f32.gmra.mxu2 %vm278_vm0, %v1140_v13 }
  0x2e   : > { %934 = vmatmul.msk.f32.gmra.mxu1 %vm278_vm0, %v1203_v26 }
  0x32   : > { %924 = vmatmul.msk.f32.gmra.mxu0 %vm278_vm0, %v1154_v15  ;;  %946 = vmatmul.msk.f32.gmra.mxu3 %vm278_vm0, %v1157_v16 }
  0x33   : > { %939 = vmatmul.msk.f32.gmra.mxu2 %vm278_vm0, %v1160_v17 }
  0x3a   : > { %925 = vmatmul.msk.f32.gmra.mxu0 %vm278_vm0, %v1174_v19  ;;  %947 = vmatmul.msk.f32.gmra.mxu3 %vm278_vm0, %v1177_v20 }
  0x3b   : > { %940 = vmatmul.msk.f32.gmra.mxu2 %vm278_vm0, %v1180_v21 }
  0x42   : > { %926 = vmatmul.msk.f32.gmra.mxu0 %vm278_vm0, %v1194_v23  ;;  %948 = vmatmul.msk.f32.gmra.mxu3 %vm278_vm0, %v1197_v24 }
  0x43   : > { %941 = vmatmul.msk.f32.gmra.mxu2 %vm278_vm0, %v1200_v25 }
  0x4a   : > { %927 = vmatmul.msk.f32.gmra.mxu0 %vm278_vm0, %v1214_v27  ;;  %949 = vmatmul.msk.f32.gmra.mxu3 %vm278_vm0, %v1217_v28 }
  0x52   : > { %928 = vmatmul.msk.f32.gmra.mxu0 %vm278_vm0, %v1224_v29  ;;  %950 = vmatmul.msk.f32.gmra.mxu3 %vm278_vm0, %v1227_v30 }
  0x5a   : > { %929 = vmatmul.msk.f32.gmra.mxu0 %vm278_vm0, %v1234_v31  ;;  %951 = vmatmul.msk.f32.gmra.mxu3 %vm278_vm0, %v1237_v32 }
  0x62   : > { %930 = vmatmul.msk.f32.gmra.mxu0 %vm278_vm0, %v1244_v33 }
  0x8f   : > { %v1255_v34 = vpop.f32.mrf.mxu0 }
  0x90   : > { %488 = vst [vmem:[%s1253_s10] sm:$0xff] %v1255_v34 }
  0x93   : > { %v1293_v44 = vpop.f32.mrf.mxu1 }
  0x94   : > { %499 = vst [vmem:[%s1253_s10 + $0x58] sm:$0xff] %v1293_v44 }
  0x95   : > { %v1259_v35 = vpop.f32.mrf.mxu3 }
  0x96   : > { %510 = vst [vmem:[%s1253_s10 + $0xb0] sm:$0xff] %v1259_v35  ;;  %v1265_v37 = vpop.f32.mrf.mxu2 }
  0x97   : > { %v1263_v36 = vpop.f32.mrf.mxu0  ;;  %503 = vst [vmem:[%s1253_s10 + $0x78] sm:$0xff] %v1265_v37 }
  0x98   : > { %489 = vst [vmem:[%s1253_s10 + $0x8] sm:$0xff] %v1263_v36 }
  0x9b   : > { %v1309_v48 = vpop.f32.mrf.mxu1 }
  0x9c   : > { %500 = vst [vmem:[%s1253_s10 + $0x60] sm:$0xff] %v1309_v48 }
  0x9d   : > { %v1271_v38 = vpop.f32.mrf.mxu3 }
  0x9e   : > { %511 = vst [vmem:[%s1253_s10 + $0xb8] sm:$0xff] %v1271_v38  ;;  %v1277_v40 = vpop.f32.mrf.mxu2 }
  0x9f   : > { %v1275_v39 = vpop.f32.mrf.mxu0  ;;  %504 = vst [vmem:[%s1253_s10 + $0x80] sm:$0xff] %v1277_v40 }
  0xa0   : > { %490 = vst [vmem:[%s1253_s10 + $0x10] sm:$0xff] %v1275_v39 }
  0xa3   : > { %v1325_v52 = vpop.f32.mrf.mxu1 }
  0xa4   : > { %501 = vst [vmem:[%s1253_s10 + $0x68] sm:$0xff] %v1325_v52 }
  0xa5   : > { %v1283_v41 = vpop.f32.mrf.mxu3 }
  0xa6   : > { %512 = vst [vmem:[%s1253_s10 + $0xc0] sm:$0xff] %v1283_v41  ;;  %v1289_v43 = vpop.f32.mrf.mxu2 }
  0xa7   : > { %v1287_v42 = vpop.f32.mrf.mxu0  ;;  %505 = vst [vmem:[%s1253_s10 + $0x88] sm:$0xff] %v1289_v43 }
  0xa8   : > { %491 = vst [vmem:[%s1253_s10 + $0x18] sm:$0xff] %v1287_v42 }
  0xab   : > { %v1341_v56 = vpop.f32.mrf.mxu1 }
  0xac   : > { %502 = vst [vmem:[%s1253_s10 + $0x70] sm:$0xff] %v1341_v56 }
  0xad   : > { %v1299_v45 = vpop.f32.mrf.mxu3 }
  0xae   : > { %513 = vst [vmem:[%s1253_s10 + $0xc8] sm:$0xff] %v1299_v45  ;;  %v1305_v47 = vpop.f32.mrf.mxu2 }
  0xaf   : > { %v1303_v46 = vpop.f32.mrf.mxu0  ;;  %506 = vst [vmem:[%s1253_s10 + $0x90] sm:$0xff] %v1305_v47 }
  0xb0   : > { %492 = vst [vmem:[%s1253_s10 + $0x20] sm:$0xff] %v1303_v46 }
  0xb5   : > { %v1315_v49 = vpop.f32.mrf.mxu3 }
  0xb6   : > { %514 = vst [vmem:[%s1253_s10 + $0xd0] sm:$0xff] %v1315_v49  ;;  %v1321_v51 = vpop.f32.mrf.mxu2 }
  0xb7   : > { %v1319_v50 = vpop.f32.mrf.mxu0  ;;  %507 = vst [vmem:[%s1253_s10 + $0x98] sm:$0xff] %v1321_v51 }
  0xb8   : > { %493 = vst [vmem:[%s1253_s10 + $0x28] sm:$0xff] %v1319_v50 }
  0xbd   : > { %v1331_v53 = vpop.f32.mrf.mxu3 }
  0xbe   : > { %515 = vst [vmem:[%s1253_s10 + $0xd8] sm:$0xff] %v1331_v53  ;;  %v1337_v55 = vpop.f32.mrf.mxu2 }
  0xbf   : > { %v1335_v54 = vpop.f32.mrf.mxu0  ;;  %508 = vst [vmem:[%s1253_s10 + $0xa0] sm:$0xff] %v1337_v55 }
  0xc0   : > { %494 = vst [vmem:[%s1253_s10 + $0x30] sm:$0xff] %v1335_v54 }
  0xc5   : > { %v1347_v57 = vpop.f32.mrf.mxu3 }
  0xc6   : > { %516 = vst [vmem:[%s1253_s10 + $0xe0] sm:$0xff] %v1347_v57  ;;  %v1353_v59 = vpop.f32.mrf.mxu2 }
  0xc7   : > { %v1351_v58 = vpop.f32.mrf.mxu0  ;;  %509 = vst [vmem:[%s1253_s10 + $0xa8] sm:$0xff] %v1353_v59 }
  0xc8   : > { %495 = vst [vmem:[%s1253_s10 + $0x38] sm:$0xff] %v1351_v58 }
  0xcd   : > { %v1359_v60 = vpop.f32.mrf.mxu3 }
  0xce   : > { %1694 = vst [vmem:[#allocation13_spill] sm:$0xff] %v1359_v60 }
  0xcf   : > { %517 = vst [vmem:[%s1253_s10 + $0xe8] sm:$0xff] %v1359_v60  ;;  %v1363_v61 = vpop.f32.mrf.mxu0 }
  0xd0   : > { %496 = vst [vmem:[%s1253_s10 + $0x40] sm:$0xff] %v1363_v61 }
  0xd5   : > { %v1367_v62 = vpop.f32.mrf.mxu3 }
  0xd6   : > { %518 = vst [vmem:[%s1253_s10 + $0xf0] sm:$0xff] %v1367_v62 }
  0xd7   : > { %v1371_v63 = vpop.f32.mrf.mxu0 }
  0xd8   : > { %497 = vst [vmem:[%s1253_s10 + $0x48] sm:$0xff] %v1371_v63 }
  0xdc   : > { %523 = sbr.rel (%p952_p4) target bundleno = 231 (0xe7), region = 32 }
  0xdd   : > { %v1375_v0 = vpop.f32.mrf.mxu3 }
  0xde   : > { %1695 = vst [vmem:[#allocation14_spill] sm:$0xff] %v1375_v0 }
  0xdf   : > { %519 = vst [vmem:[%s1253_s10 + $0xf8] sm:$0xff] %v1375_v0  ;;  %v1379_v1 = vpop.f32.mrf.mxu0 }
  0xe0   : > { %498 = vst [vmem:[%s1253_s10 + $0x50] sm:$0xff] %v1379_v1 }
  0xe1   : > { %v1026_v60 = vmov 0.0   ;;  %vm526_vm1 = vcmask 122880  }
  0xe2   : > { %524 = vst [vmem:[%s1664_s3] sm:$0x1] %v1026_v60 }
  0xe3   : > { %525 = vst [vmem:[%s1665_s4] sm:$0x1] %v1026_v60 }
  0xe4   : > { %528 = vst.msk [vmem:[%s1667_s6] sm:$0xff] %vm278_vm0, %v1026_v60 }
  0xe5   : > { %529 = vst.msk [vmem:[%s1667_s6 + $0x8] sm:$0xff] %vm278_vm0, %v1026_v60 }
  0xe6   : > { %527 = vst.msk [vmem:[%s1666_s5] sm:$0x1] %vm526_vm1, %v1026_v60 }
  0xe7 PF: > { %v976_v0 = vpack.i.bf16 %v1089_v2, %v1110_v7  ;;  %781 = vmatpush.msrb.mxu1 %v1099_v4  ;;  %804 = vmatpush.msrb.mxu2 %v1237_v32  ;;  %v978_v60 = vpack.i.bf16 %v1104_v5, %v1125_v10  ;;  %vm713_vm2 = vcmask 122880  }
  0xe9   : > { %977 = vxpose.xlu0.b32.start [1/16] (narrow) %v976_v0, 16  ;;  %782 = vmatpush.msrb.mxu1 %v1203_v26  ;;  %v980_v0 = vpack.i.bf16 %v1119_v8, %v1140_v13 }
  0xea   : > { %805 = vmatpush.msrb.mxu2 %v1227_v30 }
  0xeb   : > { %783 = vmatpush.msrb.mxu1 %v1183_v22 }
  0xec   : > { %806 = vmatpush.msrb.mxu2 %v1217_v28 }
  0xed   : > { %784 = vmatpush.msrb.mxu1 %v1163_v18 }
  0xee   : > { %807 = vmatpush.msrb.mxu2 %v1197_v24 }
  0xef   : > { %785 = vmatpush.msrb.mxu1 %v1143_v14 }
  0xf0   : > { %808 = vmatpush.msrb.mxu2 %v1177_v20 }
  0xf1   : > { %979 = vxpose.xlu0.b32.cont [2/16] (narrow) %v978_v60, 16  ;;  %786 = vmatpush.msrb.mxu1 %v1244_v33  ;;  %v982_v60 = vpack.i.bf16 %v1134_v11, %v1160_v17 }
  0xf2   : > { %809 = vmatpush.msrb.mxu2 %v1157_v16 }
  0xf3   : > { %787 = vmatpush.msrb.mxu1 %v1234_v31 }
  0xf4   : > { %810 = vmatpush.msrb.mxu2 %v1137_v12 }
  0xf5   : > { %788 = vmatpush.msrb.mxu1 %v1224_v29 }
  0xf6   : > { %811 = vmatpush.msrb.mxu2 %v1122_v9 }
  0xf7   : > { %789 = vmatpush.msrb.mxu1 %v1214_v27 }
  0xf8   : > { %812 = vmatpush.msrb.mxu2 %v1107_v6 }
  0xf9   : > { %981 = vxpose.xlu0.b32.cont [3/16] (narrow) %v980_v0, 16  ;;  %790 = vmatpush.msrb.mxu1 %v1194_v23  ;;  %v984_v0 = vpack.i.bf16 %v1154_v15, %v1180_v21 }
  0xfa   : > { %813 = vmatpush.msrb.mxu2 %v1092_v3 }
  0xfb   : > { %791 = vmatpush.msrb.mxu1 %v1174_v19 }
  0xfc   : > { %814 = vmatpush.msrb.mxu2 %v1200_v25 }
  0xfd   : > { %792 = vmatpush.msrb.mxu1 %v1154_v15 }
  0xfe   : > { %815 = vmatpush.msrb.mxu2 %v1180_v21  ;;  %v992_v21 = vpack.i.bf16 %v1224_v29, %v1122_v9 }
  0xff   : > { %793 = vmatpush.msrb.mxu1 %v1134_v11 }
 0x100   : > { %816 = vmatpush.msrb.mxu2 %v1160_v17  ;;  %v986_v17 = vpack.i.bf16 %v1174_v19, %v1200_v25 }
 0x101   : > { %983 = vxpose.xlu0.b32.cont [4/16] (narrow) %v982_v60, 16  ;;  %794 = vmatpush.msrb.mxu1 %v1119_v8  ;;  %v988_v60 = vpack.i.bf16 %v1194_v23, %v1092_v3 }
 0x102   : > { %817 = vmatpush.msrb.mxu2 %v1140_v13  ;;  %v990_v13 = vpack.i.bf16 %v1214_v27, %v1107_v6 }
 0x103   : > { %795 = vmatpush.msrb.mxu1 %v1104_v5 }
 0x104   : > { %818 = vmatpush.msrb.mxu2 %v1125_v10  ;;  %v994_v10 = vpack.i.bf16 %v1234_v31, %v1137_v12 }
 0x105   : > { %796 = vmatpush.msrb.mxu1 %v1089_v2 }
 0x106   : > { %819 = vmatpush.msrb.mxu2 %v1110_v7 }
 0x109   : > { %985 = vxpose.xlu0.b32.cont [5/16] (narrow) %v984_v0, 16  ;;  %v996_v0 = vpack.i.bf16 %v1244_v33, %v1157_v16 }
 0x111   : > { %987 = vxpose.xlu0.b32.cont [6/16] (narrow) %v986_v17, 16  ;;  %v998_v17 = vpack.i.bf16 %v1143_v14, %v1177_v20 }
 0x119   : > { %989 = vxpose.xlu0.b32.cont [7/16] (narrow) %v988_v60, 16  ;;  %v531_v60 = vadd.f32 %v1263_v36, %v1255_v34 }
 0x121   : > { %991 = vxpose.xlu0.b32.cont [8/16] (narrow) %v990_v13, 16  ;;  %v532_v13 = vadd.f32 %v531_v60, %v1275_v39 }
 0x123   : > { %v533_v9 = vadd.f32 %v532_v13, %v1287_v42 }
 0x129   : > { %993 = vxpose.xlu0.b32.cont [9/16] (narrow) %v992_v21, 16  ;;  %v1000_v21 = vpack.i.bf16 %v1163_v18, %v1197_v24 }
 0x131   : > { %995 = vxpose.xlu0.b32.cont [10/16] (narrow) %v994_v10, 16  ;;  %v534_v10 = vadd.f32 %v533_v9, %v1303_v46  ;;  %v1004_v9 = vpack.i.bf16 %v1203_v26, %v1227_v30 }
 0x133   : > { %v535_v16 = vadd.f32 %v534_v10, %v1319_v50 }
 0x139   : > { %997 = vxpose.xlu0.b32.cont [11/16] (narrow) %v996_v0, 16  ;;  %v536_v0 = vadd.f32 %v535_v16, %v1335_v54 }
 0x13b   : > { %v537_v20 = vadd.f32 %v536_v0, %v1351_v58 }
 0x13d   : > { %v538_v12 = vadd.f32 %v537_v20, %v1363_v61  ;;  %v1006_v20 = vpack.i.bf16 %v1099_v4, %v1237_v32 }
 0x13f   : > { %v539_v60 = vadd.f32 %v538_v12, %v1371_v63 }
 0x141   : > { %999 = vxpose.xlu0.b32.cont [12/16] (narrow) %v998_v17, 16  ;;  %v1002_v17 = vpack.i.bf16 %v1183_v22, %v1217_v28  ;;  %v540_v24 = vadd.f32 %v539_v60, %v1379_v1 }
 0x143   : > { %v541_v13 = vadd.f32 %v540_v24, %v1293_v44 }
 0x149   : > { %1001 = vxpose.xlu0.b32.cont [13/16] (narrow) %v1000_v21, 16  ;;  %v542_v21 = vadd.f32 %v541_v13, %v1309_v48 }
 0x14b   : > { %v543_v16 = vadd.f32 %v542_v21, %v1325_v52 }
 0x14d   : > { %v544_v10 = vadd.f32 %v543_v16, %v1341_v56 }
 0x14f   : > { %v545_v0 = vadd.f32 %v544_v10, %v1265_v37 }
 0x151   : > { %1003 = vxpose.xlu0.b32.cont [14/16] (narrow) %v1002_v17, 16  ;;  %v546_v12 = vadd.f32 %v545_v0, %v1277_v40  ;;  %v572_v0 = vmul.f32 %v1263_v36, %v1263_v36  ;;  %v576_v36 = vmul.f32 %v1319_v50, %v1319_v50  ;;  %v580_v50 = vmul.f32 %v1371_v63, %v1371_v63 }
 0x153   : > { %v547_v17 = vadd.f32 %v546_v12, %v1289_v43 }
 0x155   : > { %v548_v60 = vadd.f32 %v547_v17, %v1305_v47  ;;  %v573_v17 = vmul.f32 %v1275_v39, %v1275_v39 }
 0x157   : > { %v549_v24 = vadd.f32 %v548_v60, %v1321_v51 }
 0x159   : > { %1005 = vxpose.xlu0.b32.cont [15/16] (narrow) %v1004_v9, 16  ;;  %v550_v9 = vadd.f32 %v549_v24, %v1337_v55  ;;  %v574_v24 = vmul.f32 %v1287_v42, %v1287_v42  ;;  %v1697_v42 = vld [vmem:[#allocation14_spill] sm:$0xff] }
 0x15b   : > { %v551_v13 = vadd.f32 %v550_v9, %v1353_v59 }
 0x15d   : > { %v552_v21 = vadd.f32 %v551_v13, %v1259_v35 }
 0x15f   : > { %v553_v16 = vadd.f32 %v552_v21, %v1271_v38  ;;  %v1696_v21 = vld [vmem:[#allocation13_spill] sm:$0xff] }
 0x161   : > { %1007 = vxpose.xlu0.b32.end [16/16] (narrow) %v1006_v20, 16  ;;  %v554_v32 = vadd.f32 %v553_v16, %v1283_v41  ;;  %v571_v20 = vmul.f32 %v1255_v34, %v1255_v34 }
 0x163   : > { %v555_v10 = vadd.f32 %v554_v32, %v1299_v45  ;;  %v603_v9 = vadd.f32 %v572_v0, %v571_v20  ;;  %v575_v32 = vmul.f32 %v1303_v46, %v1303_v46  ;;  %v578_v0 = vmul.f32 %v1351_v58, %v1351_v58 }
 0x164   : > { %v582_v58 = vmul.f32 %v1293_v44, %v1293_v44 }
 0x165   : > { %v556_v12 = vadd.f32 %v555_v10, %v1315_v49  ;;  %v604_v34 = vadd.f32 %v603_v9, %v573_v17  ;;  %v579_v17 = vmul.f32 %v1363_v61, %v1363_v61  ;;  %v530_v61 = vld [vmem:[%s1664_s3] sm:$0x1] }
 0x167   : > { %v557_v60 = vadd.f32 %v556_v12, %v1331_v53  ;;  %v605_v10 = vadd.f32 %v604_v34, %v574_v24  ;;  %v577_v12 = vmul.f32 %v1335_v54, %v1335_v54  ;;  %v581_v54 = vmul.f32 %v1379_v1, %v1379_v1 }
 0x169   : > { %v558_v13 = vadd.f32 %v557_v60, %v1347_v57  ;;  %v606_v30 = vadd.f32 %v605_v10, %v575_v32  ;;  %v583_v10 = vmul.f32 %v1309_v48, %v1309_v48 }
 0x16b   : > { %v559_v16 = vadd.f32 %v558_v13, %v1696_v21  ;;  %v607_v60 = vadd.f32 %v606_v30, %v576_v36 }
 0x16d   : > { %v560_v39 = vadd.f32 %v559_v16, %v1367_v62  ;;  %v608_v9 = vadd.f32 %v607_v60, %v577_v12  ;;  %v584_v12 = vmul.f32 %v1325_v52, %v1325_v52  ;;  %v586_v60 = vmul.f32 %v1265_v37, %v1265_v37 }
 0x16e   : > { %v587_v52 = vmul.f32 %v1277_v40, %v1277_v40  ;;  %v590_v37 = vmul.f32 %v1321_v51, %v1321_v51  ;;  %v591_v40 = vmul.f32 %v1337_v55, %v1337_v55  ;;  %v594_v51 = vmul.f32 %v1271_v38, %v1271_v38 }
 0x16f   : > { %v561_v20 = vadd.f32 %v560_v39, %v1697_v42  ;;  %v609_v24 = vadd.f32 %v608_v9, %v578_v0  ;;  %v585_v0 = vmul.f32 %v1341_v56, %v1341_v56  ;;  %v588_v56 = vmul.f32 %v1289_v43, %v1289_v43 }
 0x170   : > { %v592_v43 = vmul.f32 %v1353_v59, %v1353_v59  ;;  %v596_v55 = vmul.f32 %v1299_v45, %v1299_v45  ;;  %v643_v59 = vsel %vm278_vm0, %v1089_v2, 0.0  ;;  %v597_v38 = vmul.f32 %v1315_v49, %v1315_v49 }
 0x171   : > { %v562_v46 = vrot.slane %v561_v20, 4  ;;  %v610_v32 = vadd.f32 %v609_v24, %v579_v17  ;;  %v589_v24 = vmul.f32 %v1305_v47, %v1305_v47  ;;  %v593_v47 = vmul.f32 %v1259_v35, %v1259_v35 }
 0x172   : > { %v646_v35 = vsel %vm278_vm0, %v1119_v8, 0.0  ;;  %v598_v45 = vmul.f32 %v1331_v53, %v1331_v53  ;;  %v650_v2 = vsel %vm278_vm0, %v1154_v15, 0.0  ;;  %v599_v8 = vmul.f32 %v1347_v57, %v1347_v57 }
 0x173   : > { %v563_v13 = vadd.f32 %v562_v46, %v561_v20  ;;  %v611_v30 = vadd.f32 %v610_v32, %v580_v50  ;;  %v652_v49 = vsel %vm278_vm0, %v1174_v19, 0.0  ;;  %v654_v53 = vsel %vm278_vm0, %v1194_v23, 0.0 }
 0x174   : > { %v601_v15 = vmul.f32 %v1367_v62, %v1367_v62  ;;  %v656_v57 = vsel %vm278_vm0, %v1214_v27, 0.0  ;;  %v602_v19 = vmul.f32 %v1697_v42, %v1697_v42  ;;  %v660_v23 = vsel %vm278_vm0, %v1234_v31, 0.0 }
 0x175   : > { %v564_v34 = vrot.slane %v563_v13, 2  ;;  %v612_v63 = vadd.f32 %v611_v30, %v581_v54  ;;  %v662_v62 = vsel %vm278_vm0, %v1244_v33, 0.0  ;;  %v668_v31 = vsel %vm278_vm0, %v1183_v22, 0.0 }
 0x176   : > { %v670_v33 = vsel %vm278_vm0, %v1203_v26, 0.0 }
 0x177   : > { %v565_v16 = vadd.f32 %v564_v34, %v563_v13  ;;  %v613_v1 = vadd.f32 %v612_v63, %v582_v58  ;;  %v595_v63 = vmul.f32 %v1283_v41, %v1283_v41  ;;  %v648_v41 = vsel %vm278_vm0, %v1134_v11, 0.0 }
 0x178   : > { %v600_v11 = vmul.f32 %v1696_v21, %v1696_v21  ;;  %v658_v21 = vsel %vm278_vm0, %v1224_v29, 0.0  ;;  %v666_v29 = vsel %vm278_vm0, %v1163_v18, 0.0 }
 0x179   : > { %v566_v36 = vrot.slane %v565_v16, 1  ;;  %v614_v44 = vadd.f32 %v613_v1, %v583_v10  ;;  %v644_v1 = vsel %vm278_vm0, %v1104_v5, 0.0 }
 0x17b   : > { %v567_v39 = vadd.f32 %v566_v36, %v565_v16  ;;  %v615_v48 = vadd.f32 %v614_v44, %v584_v12 }
 0x17d   : > { %v568_v20 = vadd.f32 %v567_v39, %v530_v61  ;;  %v616_v13 = vadd.f32 %v615_v48, %v585_v0 }
 0x17f   : > { %569 = vst [vmem:[%s1664_s3] sm:$0x1] %v568_v20  ;;  %v617_v50 = vadd.f32 %v616_v13, %v586_v60  ;;  %v645_v20 = vadd.f32 %v644_v1, %v643_v59  ;;  %v1700_v1 = vld [vmem:[#allocation7_spill] sm:$0xff] }
 0x181   : > { %v618_v34 = vadd.f32 %v617_v50, %v587_v52  ;;  %v647_v44 = vadd.f32 %v646_v35, %v645_v20  ;;  %v680_v35 = vsel %vm278_vm0, %v1700_v1, 0.0 }
 0x183   : > { %v619_v32 = vadd.f32 %v618_v34, %v588_v56  ;;  %v649_v5 = vadd.f32 %v648_v41, %v647_v44  ;;  %v684_v41 = vsel %vm278_vm0, %v1200_v25, 0.0 }
 0x185   : > { %v620_v30 = vadd.f32 %v619_v32, %v589_v24  ;;  %v651_v48 = vadd.f32 %v650_v2, %v649_v5  ;;  %v664_v32 = vsel %vm278_vm0, %v1143_v14, 0.0  ;;  %v672_v14 = vsel %vm278_vm0, %v1099_v4, 0.0  ;;  %v1699_v4 = vld [vmem:[#allocation5_spill] sm:$0xff] }
 0x186   : > { %v688_v2 = vsel %vm278_vm0, %v1107_v6, 0.0 }
 0x187   : > { %v621_v36 = vadd.f32 %v620_v30, %v590_v37 }
 0x189   : > { %v622_v61 = vadd.f32 %v621_v36, %v591_v40 }
 0x18b   : > { %v623_v10 = vadd.f32 %v622_v61, %v592_v43  ;;  %v570_v61 = vld [vmem:[%s1665_s4] sm:$0x1] }
 0x18d   : > { %v1008_v46 = vpop.trf.xlu0  ;;  %v624_v39 = vadd.f32 %v623_v10, %v593_v47  ;;  %v674_v10 = vsel %vm278_vm0, %v1110_v7, 0.0 }
 0x18e   : > { %v1012_v17 = vunpack.i.h.bf16 %v1008_v46  ;;  %v1009_v9 = vunpack.i.l.bf16 %v1008_v46 }
 0x18f   : > { %v625_v12 = vadd.f32 %v624_v39, %v594_v51  ;;  %v1698_v39 = vld [vmem:[#allocation3_spill] sm:$0xff] }
 0x190   : > { %797 = vmatmul.f32.vlgmr.msrb.gmra.mxu1 %v1012_v17  ;;  %820 = vmatmul.f32.vlgmr.msrb.gmra.mxu2 %v1009_v9  ;;  %v653_v9 = vadd.f32 %v652_v49, %v651_v48  ;;  %v1703_v48 = vld [vmem:[#allocation4_spill] sm:$0xff] }
 0x191   : > { %v626_v0 = vadd.f32 %v625_v12, %v595_v63  ;;  %v678_v12 = vsel %vm278_vm0, %v1699_v4, 0.0 }
 0x192   : > { %v655_v13 = vadd.f32 %v654_v53, %v653_v9  ;;  %v1704_v53 = vld [vmem:[#allocation6_spill] sm:$0xff] }
 0x193   : > { %v627_v60 = vadd.f32 %v626_v0, %v596_v55  ;;  %v676_v55 = vsel %vm278_vm0, %v1698_v39, 0.0  ;;  %v694_v25 = vsel %vm278_vm0, %v1704_v53, 0.0 }
 0x194   : > { %v657_v50 = vadd.f32 %v656_v57, %v655_v13  ;;  %v1706_v57 = vld [vmem:[#allocation10_spill] sm:$0xff] }
 0x195   : > { %v1013_v54 = vpop.trf.xlu0  ;;  %v628_v46 = vadd.f32 %v627_v60, %v597_v38  ;;  %v1701_v38 = vld [vmem:[#allocation9_spill] sm:$0xff]  ;;  %v698_v6 = vsel %vm278_vm0, %v1706_v57, 0.0 }
 0x196   : > { %v1017_v16 = vunpack.i.h.bf16 %v1013_v54  ;;  %v1014_v58 = vunpack.i.l.bf16 %v1013_v54  ;;  %v659_v34 = vadd.f32 %v658_v21, %v657_v50  ;;  %v682_v7 = vsel %vm278_vm0, %v1701_v38, 0.0  ;;  %v1707_v21 = vld [vmem:[#allocation11_spill] sm:$0xff] }
 0x197   : > { %v629_v17 = vadd.f32 %v628_v46, %v598_v45  ;;  %v686_v45 = vsel %vm278_vm0, %v1092_v3, 0.0  ;;  %v702_v50 = vsel %vm278_vm0, %v1707_v21, 0.0 }
 0x198   : > { %800 = vmatmul.f32.gmra.mxu1 %v1017_v16  ;;  %823 = vmatmul.f32.gmra.mxu2 %v1014_v58  ;;  %v661_v54 = vadd.f32 %v660_v23, %v659_v34  ;;  %v1708_v23 = vld [vmem:[#allocation12_spill] sm:$0xff] }
 0x199   : > { %v630_v52 = vadd.f32 %v629_v17, %v599_v8  ;;  %v1702_v8 = vld [vmem:[#allocation2_spill] sm:$0xff]  ;;  %v704_v34 = vsel %vm278_vm0, %v1708_v23, 0.0 }
 0x19a   : > { %v663_v42 = vadd.f32 %v662_v62, %v661_v54  ;;  %v690_v46 = vsel %vm278_vm0, %v1702_v8, 0.0 }
 0x19b   : > { %v631_v56 = vadd.f32 %v630_v52, %v600_v11  ;;  %v692_v11 = vsel %vm278_vm0, %v1703_v48, 0.0 }
 0x19c   : > { %v665_v58 = vadd.f32 %v664_v32, %v663_v42 }
 0x19d   : > { %v632_v24 = vadd.f32 %v631_v56, %v601_v15  ;;  %v1705_v15 = vld [vmem:[#allocation8_spill] sm:$0xff] }
 0x19e   : > { %v667_v30 = vadd.f32 %v666_v29, %v665_v58  ;;  %v696_v3 = vsel %vm278_vm0, %v1705_v15, 0.0  ;;  %v642_v29 = vld [vmem:[%s1666_s5] sm:$0x1] }
 0x19f   : > { %v633_v37 = vadd.f32 %v632_v24, %v602_v19  ;;  %v700_v19 = vsel %vm278_vm0, %v1217_v28, 0.0 }
 0x1a0   : > { %v669_v36 = vadd.f32 %v668_v31, %v667_v30  ;;  %v715_v31 = vld [vmem:[%s1667_s6] sm:$0xff] }
 0x1a1   : > { %v634_v27 = vrot.slane %v633_v37, 4 }
 0x1a2   : > { %v671_v18 = vadd.f32 %v670_v33, %v669_v36 }
 0x1a3   : > { %v635_v16 = vadd.f32 %v634_v27, %v633_v37 }
 0x1a4   : > { %v673_v22 = vadd.f32 %v672_v14, %v671_v18 }
 0x1a5   : > { %v636_v40 = vrot.slane %v635_v16, 2 }
 0x1a6   : > { %v675_v26 = vadd.f32 %v674_v10, %v673_v22 }
 0x1a7   : > { %v637_v43 = vadd.f32 %v636_v40, %v635_v16 }
 0x1a8   : > { %v677_v59 = vadd.f32 %v676_v55, %v675_v26 }
 0x1a9   : > { %v638_v47 = vrot.slane %v637_v43, 1 }
 0x1aa   : > { %v679_v20 = vadd.f32 %v678_v12, %v677_v59 }
 0x1ab   : > { %v639_v51 = vadd.f32 %v638_v47, %v637_v43  ;;  %v716_v47 = vld [vmem:[%s1667_s6 + $0x8] sm:$0xff] }
 0x1ac   : > { %v681_v0 = vadd.f32 %v680_v35, %v679_v20 }
 0x1ad   : > { %v640_v63 = vadd.f32 %v639_v51, %v570_v61 }
 0x1ae   : > { %v683_v44 = vadd.f32 %v682_v7, %v681_v0 }
 0x1af   : > { %641 = vst [vmem:[%s1665_s4] sm:$0x1] %v640_v63 }
 0x1b0   : > { %v685_v60 = vadd.f32 %v684_v41, %v683_v44 }
 0x1b2   : > { %v687_v5 = vadd.f32 %v686_v45, %v685_v60 }
 0x1b4   : > { %v689_v49 = vadd.f32 %v688_v2, %v687_v5 }
 0x1b6   : > { %v691_v17 = vadd.f32 %v690_v46, %v689_v49 }
 0x1b8   : > { %v693_v9 = vadd.f32 %v692_v11, %v691_v17 }
 0x1ba   : > { %v695_v52 = vadd.f32 %v694_v25, %v693_v9 }
 0x1bc   : > { %v697_v13 = vadd.f32 %v696_v3, %v695_v52 }
 0x1be   : > { %v699_v56 = vadd.f32 %v698_v6, %v697_v13 }
 0x1c0   : > { %v701_v24 = vadd.f32 %v700_v19, %v699_v56 }
 0x1c2   : > { %v703_v37 = vadd.f32 %v702_v50, %v701_v24 }
 0x1c4   : > { %v705_v62 = vadd.f32 %v704_v34, %v703_v37 }
 0x1c6   : > { %v706_v54 = vrot.slane %v705_v62, 4 }
 0x1c8   : > { %v707_v27 = vadd.f32 %v706_v54, %v705_v62 }
 0x1ca   : > { %v708_v32 = vrot.slane %v707_v27, 2 }
 0x1cc   : > { %v709_v42 = vadd.f32 %v708_v32, %v707_v27 }
 0x1ce   : > { %v710_v16 = vrot.slane %v709_v42, 1 }
 0x1d0   : > { %v711_v28 = vadd.f32 %v710_v16, %v709_v42 }
 0x1d2   : > { %v712_v58 = vadd.f32 %v711_v28, %v642_v29 }
 0x1d4   : > { %714 = vst.msk [vmem:[%s1666_s5] sm:$0x1] %vm713_vm2, %v712_v58 }
 0x20d   : > { %v798_v40 = vpop.f32.mrf.mxu1 }
 0x213   : > { %v821_v30 = vpop.f32.mrf.mxu2 }
 0x214   : > { %v822_v43 = vadd.f32 %v821_v30, %v798_v40 }
 0x215   : > { %v801_v36 = vpop.f32.mrf.mxu1 }
 0x216   : > { %v827_v33 = vadd.f32 %v822_v43, %v715_v31 }
 0x218   : > { %829 = vst.msk [vmem:[%s1667_s6] sm:$0xff] %vm278_vm0, %v827_v33 }
 0x21b   : > { %v824_v14 = vpop.f32.mrf.mxu2 }
 0x21c   : > { %v825_v61 = vadd.f32 %v824_v14, %v801_v36 }
 0x21e   : > { %v828_v18 = vadd.f32 %v825_v61, %v716_v47 }
 0x220   : > { %830 = vst.msk [vmem:[%s1667_s6 + $0x8] sm:$0xff] %vm278_vm0, %v828_v18 }
 0x221 PF: > { %s17_s21 = sadd.s32 1, %s1024_s21  }
 0x222   : > { %p14_p5 = scmp.ge.s32.totalorder %s17_s21, 4  }
 0x224   :  { %16 = sbr.rel (!%p14_p5) target bundleno = 1 (0x1), region = 94 }

// kernel: bottleneck_forward.6
= control target key start
LH: loop header
LB: loop body
LE: loop exit
PB: predicated region body
PF: predicated region fallthrough
CT: control target
= control target key end

     0   :  { %s848_s21 = smov 0   ;;  %s1228_s0 = inlined_call_operand.vmem [shape: f32[512,128], index: 0, kind: input, shape index: {}]   ;;  %s1229_s1 = inlined_call_operand.vmem [shape: f32[1,128], index: 1, kind: input, shape index: {}]   ;;  %s1230_s2 = inlined_call_operand.vmem [shape: f32[1,128], index: 2, kind: input, shape index: {}]   ;;  %s1231_s3 = inlined_call_operand.vmem [shape: f32[128,128], index: 3, kind: input, shape index: {}]   ;;  %s1232_s4 = inlined_call_operand.vmem [shape: f32[512,128], index: 4, kind: output, shape index: {0}]   ;;  %s1233_s5 = inlined_call_operand.vmem [shape: f32[1,128], index: 5, kind: output, shape index: {1}]   ;;  %s1234_s6 = inlined_call_operand.vmem [shape: f32[1,128], index: 6, kind: output, shape index: {2}]  }
   0x1 LB: > { %s733_s22 = sadd.s32 4294967295, %s810_s21   ;;  %p737_p0 = scmp.ge.s32.totalorder %s810_s21, 1  ;;  %s810_s21 = sphi %s848_s21, %s17_s21  }
   0x2   : > { %p208_p1 = scmp.lt.s32.totalorder %s810_s21, 3 }
   0x4   : > { %p209_p2 = pnand %p737_p0, %p208_p1 }
   0x5   : > { %s738_s27 = sshll.u32 (!%p209_p2), %s733_s22, 5  ;;  %p742_p4 = scmp.ne.s32.totalorder (!%p209_p2), %s733_s22, 0 }
   0x6   : > { %212 = sbr.rel (%p209_p2) target bundleno = 315 (0x13b), region = 36  ;;  %p239_p3 = scmp.lt.s32.totalorder (!%p209_p2), %s738_s27, 63 }
   0xb   : > { %v401_v0 = vld [vmem:[%s1231_s3 + $0x78] sm:$0xff]  ;;  %v400_v1 = vld [vmem:[%s1231_s3 + $0x70] sm:$0xff]  ;;  %v399_v2 = vld [vmem:[%s1231_s3 + $0x68] sm:$0xff]  ;;  %s1236_s27 = smov (!%p239_p3, %s738_s27), 63 }
   0xc   : > { %746 = vmatpush.msra.mxu2 %v401_v0  ;;  %747 = vmatpush.msra.mxu3 %v401_v0  ;;  %v398_v3 = vld [vmem:[%s1231_s3 + $0x60] sm:$0xff]  ;;  %v397_v4 = vld [vmem:[%s1231_s3 + $0x58] sm:$0xff]  ;;  %v396_v5 = vld [vmem:[%s1231_s3 + $0x50] sm:$0xff]  ;;  %s739_s14 = sshll.u32 %s1236_s27, 3 }
   0xd   : > { %402 = vmatpush.msra.mxu0 %v401_v0  ;;  %745 = vmatpush.msra.mxu1 %v401_v0  ;;  %v395_v6 = vld [vmem:[%s1231_s3 + $0x48] sm:$0xff]  ;;  %v394_v7 = vld [vmem:[%s1231_s3 + $0x40] sm:$0xff]  ;;  %v393_v8 = vld [vmem:[%s1231_s3 + $0x38] sm:$0xff]  ;;  %s893_s23 = scalar_lea.vmem %s1228_s0, %s739_s14  ;;  %s1027_s24 = scalar_lea.vmem %s1232_s4, %s739_s14 }
   0xe   : > { %749 = vmatpush.msra.mxu2 %v400_v1  ;;  %750 = vmatpush.msra.mxu3 %v400_v1  ;;  %v392_v9 = vld [vmem:[%s1231_s3 + $0x30] sm:$0xff]  ;;  %v901_v10 = vld [vmem:[%s1229_s1] ss:$0 sm:$0xff]  ;;  %v391_v13 = vld [vmem:[%s1231_s3 + $0x28] sm:$0xff] }
   0xf   : > { %403 = vmatpush.msra.mxu0 %v400_v1  ;;  %748 = vmatpush.msra.mxu1 %v400_v1  ;;  %v266_v11 = vld [vmem:[%s893_s23 + $0x80] sm:$0xff]  ;;  %v389_v20 = vld [vmem:[%s1231_s3 + $0x18] sm:$0xff]  ;;  %v388_v23 = vld [vmem:[%s1231_s3 + $0x10] sm:$0xff] }
  0x10   : > { %752 = vmatpush.msra.mxu2 %v399_v2  ;;  %753 = vmatpush.msra.mxu3 %v399_v2  ;;  %v274_v12 = vld [vmem:[%s893_s23 + $0xc0] sm:$0xff]  ;;  %v302_v17 = vmul.f32 %v901_v10, %v266_v11  ;;  %v267_v26 = vld [vmem:[%s893_s23 + $0x88] sm:$0xff]  ;;  %v268_v44 = vld [vmem:[%s893_s23 + $0x90] sm:$0xff] }
  0x11   : > { %404 = vmatpush.msra.mxu0 %v399_v2  ;;  %751 = vmatpush.msra.mxu1 %v399_v2  ;;  %v250_v14 = vld [vmem:[%s893_s23] sm:$0xff]  ;;  %v310_v19 = vmul.f32 %v901_v10, %v274_v12  ;;  %v275_v27 = vld [vmem:[%s893_s23 + $0xc8] sm:$0xff]  ;;  %v303_v36 = vmul.f32 %v901_v10, %v267_v26  ;;  %v276_v45 = vld [vmem:[%s893_s23 + $0xd0] sm:$0xff]  ;;  %v304_v52 = vmul.f32 %v901_v10, %v268_v44 }
  0x12   : > { %755 = vmatpush.msra.mxu2 %v398_v3  ;;  %756 = vmatpush.msra.mxu3 %v398_v3  ;;  %v258_v15 = vld [vmem:[%s893_s23 + $0x40] sm:$0xff]  ;;  %v286_v21 = vmul.f32 %v901_v10, %v250_v14  ;;  %v387_v28 = vld [vmem:[%s1231_s3 + $0x8] sm:$0xff]  ;;  %v311_v37 = vmul.f32 %v901_v10, %v275_v27  ;;  %v252_v48 = vld [vmem:[%s893_s23 + $0x10] sm:$0xff]  ;;  %v312_v53 = vmul.f32 %v901_v10, %v276_v45 }
  0x13   : > { %405 = vmatpush.msra.mxu0 %v398_v3  ;;  %754 = vmatpush.msra.mxu1 %v398_v3  ;;  %v390_v16 = vld [vmem:[%s1231_s3 + $0x20] sm:$0xff]  ;;  %v294_v22 = vmul.f32 %v901_v10, %v258_v15  ;;  %v251_v31 = vld [vmem:[%s893_s23 + $0x8] sm:$0xff]  ;;  %v260_v49 = vld [vmem:[%s893_s23 + $0x50] sm:$0xff]  ;;  %v288_v56 = vmul.f32 %v901_v10, %v252_v48 }
  0x14   : > { %758 = vmatpush.msra.mxu2 %v397_v4  ;;  %759 = vmatpush.msra.mxu3 %v397_v4  ;;  %v917_v18 = vld [vmem:[%s1230_s2] ss:$0 sm:$0xff]  ;;  %v259_v32 = vld [vmem:[%s893_s23 + $0x48] sm:$0xff]  ;;  %v287_v40 = vmul.f32 %v901_v10, %v251_v31  ;;  %v296_v57 = vmul.f32 %v901_v10, %v260_v49  ;;  %v269_v60 = vld [vmem:[%s893_s23 + $0x98] sm:$0xff] }
  0x15   : > { %406 = vmatpush.msra.mxu0 %v397_v4  ;;  %757 = vmatpush.msra.mxu1 %v397_v4  ;;  %v338_v24 = vadd.f32 %v917_v18, %v302_v17  ;;  %v346_v25 = vadd.f32 %v917_v18, %v310_v19  ;;  %v322_v29 = vadd.f32 %v917_v18, %v286_v21  ;;  %v386_v33 = vld [vmem:[%s1231_s3] sm:$0xff]  ;;  %v277_v61 = vld [vmem:[%s893_s23 + $0xd8] sm:$0xff]  ;;  %v279_v31 = vld [vmem:[%s893_s23 + $0xe8] sm:$0xff] }
  0x16   : > { %761 = vmatpush.msra.mxu2 %v396_v5  ;;  %762 = vmatpush.msra.mxu3 %v396_v5  ;;  %v330_v30 = vadd.f32 %v917_v18, %v294_v22  ;;  %v295_v41 = vmul.f32 %v901_v10, %v259_v32  ;;  %v339_v42 = vadd.f32 %v917_v18, %v303_v36  ;;  %v253_v0 = vld [vmem:[%s893_s23 + $0x18] sm:$0xff]  ;;  %v278_v14 = vld [vmem:[%s893_s23 + $0xe0] sm:$0xff] }
  0x17   : > { %407 = vmatpush.msra.mxu0 %v396_v5  ;;  %760 = vmatpush.msra.mxu1 %v396_v5  ;;  %v370_v34 = vmax.f32 %v338_v24, 0.0  ;;  %v378_v35 = vmax.f32 %v346_v25, 0.0  ;;  %v354_v38 = vmax.f32 %v322_v29, 0.0  ;;  %v347_v43 = vadd.f32 %v917_v18, %v311_v37  ;;  %v261_v1 = vld [vmem:[%s893_s23 + $0x58] sm:$0xff]  ;;  %v254_v17 = vld [vmem:[%s893_s23 + $0x20] sm:$0xff] }
  0x18   : > { %764 = vmatpush.msra.mxu2 %v395_v6  ;;  %765 = vmatpush.msra.mxu3 %v395_v6  ;;  %v362_v39 = vmax.f32 %v330_v30, 0.0  ;;  %v323_v46 = vadd.f32 %v917_v18, %v287_v40  ;;  %v331_v47 = vadd.f32 %v917_v18, %v295_v41  ;;  %v371_v50 = vmax.f32 %v339_v42, 0.0  ;;  %v262_v19 = vld [vmem:[%s893_s23 + $0x60] sm:$0xff]  ;;  %v271_v30 = vld [vmem:[%s893_s23 + $0xa8] sm:$0xff] }
  0x19   : > { %408 = vmatpush.msra.mxu0 %v395_v6  ;;  %763 = vmatpush.msra.mxu1 %v395_v6  ;;  %v379_v51 = vmax.f32 %v347_v43, 0.0  ;;  %v340_v58 = vadd.f32 %v917_v18, %v304_v52  ;;  %v348_v59 = vadd.f32 %v917_v18, %v312_v53  ;;  %v324_v62 = vadd.f32 %v917_v18, %v288_v56 }
  0x1a   : > { %767 = vmatpush.msra.mxu2 %v394_v7  ;;  %768 = vmatpush.msra.mxu3 %v394_v7  ;;  %v355_v54 = vmax.f32 %v323_v46, 0.0  ;;  %v363_v55 = vmax.f32 %v331_v47, 0.0  ;;  %v332_v63 = vadd.f32 %v917_v18, %v296_v57  ;;  %v305_v4 = vmul.f32 %v901_v10, %v269_v60  ;;  %v272_v46 = vld [vmem:[%s893_s23 + $0xb0] sm:$0xff] }
  0x1b   : > { %409 = vmatpush.msra.mxu0 %v394_v7  ;;  %766 = vmatpush.msra.mxu1 %v394_v7  ;;  %v372_v2 = vmax.f32 %v340_v58, 0.0  ;;  %v380_v3 = vmax.f32 %v348_v59, 0.0  ;;  %v313_v5 = vmul.f32 %v901_v10, %v277_v61  ;;  %v356_v6 = vmax.f32 %v324_v62, 0.0  ;;  %v280_v47 = vld [vmem:[%s893_s23 + $0xf0] sm:$0xff]  ;;  %v273_v62 = vld [vmem:[%s893_s23 + $0xb8] sm:$0xff] }
  0x1c   : > { %770 = vmatpush.msra.mxu2 %v393_v8  ;;  %771 = vmatpush.msra.mxu3 %v393_v8  ;;  %v364_v7 = vmax.f32 %v332_v63, 0.0  ;;  %v341_v11 = vadd.f32 %v917_v18, %v305_v4  ;;  %v290_v26 = vmul.f32 %v901_v10, %v254_v17  ;;  %v298_v27 = vmul.f32 %v901_v10, %v262_v19  ;;  %v281_v63 = vld [vmem:[%s893_s23 + $0xf8] sm:$0xff] }
  0x1d   : > { %410 = vmatpush.msra.mxu0 %v393_v8  ;;  %769 = vmatpush.msra.mxu1 %v393_v8  ;;  %v289_v8 = vmul.f32 %v901_v10, %v253_v0  ;;  %v349_v12 = vadd.f32 %v917_v18, %v313_v5 }
  0x1e   : > { %773 = vmatpush.msra.mxu2 %v392_v9  ;;  %774 = vmatpush.msra.mxu3 %v392_v9  ;;  %v326_v32 = vadd.f32 %v917_v18, %v290_v26 }
  0x1f   : > { %411 = vmatpush.msra.mxu0 %v392_v9  ;;  %772 = vmatpush.msra.mxu1 %v392_v9  ;;  %v297_v9 = vmul.f32 %v901_v10, %v261_v1  ;;  %v325_v15 = vadd.f32 %v917_v18, %v289_v8  ;;  %v381_v21 = vmax.f32 %v349_v12, 0.0 }
  0x20   : > { %776 = vmatpush.msra.mxu2 %v391_v13  ;;  %777 = vmatpush.msra.mxu3 %v391_v13  ;;  %v358_v40 = vmax.f32 %v326_v32, 0.0 }
  0x21   : > { %412 = vmatpush.msra.mxu0 %v391_v13  ;;  %775 = vmatpush.msra.mxu1 %v391_v13  ;;  %v270_v13 = vld [vmem:[%s893_s23 + $0xa0] sm:$0xff]  ;;  %v357_v24 = vmax.f32 %v325_v15, 0.0 }
  0x22   : > { %779 = vmatpush.msra.mxu2 %v390_v16  ;;  %780 = vmatpush.msra.mxu3 %v390_v16  ;;  %v306_v22 = vmul.f32 %v901_v10, %v270_v13 }
  0x23   : > { %413 = vmatpush.msra.mxu0 %v390_v16  ;;  %778 = vmatpush.msra.mxu1 %v390_v16  ;;  %v333_v16 = vadd.f32 %v917_v18, %v297_v9 }
  0x24   : > { %782 = vmatpush.msra.mxu2 %v389_v20  ;;  %783 = vmatpush.msra.mxu3 %v389_v20 }
  0x25   : > { %414 = vmatpush.msra.mxu0 %v389_v20  ;;  %781 = vmatpush.msra.mxu1 %v389_v20  ;;  %v373_v20 = vmax.f32 %v341_v11, 0.0  ;;  %v365_v25 = vmax.f32 %v333_v16, 0.0 }
  0x26   : > { %785 = vmatpush.msra.mxu2 %v388_v23  ;;  %786 = vmatpush.msra.mxu3 %v388_v23 }
  0x27   : > { %415 = vmatpush.msra.mxu0 %v388_v23  ;;  %784 = vmatpush.msra.mxu1 %v388_v23  ;;  %v314_v23 = vmul.f32 %v901_v10, %v278_v14 }
  0x28   : > { %788 = vmatpush.msra.mxu2 %v387_v28  ;;  %789 = vmatpush.msra.mxu3 %v387_v28 }
  0x29   : > { %416 = vmatpush.msra.mxu0 %v387_v28  ;;  %787 = vmatpush.msra.mxu1 %v387_v28  ;;  %v342_v28 = vadd.f32 %v917_v18, %v306_v22  ;;  %v350_v29 = vadd.f32 %v917_v18, %v314_v23 }
  0x2a   : > { %791 = vmatpush.msra.mxu2 %v386_v33  ;;  %792 = vmatpush.msra.mxu3 %v386_v33 }
  0x2b   : > { %466 = vmatmul.f32.vlgmr.msra.gmra.mxu2 %v370_v34  ;;  %490 = vmatmul.f32.vlgmr.msra.gmra.mxu3 %v378_v35  ;;  %v255_v34 = vld [vmem:[%s893_s23 + $0x28] sm:$0xff]  ;;  %v374_v36 = vmax.f32 %v342_v28, 0.0  ;;  %v382_v37 = vmax.f32 %v350_v29, 0.0 }
  0x2c   : > { %417 = vmatpush.msra.mxu0 %v386_v33  ;;  %790 = vmatpush.msra.mxu1 %v386_v33  ;;  %v334_v33 = vadd.f32 %v917_v18, %v298_v27  ;;  %v263_v35 = vld [vmem:[%s893_s23 + $0x68] sm:$0xff]  ;;  %v291_v42 = vmul.f32 %v901_v10, %v255_v34 }
  0x2d   : > { %418 = vmatmul.f32.vlgmr.msra.gmra.mxu0 %v354_v38  ;;  %442 = vmatmul.f32.vlgmr.msra.gmra.mxu1 %v362_v39  ;;  %v307_v38 = vmul.f32 %v901_v10, %v271_v30  ;;  %v315_v39 = vmul.f32 %v901_v10, %v279_v31  ;;  %v299_v43 = vmul.f32 %v901_v10, %v263_v35 }
  0x2e   : > { %v366_v41 = vmax.f32 %v334_v33, 0.0  ;;  %v327_v48 = vadd.f32 %v917_v18, %v291_v42 }
  0x2f   : > { %v343_v44 = vadd.f32 %v917_v18, %v307_v38  ;;  %v351_v45 = vadd.f32 %v917_v18, %v315_v39  ;;  %v335_v49 = vadd.f32 %v917_v18, %v299_v43 }
  0x30   : > { %v359_v56 = vmax.f32 %v327_v48, 0.0 }
  0x31   : > { %v375_v52 = vmax.f32 %v343_v44, 0.0  ;;  %v383_v53 = vmax.f32 %v351_v45, 0.0  ;;  %v367_v57 = vmax.f32 %v335_v49, 0.0 }
  0x33   : > { %469 = vmatmul.f32.gmra.mxu2 %v371_v50  ;;  %493 = vmatmul.f32.gmra.mxu3 %v379_v51  ;;  %v256_v50 = vld [vmem:[%s893_s23 + $0x30] sm:$0xff] }
  0x34   : > { %v264_v51 = vld [vmem:[%s893_s23 + $0x70] sm:$0xff]  ;;  %v292_v58 = vmul.f32 %v901_v10, %v256_v50 }
  0x35   : > { %421 = vmatmul.f32.gmra.mxu0 %v355_v54  ;;  %445 = vmatmul.f32.gmra.mxu1 %v363_v55  ;;  %v308_v54 = vmul.f32 %v901_v10, %v272_v46  ;;  %v316_v55 = vmul.f32 %v901_v10, %v280_v47  ;;  %v300_v59 = vmul.f32 %v901_v10, %v264_v51 }
  0x36   : > { %v328_v0 = vadd.f32 %v917_v18, %v292_v58 }
  0x37   : > { %v344_v60 = vadd.f32 %v917_v18, %v308_v54  ;;  %v352_v61 = vadd.f32 %v917_v18, %v316_v55  ;;  %v336_v1 = vadd.f32 %v917_v18, %v300_v59 }
  0x38   : > { %v360_v8 = vmax.f32 %v328_v0, 0.0 }
  0x39   : > { %v376_v4 = vmax.f32 %v344_v60, 0.0  ;;  %v384_v5 = vmax.f32 %v352_v61, 0.0  ;;  %v368_v9 = vmax.f32 %v336_v1, 0.0 }
  0x3b   : > { %472 = vmatmul.f32.gmra.mxu2 %v372_v2  ;;  %496 = vmatmul.f32.gmra.mxu3 %v380_v3  ;;  %v257_v2 = vld [vmem:[%s893_s23 + $0x38] sm:$0xff] }
  0x3c   : > { %v265_v3 = vld [vmem:[%s893_s23 + $0x78] sm:$0xff]  ;;  %v293_v11 = vmul.f32 %v901_v10, %v257_v2 }
  0x3d   : > { %424 = vmatmul.f32.gmra.mxu0 %v356_v6  ;;  %448 = vmatmul.f32.gmra.mxu1 %v364_v7  ;;  %v309_v6 = vmul.f32 %v901_v10, %v273_v62  ;;  %v317_v7 = vmul.f32 %v901_v10, %v281_v63  ;;  %v301_v12 = vmul.f32 %v901_v10, %v265_v3 }
  0x3e   : > { %v329_v15 = vadd.f32 %v917_v18, %v293_v11 }
  0x3f   : > { %v345_v13 = vadd.f32 %v917_v18, %v309_v6  ;;  %v353_v14 = vadd.f32 %v917_v18, %v317_v7  ;;  %v337_v16 = vadd.f32 %v917_v18, %v301_v12 }
  0x41   : > { %v377_v17 = vmax.f32 %v345_v13, 0.0  ;;  %v385_v19 = vmax.f32 %v353_v14, 0.0 }
  0x43   : > { %475 = vmatmul.f32.gmra.mxu2 %v373_v20  ;;  %499 = vmatmul.f32.gmra.mxu3 %v381_v21  ;;  %v361_v20 = vmax.f32 %v329_v15, 0.0  ;;  %v369_v21 = vmax.f32 %v337_v16, 0.0 }
  0x45   : > { %427 = vmatmul.f32.gmra.mxu0 %v357_v24  ;;  %451 = vmatmul.f32.gmra.mxu1 %v365_v25 }
  0x4b   : > { %478 = vmatmul.f32.gmra.mxu2 %v374_v36  ;;  %502 = vmatmul.f32.gmra.mxu3 %v382_v37 }
  0x4d   : > { %430 = vmatmul.f32.gmra.mxu0 %v358_v40  ;;  %454 = vmatmul.f32.gmra.mxu1 %v366_v41 }
  0x53   : > { %481 = vmatmul.f32.gmra.mxu2 %v375_v52  ;;  %505 = vmatmul.f32.gmra.mxu3 %v383_v53 }
  0x55   : > { %433 = vmatmul.f32.gmra.mxu0 %v359_v56  ;;  %457 = vmatmul.f32.gmra.mxu1 %v367_v57 }
  0x5b   : > { %484 = vmatmul.f32.gmra.mxu2 %v376_v4  ;;  %508 = vmatmul.f32.gmra.mxu3 %v384_v5 }
  0x5d   : > { %436 = vmatmul.f32.gmra.mxu0 %v360_v8  ;;  %460 = vmatmul.f32.gmra.mxu1 %v368_v9 }
  0x63   : > { %487 = vmatmul.f32.gmra.mxu2 %v377_v17  ;;  %511 = vmatmul.f32.gmra.mxu3 %v385_v19 }
  0x65   : > { %439 = vmatmul.f32.gmra.mxu0 %v361_v20  ;;  %463 = vmatmul.f32.gmra.mxu1 %v369_v21 }
  0xaa   : > { %v1029_v10 = vpop.f32.mrf.mxu0  ;;  %v1031_v18 = vpop.f32.mrf.mxu1 }
  0xab   : > { %515 = vst [vmem:[%s1027_s24] sm:$0xff] %v1029_v10 }
  0xac   : > { %523 = vst [vmem:[%s1027_s24 + $0x40] sm:$0xff] %v1031_v18 }
  0xae   : > { %v1037_v22 = vpop.f32.mrf.mxu2  ;;  %v1039_v23 = vpop.f32.mrf.mxu3 }
  0xaf   : > { %531 = vst [vmem:[%s1027_s24 + $0x80] sm:$0xff] %v1037_v22 }
  0xb0   : > { %539 = vst [vmem:[%s1027_s24 + $0xc0] sm:$0xff] %v1039_v23 }
  0xb2   : > { %v1045_v24 = vpop.f32.mrf.mxu0  ;;  %v1047_v25 = vpop.f32.mrf.mxu1 }
  0xb3   : > { %516 = vst [vmem:[%s1027_s24 + $0x8] sm:$0xff] %v1045_v24 }
  0xb4   : > { %524 = vst [vmem:[%s1027_s24 + $0x48] sm:$0xff] %v1047_v25 }
  0xb6   : > { %v1053_v26 = vpop.f32.mrf.mxu2  ;;  %v1055_v27 = vpop.f32.mrf.mxu3 }
  0xb7   : > { %532 = vst [vmem:[%s1027_s24 + $0x88] sm:$0xff] %v1053_v26 }
  0xb8   : > { %540 = vst [vmem:[%s1027_s24 + $0xc8] sm:$0xff] %v1055_v27 }
  0xba   : > { %v425_v28 = vpop.f32.mrf.mxu0  ;;  %v1061_v29 = vpop.f32.mrf.mxu1 }
  0xbb   : > { %517 = vst [vmem:[%s1027_s24 + $0x10] sm:$0xff] %v425_v28 }
  0xbc   : > { %525 = vst [vmem:[%s1027_s24 + $0x50] sm:$0xff] %v1061_v29 }
  0xbe   : > { %v1066_v30 = vpop.f32.mrf.mxu2  ;;  %v1068_v31 = vpop.f32.mrf.mxu3 }
  0xbf   : > { %533 = vst [vmem:[%s1027_s24 + $0x90] sm:$0xff] %v1066_v30 }
  0xc0   : > { %541 = vst [vmem:[%s1027_s24 + $0xd0] sm:$0xff] %v1068_v31 }
  0xc2   : > { %v428_v32 = vpop.f32.mrf.mxu0  ;;  %v1074_v33 = vpop.f32.mrf.mxu1 }
  0xc3   : > { %518 = vst [vmem:[%s1027_s24 + $0x18] sm:$0xff] %v428_v32 }
  0xc4   : > { %526 = vst [vmem:[%s1027_s24 + $0x58] sm:$0xff] %v1074_v33 }
  0xc6   : > { %v1079_v34 = vpop.f32.mrf.mxu2  ;;  %v1081_v35 = vpop.f32.mrf.mxu3 }
  0xc7   : > { %534 = vst [vmem:[%s1027_s24 + $0x98] sm:$0xff] %v1079_v34 }
  0xc8   : > { %542 = vst [vmem:[%s1027_s24 + $0xd8] sm:$0xff] %v1081_v35 }
  0xca   : > { %v431_v36 = vpop.f32.mrf.mxu0  ;;  %v1087_v37 = vpop.f32.mrf.mxu1 }
  0xcb   : > { %519 = vst [vmem:[%s1027_s24 + $0x20] sm:$0xff] %v431_v36 }
  0xcc   : > { %527 = vst [vmem:[%s1027_s24 + $0x60] sm:$0xff] %v1087_v37 }
  0xce   : > { %v1092_v38 = vpop.f32.mrf.mxu2  ;;  %v1094_v39 = vpop.f32.mrf.mxu3 }
  0xcf   : > { %535 = vst [vmem:[%s1027_s24 + $0xa0] sm:$0xff] %v1092_v38 }
  0xd0   : > { %543 = vst [vmem:[%s1027_s24 + $0xe0] sm:$0xff] %v1094_v39 }
  0xd2   : > { %v434_v40 = vpop.f32.mrf.mxu0  ;;  %v1100_v41 = vpop.f32.mrf.mxu1 }
  0xd3   : > { %520 = vst [vmem:[%s1027_s24 + $0x28] sm:$0xff] %v434_v40 }
  0xd4   : > { %528 = vst [vmem:[%s1027_s24 + $0x68] sm:$0xff] %v1100_v41 }
  0xd6   : > { %v1105_v42 = vpop.f32.mrf.mxu2  ;;  %v1107_v43 = vpop.f32.mrf.mxu3 }
  0xd7   : > { %536 = vst [vmem:[%s1027_s24 + $0xa8] sm:$0xff] %v1105_v42 }
  0xd8   : > { %544 = vst [vmem:[%s1027_s24 + $0xe8] sm:$0xff] %v1107_v43 }
  0xda   : > { %v437_v44 = vpop.f32.mrf.mxu0  ;;  %v461_v45 = vpop.f32.mrf.mxu1 }
  0xdb   : > { %521 = vst [vmem:[%s1027_s24 + $0x30] sm:$0xff] %v437_v44 }
  0xdc   : > { %529 = vst [vmem:[%s1027_s24 + $0x70] sm:$0xff] %v461_v45 }
  0xde   : > { %v1115_v46 = vpop.f32.mrf.mxu2  ;;  %v1117_v47 = vpop.f32.mrf.mxu3 }
  0xdf   : > { %537 = vst [vmem:[%s1027_s24 + $0xb0] sm:$0xff] %v1115_v46 }
  0xe0   : > { %545 = vst [vmem:[%s1027_s24 + $0xf0] sm:$0xff] %v1117_v47 }
  0xe2   : > { %v440_v48 = vpop.f32.mrf.mxu0  ;;  %v464_v49 = vpop.f32.mrf.mxu1 }
  0xe3   : > { %522 = vst [vmem:[%s1027_s24 + $0x38] sm:$0xff] %v440_v48 }
  0xe4   : > { %530 = vst [vmem:[%s1027_s24 + $0x78] sm:$0xff] %v464_v49  ;;  %550 = sbr.rel (%p742_p4) target bundleno = 236 (0xec), region = 40 }
  0xe6   : > { %v1125_v50 = vpop.f32.mrf.mxu2  ;;  %v1127_v51 = vpop.f32.mrf.mxu3 }
  0xe7   : > { %538 = vst [vmem:[%s1027_s24 + $0xb8] sm:$0xff] %v1125_v50 }
  0xe8   : > { %546 = vst [vmem:[%s1027_s24 + $0xf8] sm:$0xff] %v1127_v51 }
  0xe9   : > { %v812_v52 = vmov 0.0  }
  0xea   : > { %551 = vst [vmem:[%s1233_s5] sm:$0x1] %v812_v52 }
  0xeb   : > { %552 = vst [vmem:[%s1234_s6] sm:$0x1] %v812_v52 }
  0xec PF: > { %v554_v53 = vadd.f32 %v1045_v24, %v1029_v10  ;;  %v594_v54 = vmul.f32 %v1029_v10, %v1029_v10  ;;  %v595_v55 = vmul.f32 %v1045_v24, %v1045_v24  ;;  %v596_v57 = vmul.f32 %v425_v28, %v425_v28 }
  0xed   : > { %v597_v59 = vmul.f32 %v428_v32, %v428_v32  ;;  %v598_v62 = vmul.f32 %v431_v36, %v431_v36  ;;  %v599_v1 = vmul.f32 %v434_v40, %v434_v40  ;;  %v600_v4 = vmul.f32 %v437_v44, %v437_v44 }
  0xee   : > { %v555_v56 = vadd.f32 %v554_v53, %v425_v28  ;;  %v626_v60 = vadd.f32 %v595_v55, %v594_v54  ;;  %v601_v7 = vmul.f32 %v440_v48, %v440_v48  ;;  %v602_v11 = vmul.f32 %v1031_v18, %v1031_v18 }
  0xef   : > { %v603_v14 = vmul.f32 %v1047_v25, %v1047_v25  ;;  %v604_v17 = vmul.f32 %v1061_v29, %v1061_v29  ;;  %v605_v21 = vmul.f32 %v1074_v33, %v1074_v33  ;;  %v606_v24 = vmul.f32 %v1087_v37, %v1087_v37 }
  0xf0   : > { %v556_v58 = vadd.f32 %v555_v56, %v428_v32  ;;  %v627_v63 = vadd.f32 %v626_v60, %v596_v57  ;;  %v607_v32 = vmul.f32 %v1100_v41, %v1100_v41  ;;  %v609_v52 = vmul.f32 %v464_v49, %v464_v49 }
  0xf1   : > { %v610_v54 = vmul.f32 %v1037_v22, %v1037_v22  ;;  %v611_v56 = vmul.f32 %v1053_v26, %v1053_v26 }
  0xf2   : > { %v557_v61 = vadd.f32 %v556_v58, %v431_v36  ;;  %v628_v2 = vadd.f32 %v627_v63, %v597_v59  ;;  %v613_v59 = vmul.f32 %v1079_v34, %v1079_v34  ;;  %v615_v63 = vmul.f32 %v1105_v42, %v1105_v42 }
  0xf4   : > { %v558_v0 = vadd.f32 %v557_v61, %v434_v40  ;;  %v629_v5 = vadd.f32 %v628_v2, %v598_v62  ;;  %v608_v40 = vmul.f32 %v461_v45, %v461_v45  ;;  %v614_v61 = vmul.f32 %v1092_v38, %v1092_v38 }
  0xf6   : > { %v559_v3 = vadd.f32 %v558_v0, %v437_v44  ;;  %v630_v8 = vadd.f32 %v629_v5, %v599_v1  ;;  %v616_v1 = vmul.f32 %v1115_v46, %v1115_v46  ;;  %v618_v5 = vmul.f32 %v1039_v23, %v1039_v23 }
  0xf8   : > { %v560_v6 = vadd.f32 %v559_v3, %v440_v48  ;;  %v631_v12 = vadd.f32 %v630_v8, %v600_v4  ;;  %v617_v3 = vmul.f32 %v1125_v50, %v1125_v50 }
  0xfa   : > { %v561_v9 = vadd.f32 %v560_v6, %v1031_v18  ;;  %v632_v15 = vadd.f32 %v631_v12, %v601_v7  ;;  %v619_v7 = vmul.f32 %v1055_v27, %v1055_v27  ;;  %v621_v12 = vmul.f32 %v1081_v35, %v1081_v35 }
  0xfc   : > { %v562_v13 = vadd.f32 %v561_v9, %v1047_v25  ;;  %v633_v19 = vadd.f32 %v632_v15, %v602_v11  ;;  %v620_v9 = vmul.f32 %v1068_v31, %v1068_v31 }
  0xfe   : > { %v563_v16 = vadd.f32 %v562_v13, %v1061_v29  ;;  %v634_v10 = vadd.f32 %v633_v19, %v603_v14  ;;  %v622_v14 = vmul.f32 %v1094_v39, %v1094_v39  ;;  %v624_v19 = vmul.f32 %v1117_v47, %v1117_v47 }
 0x100   : > { %v564_v20 = vadd.f32 %v563_v16, %v1074_v33  ;;  %v635_v28 = vadd.f32 %v634_v10, %v604_v17  ;;  %v623_v16 = vmul.f32 %v1107_v43, %v1107_v43 }
 0x102   : > { %v565_v18 = vadd.f32 %v564_v20, %v1087_v37  ;;  %v636_v36 = vadd.f32 %v635_v28, %v605_v21  ;;  %v625_v21 = vmul.f32 %v1127_v51, %v1127_v51 }
 0x104   : > { %v566_v25 = vadd.f32 %v565_v18, %v1100_v41  ;;  %v637_v44 = vadd.f32 %v636_v36, %v606_v24 }
 0x106   : > { %v567_v29 = vadd.f32 %v566_v25, %v461_v45  ;;  %v638_v53 = vadd.f32 %v637_v44, %v607_v32  ;;  %v612_v45 = vmul.f32 %v1066_v30, %v1066_v30 }
 0x108   : > { %v568_v48 = vadd.f32 %v567_v29, %v464_v49  ;;  %v639_v55 = vadd.f32 %v638_v53, %v608_v40 }
 0x10a   : > { %v569_v33 = vadd.f32 %v568_v48, %v1037_v22  ;;  %v640_v57 = vadd.f32 %v639_v55, %v609_v52 }
 0x10c   : > { %v570_v37 = vadd.f32 %v569_v33, %v1053_v26  ;;  %v641_v58 = vadd.f32 %v640_v57, %v610_v54 }
 0x10e   : > { %v571_v41 = vadd.f32 %v570_v37, %v1066_v30  ;;  %v642_v60 = vadd.f32 %v641_v58, %v611_v56 }
 0x110   : > { %v572_v49 = vadd.f32 %v571_v41, %v1079_v34  ;;  %v643_v62 = vadd.f32 %v642_v60, %v612_v45 }
 0x112   : > { %v573_v22 = vadd.f32 %v572_v49, %v1092_v38  ;;  %v644_v0 = vadd.f32 %v643_v62, %v613_v59 }
 0x114   : > { %v574_v26 = vadd.f32 %v573_v22, %v1105_v42  ;;  %v645_v2 = vadd.f32 %v644_v0, %v614_v61 }
 0x116   : > { %v575_v30 = vadd.f32 %v574_v26, %v1115_v46  ;;  %v646_v4 = vadd.f32 %v645_v2, %v615_v63 }
 0x118   : > { %v576_v34 = vadd.f32 %v575_v30, %v1125_v50  ;;  %v647_v6 = vadd.f32 %v646_v4, %v616_v1 }
 0x11a   : > { %v577_v38 = vadd.f32 %v576_v34, %v1039_v23  ;;  %v648_v8 = vadd.f32 %v647_v6, %v617_v3 }
 0x11c   : > { %v578_v42 = vadd.f32 %v577_v38, %v1055_v27  ;;  %v649_v11 = vadd.f32 %v648_v8, %v618_v5 }
 0x11e   : > { %v579_v46 = vadd.f32 %v578_v42, %v1068_v31  ;;  %v650_v13 = vadd.f32 %v649_v11, %v619_v7 }
 0x120   : > { %v580_v50 = vadd.f32 %v579_v46, %v1081_v35  ;;  %v651_v15 = vadd.f32 %v650_v13, %v620_v9 }
 0x122   : > { %v581_v23 = vadd.f32 %v580_v50, %v1094_v39  ;;  %v652_v17 = vadd.f32 %v651_v15, %v621_v12 }
 0x124   : > { %v582_v27 = vadd.f32 %v581_v23, %v1107_v43  ;;  %v653_v20 = vadd.f32 %v652_v17, %v622_v14 }
 0x126   : > { %v583_v31 = vadd.f32 %v582_v27, %v1117_v47  ;;  %v654_v10 = vadd.f32 %v653_v20, %v623_v16  ;;  %v553_v47 = vld [vmem:[%s1233_s5] sm:$0x1] }
 0x128   : > { %v584_v35 = vadd.f32 %v583_v31, %v1127_v51  ;;  %v655_v18 = vadd.f32 %v654_v10, %v624_v19  ;;  %v593_v51 = vld [vmem:[%s1234_s6] sm:$0x1] }
 0x12a   : > { %v585_v39 = vrot.slane %v584_v35, 4  ;;  %v656_v28 = vadd.f32 %v655_v18, %v625_v21 }
 0x12c   : > { %v586_v24 = vadd.f32 %v585_v39, %v584_v35  ;;  %v657_v32 = vrot.slane %v656_v28, 4 }
 0x12e   : > { %v587_v25 = vrot.slane %v586_v24, 2  ;;  %v658_v36 = vadd.f32 %v657_v32, %v656_v28 }
 0x130   : > { %v588_v43 = vadd.f32 %v587_v25, %v586_v24  ;;  %v659_v40 = vrot.slane %v658_v36, 2 }
 0x132   : > { %v589_v29 = vrot.slane %v588_v43, 1  ;;  %v660_v48 = vadd.f32 %v659_v40, %v658_v36 }
 0x134   : > { %v590_v44 = vadd.f32 %v589_v29, %v588_v43  ;;  %v661_v53 = vrot.slane %v660_v48, 1 }
 0x136   : > { %v591_v52 = vadd.f32 %v590_v44, %v553_v47  ;;  %v662_v33 = vadd.f32 %v661_v53, %v660_v48 }
 0x138   : > { %592 = vst [vmem:[%s1233_s5] sm:$0x1] %v591_v52  ;;  %v663_v54 = vadd.f32 %v662_v33, %v593_v51 }
 0x13a   : > { %664 = vst [vmem:[%s1234_s6] sm:$0x1] %v663_v54 }
 0x13b PF: > { %s17_s21 = sadd.s32 1, %s810_s21  }
 0x13c   : > { %p14_p5 = scmp.ge.s32.totalorder %s17_s21, 4  }
 0x13e   :  { %16 = sbr.rel (!%p14_p5) target bundleno = 1 (0x1), region = 86 }

// kernel: bottleneck_forward.7
= control target key start
LH: loop header
LB: loop body
LE: loop exit
PB: predicated region body
PF: predicated region fallthrough
CT: control target
= control target key end

     0   :  { %s999_s24 = smov 0   ;;  %s1312_s0 = inlined_call_operand.vmem [shape: f32[512,16], index: 0, kind: input, shape index: {}]   ;;  %s1313_s1 = inlined_call_operand.vmem [shape: f32[512,128], index: 1, kind: input, shape index: {}]   ;;  %s1314_s2 = inlined_call_operand.vmem [shape: f32[16,128], index: 2, kind: input, shape index: {}]   ;;  %s1315_s3 = inlined_call_operand.vmem [shape: f32[1,128], index: 3, kind: input, shape index: {}]   ;;  %s1316_s4 = inlined_call_operand.vmem [shape: f32[1,128], index: 4, kind: input, shape index: {}]   ;;  %s1317_s5 = inlined_call_operand.vmem [shape: f32[1,128], index: 5, kind: input, shape index: {}]   ;;  %s1318_s6 = inlined_call_operand.vmem [shape: f32[1,128], index: 6, kind: input, shape index: {}]   ;;  %s1319_s7 = inlined_call_operand.vmem [shape: f32[512,128], index: 7, kind: output, shape index: {}]  }
   0x1 LB: > { %s888_s25 = sadd.s32 4294967295, %s957_s24   ;;  %p892_p0 = scmp.ge.s32.totalorder %s957_s24, 1  ;;  %s957_s24 = sphi %s999_s24, %s17_s24  }
   0x2   : > { %p249_p1 = scmp.lt.s32.totalorder %s957_s24, 3 }
   0x4   : > { %p250_p2 = pnand %p892_p0, %p249_p1 }
   0x5   : > { %s893_s30 = sshll.u32 (!%p250_p2), %s888_s25, 5 }
   0x6   : > { %253 = sbr.rel (%p250_p2) target bundleno = 214 (0xd6), region = 48  ;;  %p287_p3 = scmp.lt.s32.totalorder (!%p250_p2), %s893_s30, 63 }
   0xb   : > { %v337_v0 = vld [vmem:[%s1314_s2 + $0x8] sm:$0xff]  ;;  %v336_v1 = vld [vmem:[%s1314_s2] sm:$0xff]  ;;  %s1321_s30 = smov (!%p287_p3, %s893_s30), 63  ;;  %vm338_vm0 = vcmask 130048  }
   0xc   : > { %934 = vmatpush.msra.mxu2 %v337_v0  ;;  %935 = vmatpush.msra.mxu3 %v337_v0  ;;  %s1013_s8 = sshll.u32 %s1321_s30, 3  ;;  %v1094_v34 = vld [vmem:[%s1315_s3] ss:$0 sm:$0xff] }
   0xd   : > { %449 = vmatpush.msra.mxu0 %v337_v0  ;;  %933 = vmatpush.msra.mxu1 %v337_v0  ;;  %s1019_s11 = scalar_lea.vmem %s1312_s0, %s1013_s8  ;;  %s1089_s14 = scalar_lea.vmem %s1313_s1, %s1013_s8  ;;  %v1102_v38 = vld [vmem:[%s1316_s4] ss:$0 sm:$0xff] }
   0xe   : > { %937 = vmatpush.msra.mxu2 %v336_v1  ;;  %938 = vmatpush.msra.mxu3 %v336_v1  ;;  %v320_v2 = vld [vmem:[%s1019_s11 + $0x80] sm:$0xff]  ;;  %v321_v6 = vld [vmem:[%s1019_s11 + $0x88] sm:$0xff]  ;;  %v322_v10 = vld [vmem:[%s1019_s11 + $0x90] sm:$0xff]  ;;  %s1137_s26 = scalar_lea.vmem %s1319_s7, %s1013_s8 }
   0xf   : > { %450 = vmatpush.msra.mxu0 %v336_v1  ;;  %936 = vmatpush.msra.mxu1 %v336_v1  ;;  %v328_v3 = vld [vmem:[%s1019_s11 + $0xc0] sm:$0xff]  ;;  %v329_v7 = vld [vmem:[%s1019_s11 + $0xc8] sm:$0xff]  ;;  %v330_v11 = vld [vmem:[%s1019_s11 + $0xd0] sm:$0xff] }
  0x10   : > { %v304_v4 = vld [vmem:[%s1019_s11] sm:$0xff]  ;;  %915 = vmatmul.msk.f32.vlgmr.msra.gmra.mxu2 %vm338_vm0, %v320_v2  ;;  %923 = vmatmul.msk.f32.vlgmr.msra.gmra.mxu3 %vm338_vm0, %v328_v3  ;;  %v305_v8 = vld [vmem:[%s1019_s11 + $0x8] sm:$0xff]  ;;  %v306_v12 = vld [vmem:[%s1019_s11 + $0x10] sm:$0xff] }
  0x11   : > { %v312_v5 = vld [vmem:[%s1019_s11 + $0x40] sm:$0xff]  ;;  %899 = vmatmul.msk.f32.vlgmr.msra.gmra.mxu0 %vm338_vm0, %v304_v4  ;;  %v313_v9 = vld [vmem:[%s1019_s11 + $0x48] sm:$0xff]  ;;  %v314_v13 = vld [vmem:[%s1019_s11 + $0x50] sm:$0xff] }
  0x12   : > { %907 = vmatmul.msk.f32.vlgmr.msra.gmra.mxu1 %vm338_vm0, %v312_v5  ;;  %v323_v14 = vld [vmem:[%s1019_s11 + $0x98] sm:$0xff]  ;;  %v324_v18 = vld [vmem:[%s1019_s11 + $0xa0] sm:$0xff]  ;;  %v325_v22 = vld [vmem:[%s1019_s11 + $0xa8] sm:$0xff] }
  0x13   : > { %v331_v15 = vld [vmem:[%s1019_s11 + $0xd8] sm:$0xff]  ;;  %v332_v19 = vld [vmem:[%s1019_s11 + $0xe0] sm:$0xff]  ;;  %v333_v23 = vld [vmem:[%s1019_s11 + $0xe8] sm:$0xff] }
  0x14   : > { %v307_v16 = vld [vmem:[%s1019_s11 + $0x18] sm:$0xff]  ;;  %v308_v20 = vld [vmem:[%s1019_s11 + $0x20] sm:$0xff]  ;;  %v309_v24 = vld [vmem:[%s1019_s11 + $0x28] sm:$0xff] }
  0x15   : > { %v315_v17 = vld [vmem:[%s1019_s11 + $0x58] sm:$0xff]  ;;  %v316_v21 = vld [vmem:[%s1019_s11 + $0x60] sm:$0xff]  ;;  %v317_v25 = vld [vmem:[%s1019_s11 + $0x68] sm:$0xff] }
  0x16   : > { %v326_v26 = vld [vmem:[%s1019_s11 + $0xb0] sm:$0xff]  ;;  %v327_v30 = vld [vmem:[%s1019_s11 + $0xb8] sm:$0xff]  ;;  %v548_v35 = vld [vmem:[%s1089_s14] sm:$0xff] }
  0x17   : > { %v334_v27 = vld [vmem:[%s1019_s11 + $0xf0] sm:$0xff]  ;;  %v335_v31 = vld [vmem:[%s1019_s11 + $0xf8] sm:$0xff]  ;;  %v556_v36 = vld [vmem:[%s1089_s14 + $0x40] sm:$0xff]  ;;  %v584_v37 = vmul.f32 %v1094_v34, %v548_v35 }
  0x18   : > { %916 = vmatmul.msk.f32.gmra.mxu2 %vm338_vm0, %v321_v6  ;;  %924 = vmatmul.msk.f32.gmra.mxu3 %vm338_vm0, %v329_v7  ;;  %v310_v28 = vld [vmem:[%s1019_s11 + $0x30] sm:$0xff]  ;;  %v311_v32 = vld [vmem:[%s1019_s11 + $0x38] sm:$0xff]  ;;  %v592_v39 = vmul.f32 %v1094_v34, %v556_v36  ;;  %v1108_v40 = vld [vmem:[%s1317_s5] ss:$0 sm:$0xff] }
  0x19   : > { %900 = vmatmul.msk.f32.gmra.mxu0 %vm338_vm0, %v305_v8  ;;  %v318_v29 = vld [vmem:[%s1019_s11 + $0x70] sm:$0xff]  ;;  %v319_v33 = vld [vmem:[%s1019_s11 + $0x78] sm:$0xff]  ;;  %v564_v41 = vld [vmem:[%s1089_s14 + $0x80] sm:$0xff]  ;;  %v620_v43 = vadd.f32 %v1102_v38, %v584_v37 }
  0x1a   : > { %908 = vmatmul.msk.f32.gmra.mxu1 %vm338_vm0, %v313_v9  ;;  %v572_v42 = vld [vmem:[%s1089_s14 + $0xc0] sm:$0xff]  ;;  %v628_v44 = vadd.f32 %v1102_v38, %v592_v39  ;;  %v600_v47 = vmul.f32 %v1094_v34, %v564_v41  ;;  %v549_v49 = vld [vmem:[%s1089_s14 + $0x8] sm:$0xff] }
  0x1b   : > { %v608_v48 = vmul.f32 %v1094_v34, %v572_v42  ;;  %v557_v50 = vld [vmem:[%s1089_s14 + $0x48] sm:$0xff]  ;;  %v1122_v52 = vld [vmem:[%s1318_s6] ss:$0 sm:$0xff]  ;;  %v585_v56 = vmul.f32 %v1094_v34, %v549_v49  ;;  %v551_v49 = vld [vmem:[%s1089_s14 + $0x18] sm:$0xff] }
  0x1c   : > { %v593_v57 = vmul.f32 %v1094_v34, %v557_v50  ;;  %v636_v58 = vadd.f32 %v1102_v38, %v600_v47  ;;  %v565_v0 = vld [vmem:[%s1089_s14 + $0x88] sm:$0xff]  ;;  %v559_v50 = vld [vmem:[%s1089_s14 + $0x58] sm:$0xff] }
  0x1d   : > { %v644_v59 = vadd.f32 %v1102_v38, %v608_v48  ;;  %v573_v1 = vld [vmem:[%s1089_s14 + $0xc8] sm:$0xff]  ;;  %v621_v6 = vadd.f32 %v1102_v38, %v585_v56 }
  0x1e   : > { %v629_v7 = vadd.f32 %v1102_v38, %v593_v57 }
  0x20   : > { %917 = vmatmul.msk.f32.gmra.mxu2 %vm338_vm0, %v322_v10  ;;  %925 = vmatmul.msk.f32.gmra.mxu3 %vm338_vm0, %v330_v11 }
  0x21   : > { %901 = vmatmul.msk.f32.gmra.mxu0 %vm338_vm0, %v306_v12  ;;  %v601_v12 = vmul.f32 %v1094_v34, %v565_v0 }
  0x22   : > { %909 = vmatmul.msk.f32.gmra.mxu1 %vm338_vm0, %v314_v13  ;;  %v609_v13 = vmul.f32 %v1094_v34, %v573_v1 }
  0x28   : > { %918 = vmatmul.msk.f32.gmra.mxu2 %vm338_vm0, %v323_v14  ;;  %926 = vmatmul.msk.f32.gmra.mxu3 %vm338_vm0, %v331_v15  ;;  %v550_v14 = vld [vmem:[%s1089_s14 + $0x10] sm:$0xff] }
  0x29   : > { %902 = vmatmul.msk.f32.gmra.mxu0 %vm338_vm0, %v307_v16  ;;  %v558_v15 = vld [vmem:[%s1089_s14 + $0x50] sm:$0xff] }
  0x2a   : > { %910 = vmatmul.msk.f32.gmra.mxu1 %vm338_vm0, %v315_v17 }
  0x30   : > { %919 = vmatmul.msk.f32.gmra.mxu2 %vm338_vm0, %v324_v18  ;;  %927 = vmatmul.msk.f32.gmra.mxu3 %vm338_vm0, %v332_v19 }
  0x31   : > { %903 = vmatmul.msk.f32.gmra.mxu0 %vm338_vm0, %v308_v20 }
  0x32   : > { %911 = vmatmul.msk.f32.gmra.mxu1 %vm338_vm0, %v316_v21 }
  0x38   : > { %920 = vmatmul.msk.f32.gmra.mxu2 %vm338_vm0, %v325_v22  ;;  %928 = vmatmul.msk.f32.gmra.mxu3 %vm338_vm0, %v333_v23  ;;  %v586_v22 = vmul.f32 %v1094_v34, %v550_v14  ;;  %v594_v23 = vmul.f32 %v1094_v34, %v558_v15 }
  0x39   : > { %904 = vmatmul.msk.f32.gmra.mxu0 %vm338_vm0, %v309_v24 }
  0x3a   : > { %912 = vmatmul.msk.f32.gmra.mxu1 %vm338_vm0, %v317_v25  ;;  %v622_v41 = vadd.f32 %v1102_v38, %v586_v22  ;;  %v630_v42 = vadd.f32 %v1102_v38, %v594_v23 }
  0x40   : > { %921 = vmatmul.msk.f32.gmra.mxu2 %vm338_vm0, %v326_v26  ;;  %929 = vmatmul.msk.f32.gmra.mxu3 %vm338_vm0, %v334_v27  ;;  %v637_v26 = vadd.f32 %v1102_v38, %v601_v12  ;;  %v645_v27 = vadd.f32 %v1102_v38, %v609_v13 }
  0x41   : > { %905 = vmatmul.msk.f32.gmra.mxu0 %vm338_vm0, %v310_v28 }
  0x42   : > { %913 = vmatmul.msk.f32.gmra.mxu1 %vm338_vm0, %v318_v29 }
  0x48   : > { %922 = vmatmul.msk.f32.gmra.mxu2 %vm338_vm0, %v327_v30  ;;  %930 = vmatmul.msk.f32.gmra.mxu3 %vm338_vm0, %v335_v31 }
  0x49   : > { %906 = vmatmul.msk.f32.gmra.mxu0 %vm338_vm0, %v311_v32  ;;  %v566_v32 = vld [vmem:[%s1089_s14 + $0x90] sm:$0xff] }
  0x4a   : > { %914 = vmatmul.msk.f32.gmra.mxu1 %vm338_vm0, %v319_v33  ;;  %v574_v33 = vld [vmem:[%s1089_s14 + $0xd0] sm:$0xff]  ;;  %v602_v47 = vmul.f32 %v1094_v34, %v566_v32 }
  0x4b   : > { %v610_v48 = vmul.f32 %v1094_v34, %v574_v33 }
  0x8e   : > { %v452_v45 = vpop.f32.mrf.mxu0 }
  0x8f   : > { %v476_v46 = vpop.f32.mrf.mxu1  ;;  %v656_v51 = vmul.f32 %v1108_v40, %v452_v45 }
  0x90   : > { %v664_v53 = vmul.f32 %v1108_v40, %v476_v46 }
  0x91   : > { %v688_v54 = vadd.f32 %v656_v51, %v620_v43 }
  0x92   : > { %v696_v55 = vadd.f32 %v664_v53, %v628_v44 }
  0x93   : > { %v724_v60 = vadd.f32 %v1122_v52, %v688_v54  ;;  %v500_v62 = vpop.f32.mrf.mxu2  ;;  %v524_v63 = vpop.f32.mrf.mxu3 }
  0x94   : > { %v732_v61 = vadd.f32 %v1122_v52, %v696_v55  ;;  %v672_v2 = vmul.f32 %v1108_v40, %v500_v62  ;;  %v680_v3 = vmul.f32 %v1108_v40, %v524_v63  ;;  %v638_v62 = vadd.f32 %v1102_v38, %v602_v47 }
  0x95   : > { %v756_v4 = vmax.f32 %v724_v60, 0.0  ;;  %v646_v63 = vadd.f32 %v1102_v38, %v610_v48 }
  0x96   : > { %v764_v5 = vmax.f32 %v732_v61, 0.0  ;;  %v704_v8 = vadd.f32 %v672_v2, %v636_v58  ;;  %v712_v9 = vadd.f32 %v680_v3, %v644_v59  ;;  %v455_v10 = vpop.f32.mrf.mxu0  ;;  %v587_v58 = vmul.f32 %v1094_v34, %v551_v49 }
  0x97   : > { %v479_v11 = vpop.f32.mrf.mxu1  ;;  %788 = vst [vmem:[%s1137_s26] sm:$0xff] %v756_v4  ;;  %v657_v16 = vmul.f32 %v1108_v40, %v455_v10  ;;  %v595_v59 = vmul.f32 %v1094_v34, %v559_v50  ;;  %v567_v4 = vld [vmem:[%s1089_s14 + $0x98] sm:$0xff] }
  0x98   : > { %v665_v17 = vmul.f32 %v1108_v40, %v479_v11  ;;  %796 = vst [vmem:[%s1137_s26 + $0x40] sm:$0xff] %v764_v5  ;;  %v740_v18 = vadd.f32 %v1122_v52, %v704_v8  ;;  %v748_v19 = vadd.f32 %v1122_v52, %v712_v9  ;;  %v575_v5 = vld [vmem:[%s1089_s14 + $0xd8] sm:$0xff]  ;;  %v623_v10 = vadd.f32 %v1102_v38, %v587_v58 }
  0x99   : > { %v689_v20 = vadd.f32 %v657_v16, %v621_v6  ;;  %v631_v11 = vadd.f32 %v1102_v38, %v595_v59  ;;  %v603_v16 = vmul.f32 %v1094_v34, %v567_v4 }
  0x9a   : > { %v697_v21 = vadd.f32 %v665_v17, %v629_v7  ;;  %v772_v24 = vmax.f32 %v740_v18, 0.0  ;;  %v780_v25 = vmax.f32 %v748_v19, 0.0  ;;  %v611_v17 = vmul.f32 %v1094_v34, %v575_v5  ;;  %v552_v18 = vld [vmem:[%s1089_s14 + $0x20] sm:$0xff] }
  0x9b   : > { %v725_v28 = vadd.f32 %v1122_v52, %v689_v20  ;;  %v503_v30 = vpop.f32.mrf.mxu2  ;;  %v527_v31 = vpop.f32.mrf.mxu3  ;;  %v560_v19 = vld [vmem:[%s1089_s14 + $0x60] sm:$0xff] }
  0x9c   : > { %v733_v29 = vadd.f32 %v1122_v52, %v697_v21  ;;  %804 = vst [vmem:[%s1137_s26 + $0x80] sm:$0xff] %v772_v24  ;;  %v673_v35 = vmul.f32 %v1108_v40, %v503_v30  ;;  %v681_v36 = vmul.f32 %v1108_v40, %v527_v31  ;;  %v639_v30 = vadd.f32 %v1102_v38, %v603_v16 }
  0x9d   : > { %812 = vst [vmem:[%s1137_s26 + $0xc0] sm:$0xff] %v780_v25  ;;  %v757_v37 = vmax.f32 %v725_v28, 0.0  ;;  %v647_v31 = vadd.f32 %v1102_v38, %v611_v17 }
  0x9e   : > { %v765_v39 = vmax.f32 %v733_v29, 0.0  ;;  %v705_v43 = vadd.f32 %v673_v35, %v637_v26  ;;  %v713_v44 = vadd.f32 %v681_v36, %v645_v27  ;;  %v458_v45 = vpop.f32.mrf.mxu0  ;;  %v588_v26 = vmul.f32 %v1094_v34, %v552_v18 }
  0x9f   : > { %v482_v46 = vpop.f32.mrf.mxu1  ;;  %789 = vst [vmem:[%s1137_s26 + $0x8] sm:$0xff] %v757_v37  ;;  %v658_v51 = vmul.f32 %v1108_v40, %v458_v45  ;;  %v596_v27 = vmul.f32 %v1094_v34, %v560_v19  ;;  %v568_v37 = vld [vmem:[%s1089_s14 + $0xa0] sm:$0xff] }
  0xa0   : > { %v666_v53 = vmul.f32 %v1108_v40, %v482_v46  ;;  %797 = vst [vmem:[%s1137_s26 + $0x48] sm:$0xff] %v765_v39  ;;  %v741_v54 = vadd.f32 %v1122_v52, %v705_v43  ;;  %v749_v55 = vadd.f32 %v1122_v52, %v713_v44  ;;  %v576_v39 = vld [vmem:[%s1089_s14 + $0xe0] sm:$0xff]  ;;  %v624_v45 = vadd.f32 %v1102_v38, %v588_v26 }
  0xa1   : > { %v690_v56 = vadd.f32 %v658_v51, %v622_v41  ;;  %v632_v46 = vadd.f32 %v1102_v38, %v596_v27  ;;  %v604_v51 = vmul.f32 %v1094_v34, %v568_v37 }
  0xa2   : > { %v698_v57 = vadd.f32 %v666_v53, %v630_v42  ;;  %v773_v60 = vmax.f32 %v741_v54, 0.0  ;;  %v781_v61 = vmax.f32 %v749_v55, 0.0  ;;  %v612_v53 = vmul.f32 %v1094_v34, %v576_v39  ;;  %v553_v54 = vld [vmem:[%s1089_s14 + $0x28] sm:$0xff] }
  0xa3   : > { %v726_v0 = vadd.f32 %v1122_v52, %v690_v56  ;;  %v506_v2 = vpop.f32.mrf.mxu2  ;;  %v530_v3 = vpop.f32.mrf.mxu3  ;;  %v561_v55 = vld [vmem:[%s1089_s14 + $0x68] sm:$0xff] }
  0xa4   : > { %v734_v1 = vadd.f32 %v1122_v52, %v698_v57  ;;  %805 = vst [vmem:[%s1137_s26 + $0x88] sm:$0xff] %v773_v60  ;;  %v674_v6 = vmul.f32 %v1108_v40, %v506_v2  ;;  %v682_v7 = vmul.f32 %v1108_v40, %v530_v3  ;;  %v640_v2 = vadd.f32 %v1102_v38, %v604_v51 }
  0xa5   : > { %813 = vst [vmem:[%s1137_s26 + $0xc8] sm:$0xff] %v781_v61  ;;  %v758_v8 = vmax.f32 %v726_v0, 0.0  ;;  %v648_v3 = vadd.f32 %v1102_v38, %v612_v53 }
  0xa6   : > { %v766_v9 = vmax.f32 %v734_v1, 0.0  ;;  %v706_v12 = vadd.f32 %v674_v6, %v638_v62  ;;  %v714_v13 = vadd.f32 %v682_v7, %v646_v63  ;;  %v461_v14 = vpop.f32.mrf.mxu0  ;;  %v589_v62 = vmul.f32 %v1094_v34, %v553_v54 }
  0xa7   : > { %v485_v15 = vpop.f32.mrf.mxu1  ;;  %790 = vst [vmem:[%s1137_s26 + $0x10] sm:$0xff] %v758_v8  ;;  %v659_v20 = vmul.f32 %v1108_v40, %v461_v14  ;;  %v597_v63 = vmul.f32 %v1094_v34, %v561_v55  ;;  %v569_v8 = vld [vmem:[%s1089_s14 + $0xa8] sm:$0xff] }
  0xa8   : > { %v667_v21 = vmul.f32 %v1108_v40, %v485_v15  ;;  %798 = vst [vmem:[%s1137_s26 + $0x50] sm:$0xff] %v766_v9  ;;  %v742_v22 = vadd.f32 %v1122_v52, %v706_v12  ;;  %v750_v23 = vadd.f32 %v1122_v52, %v714_v13  ;;  %v577_v9 = vld [vmem:[%s1089_s14 + $0xe8] sm:$0xff]  ;;  %v625_v14 = vadd.f32 %v1102_v38, %v589_v62 }
  0xa9   : > { %v691_v24 = vadd.f32 %v659_v20, %v623_v10  ;;  %v633_v15 = vadd.f32 %v1102_v38, %v597_v63  ;;  %v605_v20 = vmul.f32 %v1094_v34, %v569_v8 }
  0xaa   : > { %v699_v25 = vadd.f32 %v667_v21, %v631_v11  ;;  %v774_v28 = vmax.f32 %v742_v22, 0.0  ;;  %v782_v29 = vmax.f32 %v750_v23, 0.0  ;;  %v613_v21 = vmul.f32 %v1094_v34, %v577_v9  ;;  %v554_v22 = vld [vmem:[%s1089_s14 + $0x30] sm:$0xff] }
  0xab   : > { %v727_v32 = vadd.f32 %v1122_v52, %v691_v24  ;;  %v509_v35 = vpop.f32.mrf.mxu2  ;;  %v533_v36 = vpop.f32.mrf.mxu3  ;;  %v562_v23 = vld [vmem:[%s1089_s14 + $0x70] sm:$0xff] }
  0xac   : > { %v735_v33 = vadd.f32 %v1122_v52, %v699_v25  ;;  %806 = vst [vmem:[%s1137_s26 + $0x90] sm:$0xff] %v774_v28  ;;  %v675_v41 = vmul.f32 %v1108_v40, %v509_v35  ;;  %v683_v42 = vmul.f32 %v1108_v40, %v533_v36  ;;  %v641_v35 = vadd.f32 %v1102_v38, %v605_v20 }
  0xad   : > { %814 = vst [vmem:[%s1137_s26 + $0xd0] sm:$0xff] %v782_v29  ;;  %v759_v43 = vmax.f32 %v727_v32, 0.0  ;;  %v649_v36 = vadd.f32 %v1102_v38, %v613_v21 }
  0xae   : > { %v767_v44 = vmax.f32 %v735_v33, 0.0  ;;  %v707_v47 = vadd.f32 %v675_v41, %v639_v30  ;;  %v715_v48 = vadd.f32 %v683_v42, %v647_v31  ;;  %v464_v49 = vpop.f32.mrf.mxu0  ;;  %v590_v30 = vmul.f32 %v1094_v34, %v554_v22 }
  0xaf   : > { %v488_v50 = vpop.f32.mrf.mxu1  ;;  %791 = vst [vmem:[%s1137_s26 + $0x18] sm:$0xff] %v759_v43  ;;  %v660_v56 = vmul.f32 %v1108_v40, %v464_v49  ;;  %v598_v31 = vmul.f32 %v1094_v34, %v562_v23  ;;  %v570_v43 = vld [vmem:[%s1089_s14 + $0xb0] sm:$0xff] }
  0xb0   : > { %v668_v57 = vmul.f32 %v1108_v40, %v488_v50  ;;  %799 = vst [vmem:[%s1137_s26 + $0x58] sm:$0xff] %v767_v44  ;;  %v743_v58 = vadd.f32 %v1122_v52, %v707_v47  ;;  %v751_v59 = vadd.f32 %v1122_v52, %v715_v48  ;;  %v578_v44 = vld [vmem:[%s1089_s14 + $0xf0] sm:$0xff]  ;;  %v626_v49 = vadd.f32 %v1102_v38, %v590_v30 }
  0xb1   : > { %v692_v60 = vadd.f32 %v660_v56, %v624_v45  ;;  %v634_v50 = vadd.f32 %v1102_v38, %v598_v31  ;;  %v606_v56 = vmul.f32 %v1094_v34, %v570_v43 }
  0xb2   : > { %v700_v61 = vadd.f32 %v668_v57, %v632_v46  ;;  %v775_v0 = vmax.f32 %v743_v58, 0.0  ;;  %v783_v1 = vmax.f32 %v751_v59, 0.0  ;;  %v614_v57 = vmul.f32 %v1094_v34, %v578_v44  ;;  %v555_v58 = vld [vmem:[%s1089_s14 + $0x38] sm:$0xff] }
  0xb3   : > { %v728_v4 = vadd.f32 %v1122_v52, %v692_v60  ;;  %v512_v6 = vpop.f32.mrf.mxu2  ;;  %v536_v7 = vpop.f32.mrf.mxu3  ;;  %v563_v59 = vld [vmem:[%s1089_s14 + $0x78] sm:$0xff] }
  0xb4   : > { %v736_v5 = vadd.f32 %v1122_v52, %v700_v61  ;;  %807 = vst [vmem:[%s1137_s26 + $0x98] sm:$0xff] %v775_v0  ;;  %v676_v10 = vmul.f32 %v1108_v40, %v512_v6  ;;  %v684_v11 = vmul.f32 %v1108_v40, %v536_v7  ;;  %v642_v6 = vadd.f32 %v1102_v38, %v606_v56 }
  0xb5   : > { %815 = vst [vmem:[%s1137_s26 + $0xd8] sm:$0xff] %v783_v1  ;;  %v760_v12 = vmax.f32 %v728_v4, 0.0  ;;  %v650_v7 = vadd.f32 %v1102_v38, %v614_v57 }
  0xb6   : > { %v768_v13 = vmax.f32 %v736_v5, 0.0  ;;  %v708_v16 = vadd.f32 %v676_v10, %v640_v2  ;;  %v716_v17 = vadd.f32 %v684_v11, %v648_v3  ;;  %v467_v18 = vpop.f32.mrf.mxu0  ;;  %v591_v2 = vmul.f32 %v1094_v34, %v555_v58 }
  0xb7   : > { %v491_v19 = vpop.f32.mrf.mxu1  ;;  %792 = vst [vmem:[%s1137_s26 + $0x20] sm:$0xff] %v760_v12  ;;  %v661_v24 = vmul.f32 %v1108_v40, %v467_v18  ;;  %v599_v3 = vmul.f32 %v1094_v34, %v563_v59  ;;  %v571_v12 = vld [vmem:[%s1089_s14 + $0xb8] sm:$0xff] }
  0xb8   : > { %v669_v25 = vmul.f32 %v1108_v40, %v491_v19  ;;  %800 = vst [vmem:[%s1137_s26 + $0x60] sm:$0xff] %v768_v13  ;;  %v744_v26 = vadd.f32 %v1122_v52, %v708_v16  ;;  %v752_v27 = vadd.f32 %v1122_v52, %v716_v17  ;;  %v579_v13 = vld [vmem:[%s1089_s14 + $0xf8] sm:$0xff]  ;;  %v627_v18 = vadd.f32 %v1102_v38, %v591_v2 }
  0xb9   : > { %v693_v28 = vadd.f32 %v661_v24, %v625_v14  ;;  %v635_v19 = vadd.f32 %v1102_v38, %v599_v3  ;;  %v607_v24 = vmul.f32 %v1094_v34, %v571_v12 }
  0xba   : > { %v701_v29 = vadd.f32 %v669_v25, %v633_v15  ;;  %v776_v32 = vmax.f32 %v744_v26, 0.0  ;;  %v784_v33 = vmax.f32 %v752_v27, 0.0  ;;  %v615_v25 = vmul.f32 %v1094_v34, %v579_v13 }
  0xbb   : > { %v729_v37 = vadd.f32 %v1122_v52, %v693_v28  ;;  %v515_v41 = vpop.f32.mrf.mxu2  ;;  %v539_v42 = vpop.f32.mrf.mxu3  ;;  %v643_v34 = vadd.f32 %v1102_v38, %v607_v24 }
  0xbc   : > { %v737_v39 = vadd.f32 %v1122_v52, %v701_v29  ;;  %808 = vst [vmem:[%s1137_s26 + $0xa0] sm:$0xff] %v776_v32  ;;  %v677_v45 = vmul.f32 %v1108_v40, %v515_v41  ;;  %v685_v46 = vmul.f32 %v1108_v40, %v539_v42 }
  0xbd   : > { %816 = vst [vmem:[%s1137_s26 + $0xe0] sm:$0xff] %v784_v33  ;;  %v761_v47 = vmax.f32 %v729_v37, 0.0 }
  0xbe   : > { %v769_v48 = vmax.f32 %v737_v39, 0.0  ;;  %v709_v51 = vadd.f32 %v677_v45, %v641_v35  ;;  %v717_v53 = vadd.f32 %v685_v46, %v649_v36  ;;  %v470_v54 = vpop.f32.mrf.mxu0  ;;  %v651_v35 = vadd.f32 %v1102_v38, %v615_v25 }
  0xbf   : > { %v494_v55 = vpop.f32.mrf.mxu1  ;;  %793 = vst [vmem:[%s1137_s26 + $0x28] sm:$0xff] %v761_v47  ;;  %v662_v60 = vmul.f32 %v1108_v40, %v470_v54 }
  0xc0   : > { %v670_v61 = vmul.f32 %v1108_v40, %v494_v55  ;;  %801 = vst [vmem:[%s1137_s26 + $0x68] sm:$0xff] %v769_v48  ;;  %v745_v62 = vadd.f32 %v1122_v52, %v709_v51  ;;  %v753_v63 = vadd.f32 %v1122_v52, %v717_v53 }
  0xc1   : > { %v694_v0 = vadd.f32 %v662_v60, %v626_v49 }
  0xc2   : > { %v702_v1 = vadd.f32 %v670_v61, %v634_v50  ;;  %v777_v4 = vmax.f32 %v745_v62, 0.0  ;;  %v785_v5 = vmax.f32 %v753_v63, 0.0 }
  0xc3   : > { %v730_v8 = vadd.f32 %v1122_v52, %v694_v0  ;;  %v518_v10 = vpop.f32.mrf.mxu2  ;;  %v542_v11 = vpop.f32.mrf.mxu3 }
  0xc4   : > { %v738_v9 = vadd.f32 %v1122_v52, %v702_v1  ;;  %809 = vst [vmem:[%s1137_s26 + $0xa8] sm:$0xff] %v777_v4  ;;  %v678_v14 = vmul.f32 %v1108_v40, %v518_v10  ;;  %v686_v15 = vmul.f32 %v1108_v40, %v542_v11 }
  0xc5   : > { %817 = vst [vmem:[%s1137_s26 + $0xe8] sm:$0xff] %v785_v5  ;;  %v762_v16 = vmax.f32 %v730_v8, 0.0 }
  0xc6   : > { %v770_v17 = vmax.f32 %v738_v9, 0.0  ;;  %v710_v20 = vadd.f32 %v678_v14, %v642_v6  ;;  %v718_v21 = vadd.f32 %v686_v15, %v650_v7  ;;  %v473_v22 = vpop.f32.mrf.mxu0 }
  0xc7   : > { %v497_v23 = vpop.f32.mrf.mxu1  ;;  %794 = vst [vmem:[%s1137_s26 + $0x30] sm:$0xff] %v762_v16  ;;  %v663_v26 = vmul.f32 %v1108_v40, %v473_v22 }
  0xc8   : > { %v671_v27 = vmul.f32 %v1108_v40, %v497_v23  ;;  %802 = vst [vmem:[%s1137_s26 + $0x70] sm:$0xff] %v770_v17  ;;  %v746_v28 = vadd.f32 %v1122_v52, %v710_v20  ;;  %v754_v29 = vadd.f32 %v1122_v52, %v718_v21 }
  0xc9   : > { %v695_v30 = vadd.f32 %v663_v26, %v627_v18 }
  0xca   : > { %v703_v31 = vadd.f32 %v671_v27, %v635_v19  ;;  %v778_v32 = vmax.f32 %v746_v28, 0.0  ;;  %v786_v33 = vmax.f32 %v754_v29, 0.0 }
  0xcb   : > { %v731_v36 = vadd.f32 %v1122_v52, %v695_v30  ;;  %v521_v39 = vpop.f32.mrf.mxu2  ;;  %v545_v41 = vpop.f32.mrf.mxu3 }
  0xcc   : > { %v739_v37 = vadd.f32 %v1122_v52, %v703_v31  ;;  %810 = vst [vmem:[%s1137_s26 + $0xb0] sm:$0xff] %v778_v32  ;;  %v679_v42 = vmul.f32 %v1108_v40, %v521_v39  ;;  %v687_v43 = vmul.f32 %v1108_v40, %v545_v41 }
  0xcd   : > { %818 = vst [vmem:[%s1137_s26 + $0xf0] sm:$0xff] %v786_v33  ;;  %v763_v44 = vmax.f32 %v731_v36, 0.0 }
  0xce   : > { %v771_v45 = vmax.f32 %v739_v37, 0.0  ;;  %v711_v46 = vadd.f32 %v679_v42, %v643_v34  ;;  %v719_v47 = vadd.f32 %v687_v43, %v651_v35 }
  0xcf   : > { %795 = vst [vmem:[%s1137_s26 + $0x38] sm:$0xff] %v763_v44 }
  0xd0   : > { %803 = vst [vmem:[%s1137_s26 + $0x78] sm:$0xff] %v771_v45  ;;  %v747_v38 = vadd.f32 %v1122_v52, %v711_v46  ;;  %v755_v48 = vadd.f32 %v1122_v52, %v719_v47 }
  0xd2   : > { %v779_v49 = vmax.f32 %v747_v38, 0.0  ;;  %v787_v50 = vmax.f32 %v755_v48, 0.0 }
  0xd4   : > { %811 = vst [vmem:[%s1137_s26 + $0xb8] sm:$0xff] %v779_v49 }
  0xd5   : > { %819 = vst [vmem:[%s1137_s26 + $0xf8] sm:$0xff] %v787_v50 }
  0xd6 PF: > { %s17_s24 = sadd.s32 1, %s957_s24  }
  0xd7   : > { %p14_p4 = scmp.ge.s32.totalorder %s17_s24, 4  }
  0xd9   :  { %16 = sbr.rel (!%p14_p4) target bundleno = 1 (0x1), region = 81 }

// kernel: bottleneck_forward.5
= control target key start
LH: loop header
LB: loop body
LE: loop exit
PB: predicated region body
PF: predicated region fallthrough
CT: control target
= control target key end

     0   :  { %12 = vsyncpa [#allocation5], 0  ;;  %s3198_s21 = smov 0   ;;  %s3820_s0 = inlined_call_operand.vmem [shape: f32[2,16,16,128], index: 0, kind: input, shape index: {}]   ;;  %s3821_s1 = inlined_call_operand.vmem [shape: f32[1,128], index: 1, kind: input, shape index: {}]   ;;  %s3822_s2 = inlined_call_operand.vmem [shape: f32[1,128], index: 2, kind: input, shape index: {}]   ;;  %s3823_s3 = inlined_call_operand.hbm [shape: f32[9,128,128], index: 3, kind: input, shape index: {}]   ;;  %s3824_s4 = inlined_call_operand.vmem [shape: f32[2,16,16,128], index: 4, kind: output, shape index: {0}]   ;;  %s3825_s5 = inlined_call_operand.vmem [shape: f32[1,128], index: 5, kind: output, shape index: {1}]   ;;  %s3826_s6 = inlined_call_operand.vmem [shape: f32[1,128], index: 6, kind: output, shape index: {2}]  }
   0x1 LB: > { %s197_s24 = sshll.u32 %s3823_s3, 4  ;;  %s3024_s25 = sadd.s32 4294967295, %s3157_s21   ;;  %s3157_s21 = sphi %s3198_s21, %s18_s21   ;;  %s198_s24 = int_to_ptr.hbm [resolvable:$true] %s197_s24 }
   0x2   : > { %p3026_p0 = scmp.ge.s32.totalorder %s3157_s21, 1  ;;  %p180_p1 = scmp.lt.s32.totalorder %s3157_s21, 3 }
   0x3   : > { %p3027_p2 = scmp.ne.s32.totalorder %s3024_s25, 0  ;;  %p3096_p3 = scmp.eq.s32.totalorder %s3024_s25, 0 }
   0x4   : > { %p181_p4 = pnand %p3026_p0, %p180_p1  ;;  %s3159_s26 = smov [#allocation4]  }
   0x5   : > { %s199_s27 = sshll.u32 %s3159_s26, 4  ;;  %s3160_s28 = smov 128   ;;  %s200_s27 = int_to_ptr.vmem [resolvable:$true] %s199_s27 }
   0x6   : > { %p3092_p5 = pneg %p181_p4  ;;  %s3161_s29 = smov 8  }
   0x7   : > { %223 = sbr.rel (%p181_p4) target bundleno = 851 (0x353), region = 36 }
   0x8   : > { %p3093_p6 = pnand %p3096_p3, %p3092_p5 }
   0xa   : > { %3095 = dma.hbm_to_vmem [thread:$0]  (!%p3093_p6), %s198_s24, 18432, %s200_s27, [#allocation5], %s3160_s28, %s3160_s28, %s3161_s29  }
   0xc   : > { %3152 = dma.done.wait (%p3096_p3), [#allocation5], 18432  }
   0xd   : > { %3154 = vsyncadd (%p3096_p3), [#allocation5], 4294948864  ;;  %p254_p7 = scmp.lt.s32.totalorder %s3024_s25, 1 }
   0xe   : > { %267 = sbr.rel (%p3027_p2) target bundleno = 94 (0x5e), region = 44 }
   0xf   : > { %s255_s30 = scalar_select %p254_p7, %s3024_s25, 1 }
  0x11   : > { %s3038_s7 = sshll.u32 %s255_s30, 8 }
  0x12   : > { %s3212_s10 = scalar_lea.vmem %s3820_s0, %s3038_s7  ;;  %s3217_s13 = scalar_lea.vmem %s3824_s4, %s3038_s7 }
  0x13   : > { %v3162_v0 = vmov 0.0  }
  0x14   : > { %268 = vst [vmem:[#allocation2] sm:$0xff] %v3162_v0 }
  0x15   : > { %269 = vst [vmem:[#allocation2 + $0x8] sm:$0xff] %v3162_v0 }
  0x16   : > { %270 = vst [vmem:[#allocation2 + $0x10] sm:$0xff] %v3162_v0 }
  0x17   : > { %271 = vst [vmem:[#allocation2 + $0x18] sm:$0xff] %v3162_v0 }
  0x18   : > { %272 = vst [vmem:[#allocation2 + $0x20] sm:$0xff] %v3162_v0 }
  0x19   : > { %273 = vst [vmem:[#allocation2 + $0x28] sm:$0xff] %v3162_v0 }
  0x1a   : > { %274 = vst [vmem:[#allocation2 + $0x30] sm:$0xff] %v3162_v0 }
  0x1b   : > { %275 = vst [vmem:[#allocation2 + $0x38] sm:$0xff] %v3162_v0 }
  0x1c   : > { %276 = vst [vmem:[#allocation2 + $0x40] sm:$0xff] %v3162_v0 }
  0x1d   : > { %277 = vst [vmem:[#allocation2 + $0x48] sm:$0xff] %v3162_v0 }
  0x1e   : > { %278 = vst [vmem:[#allocation2 + $0x50] sm:$0xff] %v3162_v0 }
  0x1f   : > { %279 = vst [vmem:[#allocation2 + $0x58] sm:$0xff] %v3162_v0 }
  0x20   : > { %280 = vst [vmem:[#allocation2 + $0x60] sm:$0xff] %v3162_v0 }
  0x21   : > { %281 = vst [vmem:[#allocation2 + $0x68] sm:$0xff] %v3162_v0 }
  0x22   : > { %282 = vst [vmem:[#allocation2 + $0x70] sm:$0xff] %v3162_v0 }
  0x23   : > { %283 = vst [vmem:[#allocation2 + $0x78] sm:$0xff] %v3162_v0 }
  0x24   : > { %284 = vst [vmem:[#allocation2 + $0x80] sm:$0xff] %v3162_v0 }
  0x25   : > { %285 = vst [vmem:[#allocation2 + $0x88] sm:$0xff] %v3162_v0 }
  0x26   : > { %286 = vst [vmem:[#allocation2 + $0x90] sm:$0xff] %v3162_v0 }
  0x27   : > { %287 = vst [vmem:[#allocation2 + $0x98] sm:$0xff] %v3162_v0 }
  0x28   : > { %288 = vst [vmem:[#allocation2 + $0xa0] sm:$0xff] %v3162_v0 }
  0x29   : > { %289 = vst [vmem:[#allocation2 + $0xa8] sm:$0xff] %v3162_v0 }
  0x2a   : > { %290 = vst [vmem:[#allocation2 + $0xb0] sm:$0xff] %v3162_v0 }
  0x2b   : > { %291 = vst [vmem:[#allocation2 + $0xb8] sm:$0xff] %v3162_v0 }
  0x2c   : > { %292 = vst [vmem:[#allocation2 + $0xc0] sm:$0xff] %v3162_v0 }
  0x2d   : > { %293 = vst [vmem:[#allocation2 + $0xc8] sm:$0xff] %v3162_v0 }
  0x2e   : > { %294 = vst [vmem:[#allocation2 + $0xd0] sm:$0xff] %v3162_v0 }
  0x2f   : > { %295 = vst [vmem:[#allocation2 + $0xd8] sm:$0xff] %v3162_v0 }
  0x30   : > { %296 = vst [vmem:[#allocation2 + $0xe0] sm:$0xff] %v3162_v0 }
  0x31   : > { %297 = vst [vmem:[#allocation2 + $0xe8] sm:$0xff] %v3162_v0 }
  0x32   : > { %298 = vst [vmem:[#allocation2 + $0xf0] sm:$0xff] %v3162_v0 }
  0x33   : > { %299 = vst [vmem:[#allocation2 + $0xf8] sm:$0xff] %v3162_v0 }
  0x34   : > { %300 = vst [vmem:[#allocation2 + $0x100] sm:$0xff] %v3162_v0 }
  0x35   : > { %301 = vst [vmem:[#allocation2 + $0x108] sm:$0xff] %v3162_v0 }
  0x36   : > { %302 = vst [vmem:[#allocation2 + $0x110] sm:$0xff] %v3162_v0 }
  0x37   : > { %303 = vst [vmem:[#allocation2 + $0x118] sm:$0xff] %v3162_v0 }
  0x38   : > { %304 = vst [vmem:[#allocation2 + $0x120] sm:$0xff] %v3162_v0 }
  0x39   : > { %305 = vst [vmem:[#allocation2 + $0x128] sm:$0xff] %v3162_v0 }
  0x3a   : > { %306 = vst [vmem:[#allocation2 + $0x130] sm:$0xff] %v3162_v0 }
  0x3b   : > { %307 = vst [vmem:[#allocation2 + $0x138] sm:$0xff] %v3162_v0 }
  0x3c   : > { %308 = vst [vmem:[#allocation2 + $0x140] sm:$0xff] %v3162_v0 }
  0x3d   : > { %309 = vst [vmem:[#allocation2 + $0x148] sm:$0xff] %v3162_v0 }
  0x3e   : > { %310 = vst [vmem:[#allocation2 + $0x150] sm:$0xff] %v3162_v0 }
  0x3f   : > { %311 = vst [vmem:[#allocation2 + $0x158] sm:$0xff] %v3162_v0 }
  0x40   : > { %312 = vst [vmem:[#allocation2 + $0x160] sm:$0xff] %v3162_v0 }
  0x41   : > { %313 = vst [vmem:[#allocation2 + $0x168] sm:$0xff] %v3162_v0 }
  0x42   : > { %314 = vst [vmem:[#allocation2 + $0x170] sm:$0xff] %v3162_v0 }
  0x43   : > { %315 = vst [vmem:[#allocation2 + $0x178] sm:$0xff] %v3162_v0 }
  0x44   : > { %316 = vst [vmem:[#allocation2 + $0x180] sm:$0xff] %v3162_v0 }
  0x45   : > { %317 = vst [vmem:[#allocation2 + $0x188] sm:$0xff] %v3162_v0 }
  0x46   : > { %318 = vst [vmem:[#allocation2 + $0x190] sm:$0xff] %v3162_v0 }
  0x47   : > { %319 = vst [vmem:[#allocation2 + $0x198] sm:$0xff] %v3162_v0 }
  0x48   : > { %320 = vst [vmem:[#allocation2 + $0x1a0] sm:$0xff] %v3162_v0 }
  0x49   : > { %321 = vst [vmem:[#allocation2 + $0x1a8] sm:$0xff] %v3162_v0 }
  0x4a   : > { %322 = vst [vmem:[#allocation2 + $0x1b0] sm:$0xff] %v3162_v0 }
  0x4b   : > { %323 = vst [vmem:[#allocation2 + $0x1b8] sm:$0xff] %v3162_v0 }
  0x4c   : > { %324 = vst [vmem:[#allocation2 + $0x1c0] sm:$0xff] %v3162_v0 }
  0x4d   : > { %325 = vst [vmem:[#allocation2 + $0x1c8] sm:$0xff] %v3162_v0 }
  0x4e   : > { %326 = vst [vmem:[#allocation2 + $0x1d0] sm:$0xff] %v3162_v0 }
  0x4f   : > { %327 = vst [vmem:[#allocation2 + $0x1d8] sm:$0xff] %v3162_v0 }
  0x50   : > { %328 = vst [vmem:[#allocation2 + $0x1e0] sm:$0xff] %v3162_v0 }
  0x51   : > { %329 = vst [vmem:[#allocation2 + $0x1e8] sm:$0xff] %v3162_v0 }
  0x52   : > { %330 = vst [vmem:[#allocation2 + $0x1f0] sm:$0xff] %v3162_v0 }
  0x53   : > { %331 = vst [vmem:[#allocation2 + $0x1f8] sm:$0xff] %v3162_v0 }
  0x54   : > { %332 = vst [vmem:[#allocation2 + $0x200] sm:$0xff] %v3162_v0 }
  0x55   : > { %333 = vst [vmem:[#allocation2 + $0x208] sm:$0xff] %v3162_v0 }
  0x56   : > { %334 = vst [vmem:[#allocation2 + $0x210] sm:$0xff] %v3162_v0 }
  0x57   : > { %335 = vst [vmem:[#allocation2 + $0x218] sm:$0xff] %v3162_v0 }
  0x58   : > { %336 = vst [vmem:[#allocation2 + $0x220] sm:$0xff] %v3162_v0 }
  0x59   : > { %337 = vst [vmem:[#allocation2 + $0x228] sm:$0xff] %v3162_v0 }
  0x5a   : > { %338 = vst [vmem:[#allocation2 + $0x230] sm:$0xff] %v3162_v0 }
  0x5b   : > { %339 = vst [vmem:[#allocation2 + $0x238] sm:$0xff] %v3162_v0 }
  0x5c   : > { %340 = vst [vmem:[%s3825_s5] sm:$0x1] %v3162_v0 }
  0x5d   : > { %341 = vst [vmem:[%s3826_s6] sm:$0x1] %v3162_v0 }
  0x5e PF: > { %v558_v1 = vld [vmem:[#allocation4 + $0x78] sm:$0xff]  ;;  %v557_v2 = vld [vmem:[#allocation4 + $0x70] sm:$0xff]  ;;  %v556_v3 = vld [vmem:[#allocation4 + $0x68] sm:$0xff] }
  0x5f   : > { %3040 = vmatpush.msra.mxu1 %v558_v1  ;;  %3041 = vmatpush.msra.mxu2 %v558_v1  ;;  %v555_v4 = vld [vmem:[#allocation4 + $0x60] sm:$0xff]  ;;  %v554_v5 = vld [vmem:[#allocation4 + $0x58] sm:$0xff]  ;;  %v348_v6 = vld [vmem:[%s3212_s10 + $0x30] sm:$0xff] }
  0x60   : > { %3042 = vmatpush.msra.mxu3 %v558_v1  ;;  %559 = vmatpush.msra.mxu0 %v558_v1  ;;  %v3304_v7 = vld [vmem:[%s3821_s1] ss:$0 sm:$0xff]  ;;  %v356_v9 = vld [vmem:[%s3212_s10 + $0x70] sm:$0xff]  ;;  %v349_v15 = vld [vmem:[%s3212_s10 + $0x38] sm:$0xff] }
  0x61   : > { %3043 = vmatpush.msra.mxu1 %v557_v2  ;;  %3044 = vmatpush.msra.mxu2 %v557_v2  ;;  %v3309_v8 = vld [vmem:[%s3822_s2] ss:$0 sm:$0xff]  ;;  %v364_v10 = vld [vmem:[%s3212_s10 + $0xb0] sm:$0xff]  ;;  %v384_v12 = vmul.f32 %v3304_v7, %v348_v6  ;;  %v392_v13 = vmul.f32 %v3304_v7, %v356_v9  ;;  %v357_v16 = vld [vmem:[%s3212_s10 + $0x78] sm:$0xff]  ;;  %v385_v21 = vmul.f32 %v3304_v7, %v349_v15 }
  0x62   : > { %3045 = vmatpush.msra.mxu3 %v557_v2  ;;  %560 = vmatpush.msra.mxu0 %v557_v2  ;;  %v553_v11 = vld [vmem:[#allocation4 + $0x50] sm:$0xff]  ;;  %v400_v14 = vmul.f32 %v3304_v7, %v364_v10  ;;  %v552_v17 = vld [vmem:[#allocation4 + $0x48] sm:$0xff]  ;;  %v393_v22 = vmul.f32 %v3304_v7, %v357_v16  ;;  %v365_v23 = vld [vmem:[%s3212_s10 + $0xb8] sm:$0xff] }
  0x63   : > { %3046 = vmatpush.msra.mxu1 %v556_v3  ;;  %3047 = vmatpush.msra.mxu2 %v556_v3  ;;  %v420_v18 = vadd.f32 %v3309_v8, %v384_v12  ;;  %v428_v19 = vadd.f32 %v3309_v8, %v392_v13  ;;  %v551_v24 = vld [vmem:[#allocation4 + $0x40] sm:$0xff]  ;;  %v401_v28 = vmul.f32 %v3304_v7, %v365_v23  ;;  %v550_v29 = vld [vmem:[#allocation4 + $0x38] sm:$0xff]  ;;  %v351_v38 = vld [vmem:[%s3212_s10 + $0x48] sm:$0xff] }
  0x64   : > { %3048 = vmatpush.msra.mxu3 %v556_v3  ;;  %561 = vmatpush.msra.mxu0 %v556_v3  ;;  %v436_v20 = vadd.f32 %v3309_v8, %v400_v14  ;;  %v421_v30 = vadd.f32 %v3309_v8, %v385_v21  ;;  %v429_v31 = vadd.f32 %v3309_v8, %v393_v22  ;;  %v350_v32 = vld [vmem:[%s3212_s10 + $0x40] sm:$0xff]  ;;  %v359_v39 = vld [vmem:[%s3212_s10 + $0x88] sm:$0xff]  ;;  %v549_v46 = vld [vmem:[#allocation4 + $0x30] sm:$0xff] }
  0x65   : > { %3049 = vmatpush.msra.mxu1 %v555_v4  ;;  %3050 = vmatpush.msra.mxu2 %v555_v4  ;;  %v3324_v25 = vmax.f32 %v420_v18, 0.0  ;;  %v460_v26 = vmax.f32 %v428_v19, 0.0  ;;  %v358_v33 = vld [vmem:[%s3212_s10 + $0x80] sm:$0xff]  ;;  %v437_v34 = vadd.f32 %v3309_v8, %v401_v28  ;;  %v386_v35 = vmul.f32 %v3304_v7, %v350_v32  ;;  %v367_v45 = vld [vmem:[%s3212_s10 + $0xc8] sm:$0xff]  ;;  %v352_v53 = vld [vmem:[%s3212_s10 + $0x50] sm:$0xff] }
  0x66   : > { %3051 = vmatpush.msra.mxu3 %v555_v4  ;;  %562 = vmatpush.msra.mxu0 %v555_v4  ;;  %v468_v27 = vmax.f32 %v436_v20, 0.0  ;;  %v394_v36 = vmul.f32 %v3304_v7, %v358_v33  ;;  %v366_v37 = vld [vmem:[%s3212_s10 + $0xc0] sm:$0xff]  ;;  %v3338_v40 = vmax.f32 %v421_v30, 0.0  ;;  %v461_v41 = vmax.f32 %v429_v31, 0.0  ;;  %v360_v54 = vld [vmem:[%s3212_s10 + $0x90] sm:$0xff]  ;;  %v548_v55 = vld [vmem:[#allocation4 + $0x28] sm:$0xff] }
  0x67   : > { %3052 = vmatpush.msra.mxu1 %v554_v5  ;;  %3053 = vmatpush.msra.mxu2 %v554_v5  ;;  %485 = vst [vmem:[#allocation2 + $0x88] sm:$0xff] %v3324_v25  ;;  %v402_v42 = vmul.f32 %v3304_v7, %v366_v37  ;;  %v387_v43 = vmul.f32 %v3304_v7, %v351_v38  ;;  %v342_v44 = vld [vmem:[%s3212_s10] sm:$0xff]  ;;  %v469_v47 = vmax.f32 %v437_v34, 0.0  ;;  %v343_v4 = vld [vmem:[%s3212_s10 + $0x8] sm:$0xff]  ;;  %v545_v18 = vld [vmem:[#allocation4 + $0x10] sm:$0xff] }
  0x68   : > { %3054 = vmatpush.msra.mxu3 %v554_v5  ;;  %563 = vmatpush.msra.mxu0 %v554_v5  ;;  %493 = vst [vmem:[#allocation2 + $0x108] sm:$0xff] %v460_v26  ;;  %v422_v48 = vadd.f32 %v3309_v8, %v386_v35  ;;  %v430_v49 = vadd.f32 %v3309_v8, %v394_v36  ;;  %v547_v0 = vld [vmem:[#allocation4 + $0x20] sm:$0xff]  ;;  %v368_v5 = vld [vmem:[%s3212_s10 + $0xd0] sm:$0xff]  ;;  %v353_v22 = vld [vmem:[%s3212_s10 + $0x58] sm:$0xff] }
  0x69   : > { %3055 = vmatpush.msra.mxu1 %v553_v11  ;;  %3056 = vmatpush.msra.mxu2 %v553_v11  ;;  %501 = vst [vmem:[#allocation2 + $0x188] sm:$0xff] %v468_v27  ;;  %v438_v50 = vadd.f32 %v3309_v8, %v402_v42  ;;  %v423_v51 = vadd.f32 %v3309_v8, %v387_v43  ;;  %v361_v23 = vld [vmem:[%s3212_s10 + $0x98] sm:$0xff]  ;;  %v344_v34 = vld [vmem:[%s3212_s10 + $0x10] sm:$0xff] }
  0x6a   : > { %3057 = vmatpush.msra.mxu3 %v553_v11  ;;  %564 = vmatpush.msra.mxu0 %v553_v11  ;;  %486 = vst [vmem:[#allocation2 + $0x90] sm:$0xff] %v3338_v40  ;;  %v395_v52 = vmul.f32 %v3304_v7, %v359_v39  ;;  %v3352_v56 = vmax.f32 %v422_v48, 0.0  ;;  %v462_v57 = vmax.f32 %v430_v49, 0.0  ;;  %v378_v58 = vmul.f32 %v3304_v7, %v342_v44  ;;  %v546_v11 = vld [vmem:[#allocation4 + $0x18] sm:$0xff]  ;;  %v751_v48 = vld [vmem:[#allocation4 + $0xf0] sm:$0xff]  ;;  %v354_v49 = vld [vmem:[%s3212_s10 + $0x60] sm:$0xff] }
  0x6b   : > { %3058 = vmatpush.msra.mxu1 %v552_v17  ;;  %3059 = vmatpush.msra.mxu2 %v552_v17  ;;  %494 = vst [vmem:[#allocation2 + $0x110] sm:$0xff] %v461_v41  ;;  %v403_v59 = vmul.f32 %v3304_v7, %v367_v45  ;;  %v470_v60 = vmax.f32 %v438_v50, 0.0  ;;  %v3356_v61 = vmax.f32 %v423_v51, 0.0  ;;  %v388_v63 = vmul.f32 %v3304_v7, %v352_v53  ;;  %v369_v35 = vld [vmem:[%s3212_s10 + $0xd8] sm:$0xff]  ;;  %v1009_v45 = vld [vmem:[#allocation4 + $0x170] sm:$0xff]  ;;  %v362_v50 = vld [vmem:[%s3212_s10 + $0xa0] sm:$0xff] }
  0x6c   : > { %3060 = vmatpush.msra.mxu3 %v552_v17  ;;  %565 = vmatpush.msra.mxu0 %v552_v17  ;;  %502 = vst [vmem:[#allocation2 + $0x190] sm:$0xff] %v469_v47  ;;  %v431_v62 = vadd.f32 %v3309_v8, %v395_v52  ;;  %v414_v1 = vadd.f32 %v3309_v8, %v378_v58  ;;  %v1010_v36 = vld [vmem:[#allocation4 + $0x178] sm:$0xff]  ;;  %v1267_v51 = vld [vmem:[#allocation4 + $0x1f0] sm:$0xff]  ;;  %v1008_v52 = vld [vmem:[#allocation4 + $0x168] sm:$0xff] }
  0x6d   : > { %3061 = vmatpush.msra.mxu1 %v551_v24  ;;  %3062 = vmatpush.msra.mxu2 %v551_v24  ;;  %487 = vst [vmem:[#allocation2 + $0xa8] sm:$0xff] %v3352_v56  ;;  %v439_v2 = vadd.f32 %v3309_v8, %v403_v59  ;;  %v396_v3 = vmul.f32 %v3304_v7, %v360_v54  ;;  %v752_v43 = vld [vmem:[#allocation4 + $0xf8] sm:$0xff]  ;;  %v511_v58 = vld [vmem:[#allocation2 + $0x7] sm:$0xff] }
  0x6e   : > { %3063 = vmatpush.msra.mxu3 %v551_v24  ;;  %566 = vmatpush.msra.mxu0 %v551_v24  ;;  %495 = vst [vmem:[#allocation2 + $0x128] sm:$0xff] %v462_v57  ;;  %v463_v6 = vmax.f32 %v431_v62, 0.0  ;;  %v424_v9 = vadd.f32 %v3309_v8, %v388_v63  ;;  %v379_v10 = vmul.f32 %v3304_v7, %v343_v4  ;;  %v3368_v12 = vmax.f32 %v414_v1, 0.0  ;;  %v544_v24 = vld [vmem:[#allocation4 + $0x8] sm:$0xff]  ;;  %v1268_v44 = vld [vmem:[#allocation4 + $0x1f8] sm:$0xff]  ;;  %v370_v4 = vld [vmem:[%s3212_s10 + $0xe0] sm:$0xff] }
  0x6f   : > { %3064 = vmatpush.msra.mxu1 %v550_v29  ;;  %3065 = vmatpush.msra.mxu2 %v550_v29  ;;  %503 = vst [vmem:[#allocation2 + $0x1a8] sm:$0xff] %v470_v60  ;;  %v471_v13 = vmax.f32 %v439_v2, 0.0  ;;  %v432_v14 = vadd.f32 %v3309_v8, %v396_v3  ;;  %v404_v15 = vmul.f32 %v3304_v7, %v368_v5  ;;  %v3385_v30 = vld [vmem:[#allocation2 + $0x87] sm:$0xff]  ;;  %v1526_v63 = vld [vmem:[#allocation4 + $0x278] sm:$0xff] }
  0x70   : > { %3066 = vmatpush.msra.mxu3 %v550_v29  ;;  %567 = vmatpush.msra.mxu0 %v550_v29  ;;  %488 = vst [vmem:[#allocation2 + $0xb0] sm:$0xff] %v3356_v61  ;;  %v3373_v16 = vmax.f32 %v424_v9, 0.0  ;;  %v415_v17 = vadd.f32 %v3309_v8, %v379_v10  ;;  %v389_v27 = vmul.f32 %v3304_v7, %v353_v22  ;;  %v543_v29 = vld [vmem:[#allocation4] sm:$0xff]  ;;  %v750_v59 = vld [vmem:[#allocation4 + $0xe8] sm:$0xff]  ;;  %v345_v3 = vld [vmem:[%s3212_s10 + $0x18] sm:$0xff] }
  0x71   : > { %3067 = vmatpush.msra.mxu1 %v549_v46  ;;  %3068 = vmatpush.msra.mxu2 %v549_v46  ;;  %496 = vst [vmem:[#allocation2 + $0x130] sm:$0xff] %v463_v6  ;;  %v464_v19 = vmax.f32 %v432_v14, 0.0  ;;  %v440_v20 = vadd.f32 %v3309_v8, %v404_v15  ;;  %v397_v28 = vmul.f32 %v3304_v7, %v361_v23  ;;  %v527_v33 = vld [vmem:[#allocation2 + $0x107] sm:$0xff]  ;;  %v3411_v60 = vld [vmem:[#allocation2 + $0x8f] sm:$0xff] }
  0x72   : > { %3069 = vmatpush.msra.mxu3 %v549_v46  ;;  %568 = vmatpush.msra.mxu0 %v549_v46  ;;  %479 = vst [vmem:[#allocation2 + $0x28] sm:$0xff] %v3368_v12  ;;  %v3378_v21 = vmax.f32 %v415_v17, 0.0  ;;  %v425_v31 = vadd.f32 %v3309_v8, %v389_v27  ;;  %v380_v39 = vmul.f32 %v3304_v7, %v344_v34  ;;  %v535_v42 = vld [vmem:[#allocation2 + $0x187] sm:$0xff]  ;;  %v528_v2 = vld [vmem:[#allocation2 + $0x10f] sm:$0xff]  ;;  %v748_v27 = vld [vmem:[#allocation4 + $0xd8] sm:$0xff] }
  0x73   : > { %3070 = vmatpush.msra.mxu1 %v548_v55  ;;  %3071 = vmatpush.msra.mxu2 %v548_v55  ;;  %504 = vst [vmem:[#allocation2 + $0x1b0] sm:$0xff] %v471_v13  ;;  %v472_v26 = vmax.f32 %v440_v20, 0.0  ;;  %v3389_v32 = vadd.f32 %v3309_v8, %v397_v28  ;;  %v405_v41 = vmul.f32 %v3304_v7, %v369_v35  ;;  %v1266_v62 = vld [vmem:[#allocation4 + $0x1e8] sm:$0xff]  ;;  %v1007_v5 = vld [vmem:[#allocation4 + $0x160] sm:$0xff]  ;;  %v1525_v15 = vld [vmem:[#allocation4 + $0x270] sm:$0xff] }
  0x74   : > { %3072 = vmatpush.msra.mxu3 %v548_v55  ;;  %569 = vmatpush.msra.mxu0 %v548_v55  ;;  %489 = vst [vmem:[#allocation2 + $0xc8] sm:$0xff] %v3373_v16  ;;  %v3394_v37 = vmax.f32 %v425_v31, 0.0  ;;  %v416_v46 = vadd.f32 %v3309_v8, %v380_v39  ;;  %v390_v55 = vmul.f32 %v3304_v7, %v354_v49  ;;  %v1265_v6 = vld [vmem:[#allocation4 + $0x1e0] sm:$0xff]  ;;  %v536_v14 = vld [vmem:[#allocation2 + $0x18f] sm:$0xff] }
  0x75   : > { %3073 = vmatpush.msra.mxu1 %v547_v0  ;;  %3074 = vmatpush.msra.mxu2 %v547_v0  ;;  %497 = vst [vmem:[#allocation2 + $0x148] sm:$0xff] %v464_v19  ;;  %v465_v38 = vmax.f32 %v3389_v32, 0.0  ;;  %v441_v47 = vadd.f32 %v3309_v8, %v405_v41  ;;  %v398_v57 = vmul.f32 %v3304_v7, %v362_v50  ;;  %v749_v17 = vld [vmem:[#allocation4 + $0xe0] sm:$0xff]  ;;  %v1264_v19 = vld [vmem:[#allocation4 + $0x1d8] sm:$0xff]  ;;  %v1524_v23 = vld [vmem:[#allocation4 + $0x268] sm:$0xff] }
  0x76   : > { %3075 = vmatpush.msra.mxu3 %v547_v0  ;;  %570 = vmatpush.msra.mxu0 %v547_v0  ;;  %480 = vst [vmem:[#allocation2 + $0x30] sm:$0xff] %v3378_v21  ;;  %v3407_v53 = vmax.f32 %v416_v46, 0.0  ;;  %v426_v0 = vadd.f32 %v3309_v8, %v390_v55  ;;  %v406_v13 = vmul.f32 %v3304_v7, %v370_v4  ;;  %v1005_v28 = vld [vmem:[#allocation4 + $0x150] sm:$0xff]  ;;  %v1523_v39 = vld [vmem:[#allocation4 + $0x260] sm:$0xff]  ;;  %v1004_v49 = vld [vmem:[#allocation4 + $0x148] sm:$0xff] }
  0x77   : > { %3076 = vmatpush.msra.mxu1 %v546_v11  ;;  %3077 = vmatpush.msra.mxu2 %v546_v11  ;;  %505 = vst [vmem:[#allocation2 + $0x1c8] sm:$0xff] %v472_v26  ;;  %v473_v54 = vmax.f32 %v441_v47, 0.0  ;;  %v434_v1 = vadd.f32 %v3309_v8, %v398_v57  ;;  %v363_v26 = vld [vmem:[%s3212_s10 + $0xa8] sm:$0xff]  ;;  %v747_v41 = vld [vmem:[#allocation4 + $0xd0] sm:$0xff]  ;;  %v1522_v57 = vld [vmem:[#allocation4 + $0x258] sm:$0xff] }
  0x78   : > { %3078 = vmatpush.msra.mxu3 %v546_v11  ;;  %571 = vmatpush.msra.mxu0 %v546_v11  ;;  %490 = vst [vmem:[#allocation2 + $0xd0] sm:$0xff] %v3394_v37  ;;  %v3418_v9 = vmax.f32 %v426_v0, 0.0  ;;  %v381_v11 = vmul.f32 %v3304_v7, %v345_v3  ;;  %v442_v22 = vadd.f32 %v3309_v8, %v406_v13  ;;  %v512_v35 = vld [vmem:[#allocation2 + $0xf] sm:$0xff]  ;;  %v3441_v46 = vld [vmem:[#allocation2 + $0x127] sm:$0xff]  ;;  %v1002_v4 = vld [vmem:[#allocation4 + $0x138] sm:$0xff] }
  0x79   : > { %3079 = vmatpush.msra.mxu1 %v545_v18  ;;  %3080 = vmatpush.msra.mxu2 %v545_v18  ;;  %498 = vst [vmem:[#allocation2 + $0x150] sm:$0xff] %v465_v38  ;;  %v3420_v10 = vmax.f32 %v434_v1, 0.0  ;;  %v399_v34 = vmul.f32 %v3304_v7, %v363_v26  ;;  %v1262_v50 = vld [vmem:[#allocation4 + $0x1c8] sm:$0xff]  ;;  %v1261_v0 = vld [vmem:[#allocation4 + $0x1c0] sm:$0xff]  ;;  %v1521_v1 = vld [vmem:[#allocation4 + $0x250] sm:$0xff] }
  0x7a   : > { %3081 = vmatpush.msra.mxu3 %v545_v18  ;;  %572 = vmatpush.msra.mxu0 %v545_v18  ;;  %481 = vst [vmem:[#allocation2 + $0x48] sm:$0xff] %v3407_v53  ;;  %v1006_v18 = vld [vmem:[#allocation4 + $0x158] sm:$0xff]  ;;  %v417_v20 = vadd.f32 %v3309_v8, %v381_v11  ;;  %v474_v31 = vmax.f32 %v442_v22, 0.0  ;;  %v537_v55 = vld [vmem:[#allocation2 + $0x1a7] sm:$0xff]  ;;  %v1259_v22 = vld [vmem:[#allocation4 + $0x1b0] sm:$0xff] }
  0x7b   : > { %3082 = vmatpush.msra.mxu1 %v544_v24  ;;  %3083 = vmatpush.msra.mxu2 %v544_v24  ;;  %506 = vst [vmem:[#allocation2 + $0x1d0] sm:$0xff] %v473_v54  ;;  %v745_v3 = vld [vmem:[#allocation4 + $0xc0] sm:$0xff]  ;;  %v1260_v11 = vld [vmem:[#allocation4 + $0x1b8] sm:$0xff]  ;;  %v1520_v13 = vld [vmem:[#allocation4 + $0x248] sm:$0xff] }
  0x7c   : > { %3084 = vmatpush.msra.mxu3 %v544_v24  ;;  %573 = vmatpush.msra.mxu0 %v544_v24  ;;  %491 = vst [vmem:[#allocation2 + $0xe8] sm:$0xff] %v3418_v9  ;;  %v355_v24 = vld [vmem:[%s3212_s10 + $0x68] sm:$0xff] }
  0x7d   : > { %3085 = vmatpush.msra.mxu1 %v543_v29  ;;  %3086 = vmatpush.msra.mxu2 %v543_v29  ;;  %499 = vst [vmem:[#allocation2 + $0x168] sm:$0xff] %v3420_v10 }
  0x7e   : > { %599 = vmatmul.f32.vlgmr.msra.gmra.mxu1 %v3385_v30  ;;  %623 = vmatmul.f32.vlgmr.msra.gmra.mxu2 %v527_v33  ;;  %v391_v33 = vmul.f32 %v3304_v7, %v355_v24  ;;  %507 = vst [vmem:[#allocation2 + $0x1e8] sm:$0xff] %v474_v31  ;;  %v1519_v24 = vld [vmem:[#allocation4 + $0x240] sm:$0xff]  ;;  %v1518_v31 = vld [vmem:[#allocation4 + $0x238] sm:$0xff] }
  0x7f   : > { %1011 = vmatpush.msrb.mxu2 %v1010_v36  ;;  %3087 = vmatpush.msra.mxu3 %v543_v29  ;;  %v1263_v36 = vld [vmem:[#allocation4 + $0x1d0] sm:$0xff] }
  0x80   : > { %647 = vmatmul.f32.vlgmr.msra.gmra.mxu3 %v535_v42  ;;  %753 = vmatpush.msrb.mxu1 %v752_v43  ;;  %v427_v42 = vadd.f32 %v3309_v8, %v391_v33  ;;  %v435_v43 = vadd.f32 %v3309_v8, %v399_v34  ;;  %v742_v34 = vld [vmem:[#allocation4 + $0xa8] sm:$0xff]  ;;  %v983_v32 = vld [vmem:[#allocation2 + $0x151] sm:$0xff] }
  0x81   : > { %1269 = vmatpush.msrb.mxu3 %v1268_v44  ;;  %1012 = vmatpush.msrb.mxu2 %v1009_v45  ;;  %v346_v44 = vld [vmem:[%s3212_s10 + $0x20] sm:$0xff] }
  0x82   : > { %754 = vmatpush.msrb.mxu1 %v751_v48  ;;  %574 = vmatpush.msra.mxu0 %v543_v29  ;;  %v3431_v29 = vmax.f32 %v417_v20, 0.0  ;;  %v3439_v45 = vld [vmem:[#allocation2 + $0xa7] sm:$0xff]  ;;  %v382_v47 = vmul.f32 %v3304_v7, %v346_v44  ;;  %v1001_v20 = vld [vmem:[#allocation4 + $0x130] sm:$0xff]  ;;  %v998_v44 = vld [vmem:[#allocation4 + $0x118] sm:$0xff] }
  0x83   : > { %1270 = vmatpush.msrb.mxu3 %v1267_v51  ;;  %1013 = vmatpush.msrb.mxu2 %v1008_v52  ;;  %v371_v48 = vld [vmem:[%s3212_s10 + $0xe8] sm:$0xff]  ;;  %v3445_v51 = vmax.f32 %v427_v42, 0.0  ;;  %v3447_v52 = vmax.f32 %v435_v43, 0.0 }
  0x84   : > { %575 = vmatmul.f32.vlgmr.msra.gmra.mxu0 %v511_v58  ;;  %755 = vmatpush.msrb.mxu1 %v750_v59  ;;  %482 = vst [vmem:[#allocation2 + $0x50] sm:$0xff] %v3431_v29  ;;  %v407_v54 = vmul.f32 %v3304_v7, %v371_v48  ;;  %v418_v58 = vadd.f32 %v3309_v8, %v382_v47  ;;  %v746_v59 = vld [vmem:[#allocation4 + $0xc8] sm:$0xff]  ;;  %v1256_v47 = vld [vmem:[#allocation4 + $0x198] sm:$0xff] }
  0x85   : > { %1271 = vmatpush.msrb.mxu3 %v1266_v62  ;;  %1527 = vmatpush.msrb.mxu0 %v1526_v63  ;;  %v1003_v62 = vld [vmem:[#allocation4 + $0x140] sm:$0xff]  ;;  %492 = vst [vmem:[#allocation2 + $0xf0] sm:$0xff] %v3445_v51 }
  0x86   : > { %602 = vmatmul.f32.gmra.mxu1 %v3411_v60  ;;  %626 = vmatmul.f32.gmra.mxu2 %v528_v2  ;;  %v443_v63 = vadd.f32 %v3309_v8, %v407_v54  ;;  %500 = vst [vmem:[#allocation2 + $0x170] sm:$0xff] %v3447_v52  ;;  %v3456_v2 = vmax.f32 %v418_v58, 0.0  ;;  %v3476_v42 = vld [vmem:[#allocation2 + $0xc7] sm:$0xff]  ;;  %v997_v54 = vld [vmem:[#allocation4 + $0x110] sm:$0xff] }
  0x87   : > { %1014 = vmatpush.msrb.mxu2 %v1007_v5  ;;  %1272 = vmatpush.msrb.mxu3 %v1265_v6  ;;  %v3458_v6 = vld [vmem:[#allocation2 + $0x27] sm:$0xff]  ;;  %v739_v58 = vld [vmem:[#allocation4 + $0x90] sm:$0xff] }
  0x88   : > { %650 = vmatmul.f32.gmra.mxu3 %v536_v14  ;;  %1528 = vmatpush.msrb.mxu0 %v1525_v15  ;;  %v475_v5 = vmax.f32 %v443_v63, 0.0  ;;  %483 = vst [vmem:[#allocation2 + $0x68] sm:$0xff] %v3456_v2  ;;  %v744_v14 = vld [vmem:[#allocation4 + $0xb8] sm:$0xff]  ;;  %v347_v15 = vld [vmem:[%s3212_s10 + $0x28] sm:$0xff] }
  0x89   : > { %756 = vmatpush.msrb.mxu1 %v749_v17  ;;  %1015 = vmatpush.msrb.mxu2 %v1006_v18  ;;  %v3462_v17 = vld [vmem:[#allocation2 + $0xaf] sm:$0xff]  ;;  %v3478_v43 = vld [vmem:[#allocation2 + $0x147] sm:$0xff] }
  0x8a   : > { %1273 = vmatpush.msrb.mxu3 %v1264_v19  ;;  %1529 = vmatpush.msrb.mxu0 %v1524_v23  ;;  %508 = vst [vmem:[#allocation2 + $0x1f0] sm:$0xff] %v475_v5  ;;  %v3464_v18 = vld [vmem:[#allocation2 + $0x12f] sm:$0xff]  ;;  %v383_v19 = vmul.f32 %v3304_v7, %v347_v15  ;;  %v539_v48 = vld [vmem:[#allocation2 + $0x1c7] sm:$0xff] }
  0x8b   : > { %757 = vmatpush.msrb.mxu1 %v748_v27  ;;  %1016 = vmatpush.msrb.mxu2 %v1005_v28  ;;  %v538_v23 = vld [vmem:[#allocation2 + $0x1af] sm:$0xff]  ;;  %v995_v5 = vld [vmem:[#allocation4 + $0x100] sm:$0xff] }
  0x8c   : > { %578 = vmatmul.f32.gmra.mxu0 %v512_v35  ;;  %1274 = vmatpush.msrb.mxu3 %v1263_v36  ;;  %v419_v26 = vadd.f32 %v3309_v8, %v383_v19  ;;  %v743_v27 = vld [vmem:[#allocation4 + $0xb0] sm:$0xff]  ;;  %v1000_v28 = vld [vmem:[#allocation4 + $0x128] sm:$0xff]  ;;  %v999_v35 = vld [vmem:[#allocation4 + $0x120] sm:$0xff] }
  0x8d   : > { %1530 = vmatpush.msrb.mxu0 %v1523_v39  ;;  %758 = vmatpush.msrb.mxu1 %v747_v41  ;;  %v1258_v7 = vld [vmem:[#allocation4 + $0x1a8] sm:$0xff]  ;;  %v1257_v8 = vld [vmem:[#allocation4 + $0x1a0] sm:$0xff]  ;;  %v1517_v39 = vld [vmem:[#allocation4 + $0x230] sm:$0xff] }
  0x8e   : > { %605 = vmatmul.f32.gmra.mxu1 %v3439_v45  ;;  %629 = vmatmul.f32.gmra.mxu2 %v3441_v46  ;;  %v3471_v33 = vmax.f32 %v419_v26, 0.0  ;;  %v3473_v36 = vld [vmem:[#allocation2 + $0x2f] sm:$0xff]  ;;  %v741_v41 = vld [vmem:[#allocation4 + $0xa0] sm:$0xff]  ;;  %v2043_v19 = vld [vmem:[#allocation4 + $0x378] sm:$0xff] }
  0x8f   : > { %1017 = vmatpush.msrb.mxu2 %v1004_v49  ;;  %1275 = vmatpush.msrb.mxu3 %v1262_v50  ;;  %v1516_v49 = vld [vmem:[#allocation4 + $0x228] sm:$0xff]  ;;  %v740_v50 = vld [vmem:[#allocation4 + $0x98] sm:$0xff]  ;;  %v737_v15 = vld [vmem:[#allocation4 + $0x80] sm:$0xff] }
  0x90   : > { %653 = vmatmul.f32.gmra.mxu3 %v537_v55  ;;  %1531 = vmatpush.msrb.mxu0 %v1522_v57  ;;  %484 = vst [vmem:[#allocation2 + $0x70] sm:$0xff] %v3471_v33  ;;  %v1255_v55 = vld [vmem:[#allocation4 + $0x190] sm:$0xff]  ;;  %v1515_v57 = vld [vmem:[#allocation4 + $0x220] sm:$0xff]  ;;  %v1254_v63 = vld [vmem:[#allocation4 + $0x188] sm:$0xff] }
  0x91   : > { %759 = vmatpush.msrb.mxu1 %v746_v59  ;;  %1018 = vmatpush.msrb.mxu2 %v1003_v62  ;;  %v996_v59 = vld [vmem:[#allocation4 + $0x108] sm:$0xff]  ;;  %v1511_v26 = vld [vmem:[#allocation4 + $0x200] sm:$0xff] }
  0x92   : > { %1276 = vmatpush.msrb.mxu3 %v1261_v0  ;;  %1532 = vmatpush.msrb.mxu0 %v1521_v1  ;;  %v3483_v62 = vld [vmem:[#allocation2 + $0x47] sm:$0xff]  ;;  %v1514_v0 = vld [vmem:[#allocation4 + $0x218] sm:$0xff] }
  0x93   : > { %760 = vmatpush.msrb.mxu1 %v745_v3  ;;  %1019 = vmatpush.msrb.mxu2 %v1002_v4  ;;  %v738_v1 = vld [vmem:[#allocation4 + $0x88] sm:$0xff] }
  0x94   : > { %581 = vmatmul.f32.gmra.mxu0 %v3458_v6  ;;  %1277 = vmatpush.msrb.mxu3 %v1260_v11  ;;  %v3485_v3 = vld [vmem:[#allocation2 + $0xcf] sm:$0xff]  ;;  %v1253_v11 = vld [vmem:[#allocation4 + $0x180] sm:$0xff] }
  0x95   : > { %1533 = vmatpush.msrb.mxu0 %v1520_v13  ;;  %761 = vmatpush.msrb.mxu1 %v744_v14  ;;  %v3487_v4 = vld [vmem:[#allocation2 + $0x14f] sm:$0xff] }
  0x96   : > { %608 = vmatmul.f32.gmra.mxu1 %v3462_v17  ;;  %632 = vmatmul.f32.gmra.mxu2 %v3464_v18  ;;  %v540_v13 = vld [vmem:[#allocation2 + $0x1cf] sm:$0xff] }
  0x97   : > { %1020 = vmatpush.msrb.mxu2 %v1001_v20  ;;  %1278 = vmatpush.msrb.mxu3 %v1259_v22  ;;  %v1513_v14 = vld [vmem:[#allocation4 + $0x210] sm:$0xff]  ;;  %v1512_v20 = vld [vmem:[#allocation4 + $0x208] sm:$0xff]  ;;  %v2301_v22 = vld [vmem:[#allocation4 + $0x3f8] sm:$0xff] }
  0x98   : > { %656 = vmatmul.f32.gmra.mxu3 %v538_v23  ;;  %1534 = vmatpush.msrb.mxu0 %v1519_v24  ;;  %v1784_v23 = vld [vmem:[#allocation4 + $0x2f8] sm:$0xff]  ;;  %v3492_v24 = vld [vmem:[#allocation2 + $0x4f] sm:$0xff] }
  0x99   : > { %762 = vmatpush.msrb.mxu1 %v743_v27  ;;  %1021 = vmatpush.msrb.mxu2 %v1000_v28  ;;  %v3494_v27 = vld [vmem:[#allocation2 + $0xe7] sm:$0xff] }
  0x9a   : > { %1279 = vmatpush.msrb.mxu3 %v1258_v7  ;;  %1535 = vmatpush.msrb.mxu0 %v1518_v31  ;;  %v3496_v28 = vld [vmem:[#allocation2 + $0x167] sm:$0xff]  ;;  %v2559_v7 = vld [vmem:[#allocation4 + $0x478] sm:$0xff] }
  0x9b   : > { %763 = vmatpush.msrb.mxu1 %v742_v34  ;;  %1022 = vmatpush.msrb.mxu2 %v999_v35  ;;  %v541_v31 = vld [vmem:[#allocation2 + $0x1e7] sm:$0xff]  ;;  %v2042_v34 = vld [vmem:[#allocation4 + $0x370] sm:$0xff] }
  0x9c   : > { %584 = vmatmul.f32.gmra.mxu0 %v3473_v36  ;;  %1280 = vmatpush.msrb.mxu3 %v1257_v8  ;;  %v2300_v35 = vld [vmem:[#allocation4 + $0x3f0] sm:$0xff] }
  0x9d   : > { %1536 = vmatpush.msrb.mxu0 %v1517_v39  ;;  %764 = vmatpush.msrb.mxu1 %v741_v41  ;;  %v1783_v8 = vld [vmem:[#allocation4 + $0x2f0] sm:$0xff]  ;;  %v517_v39 = vld [vmem:[#allocation2 + $0x67] sm:$0xff] }
  0x9e   : > { %611 = vmatmul.f32.gmra.mxu1 %v3476_v42  ;;  %635 = vmatmul.f32.gmra.mxu2 %v3478_v43  ;;  %v3501_v41 = vld [vmem:[#allocation2 + $0xef] sm:$0xff] }
  0x9f   : > { %1023 = vmatpush.msrb.mxu2 %v998_v44  ;;  %1281 = vmatpush.msrb.mxu3 %v1256_v47  ;;  %v3503_v44 = vld [vmem:[#allocation2 + $0x16f] sm:$0xff] }
  0xa0   : > { %659 = vmatmul.f32.gmra.mxu3 %v539_v48  ;;  %1537 = vmatpush.msrb.mxu0 %v1516_v49  ;;  %v542_v47 = vld [vmem:[#allocation2 + $0x1ef] sm:$0xff] }
  0xa1   : > { %765 = vmatpush.msrb.mxu1 %v740_v50  ;;  %1024 = vmatpush.msrb.mxu2 %v997_v54  ;;  %v2558_v48 = vld [vmem:[#allocation4 + $0x470] sm:$0xff]  ;;  %v704_v50 = vld [vmem:[#allocation2 + $0x8] sm:$0xff] }
  0xa2   : > { %1282 = vmatpush.msrb.mxu3 %v1255_v55  ;;  %1538 = vmatpush.msrb.mxu0 %v1515_v57  ;;  %v518_v49 = vld [vmem:[#allocation2 + $0x6f] sm:$0xff] }
  0xa3   : > { %766 = vmatpush.msrb.mxu1 %v739_v58  ;;  %1025 = vmatpush.msrb.mxu2 %v996_v59  ;;  %v962_v54 = vld [vmem:[#allocation2 + $0x9] sm:$0xff] }
  0xa4   : > { %587 = vmatmul.f32.gmra.mxu0 %v3483_v62  ;;  %1283 = vmatpush.msrb.mxu3 %v1254_v63  ;;  %v2041_v55 = vld [vmem:[#allocation4 + $0x368] sm:$0xff]  ;;  %v705_v59 = vld [vmem:[#allocation2 + $0x10] sm:$0xff] }
  0xa5   : > { %1539 = vmatpush.msrb.mxu0 %v1514_v0  ;;  %767 = vmatpush.msrb.mxu1 %v738_v1  ;;  %v2299_v57 = vld [vmem:[#allocation4 + $0x3e8] sm:$0xff]  ;;  %v963_v63 = vld [vmem:[#allocation2 + $0x11] sm:$0xff] }
  0xa6   : > { %614 = vmatmul.f32.gmra.mxu1 %v3485_v3  ;;  %638 = vmatmul.f32.gmra.mxu2 %v3487_v4  ;;  %v1782_v58 = vld [vmem:[#allocation4 + $0x2e8] sm:$0xff] }
  0xa7   : > { %1026 = vmatpush.msrb.mxu2 %v995_v5  ;;  %1284 = vmatpush.msrb.mxu3 %v1253_v11  ;;  %v2557_v0 = vld [vmem:[#allocation4 + $0x468] sm:$0xff]  ;;  %v2298_v5 = vld [vmem:[#allocation4 + $0x3e0] sm:$0xff] }
  0xa8   : > { %662 = vmatmul.f32.gmra.mxu3 %v540_v13  ;;  %1540 = vmatpush.msrb.mxu0 %v1513_v14  ;;  %v964_v1 = vld [vmem:[#allocation2 + $0x29] sm:$0xff]  ;;  %v1781_v11 = vld [vmem:[#allocation4 + $0x2e0] sm:$0xff]  ;;  %v965_v13 = vld [vmem:[#allocation2 + $0x31] sm:$0xff] }
  0xa9   : > { %768 = vmatpush.msrb.mxu1 %v737_v15  ;;  %2044 = vmatpush.msra.mxu2 %v2043_v19  ;;  %v2297_v14 = vld [vmem:[#allocation4 + $0x3d8] sm:$0xff] }
  0xaa   : > { %1541 = vmatpush.msrb.mxu0 %v1512_v20  ;;  %2302 = vmatpush.msra.mxu3 %v2301_v22  ;;  %v1780_v15 = vld [vmem:[#allocation4 + $0x2d8] sm:$0xff]  ;;  %v968_v20 = vld [vmem:[#allocation2 + $0x69] sm:$0xff] }
  0xab   : > { %1785 = vmatpush.msra.mxu1 %v1784_v23  ;;  %2045 = vmatpush.msra.mxu2 %v2042_v34  ;;  %v967_v19 = vld [vmem:[#allocation2 + $0x51] sm:$0xff] }
  0xac   : > { %590 = vmatmul.f32.gmra.mxu0 %v3492_v24  ;;  %2303 = vmatpush.msra.mxu3 %v2300_v35  ;;  %v2296_v22 = vld [vmem:[#allocation4 + $0x3d0] sm:$0xff] }
  0xad   : > { %1542 = vmatpush.msrb.mxu0 %v1511_v26  ;;  %1786 = vmatpush.msra.mxu1 %v1783_v8  ;;  %v1779_v23 = vld [vmem:[#allocation4 + $0x2d0] sm:$0xff] }
  0xae   : > { %617 = vmatmul.f32.gmra.mxu1 %v3494_v27  ;;  %641 = vmatmul.f32.gmra.mxu2 %v3496_v28  ;;  %v970_v26 = vld [vmem:[#allocation2 + $0x89] sm:$0xff]  ;;  %v971_v8 = vld [vmem:[#allocation2 + $0x91] sm:$0xff] }
  0xaf   : > { %2560 = vmatpush.msra.mxu0 %v2559_v7  ;;  %2046 = vmatpush.msra.mxu2 %v2041_v55  ;;  %v2295_v7 = vld [vmem:[#allocation4 + $0x3c8] sm:$0xff]  ;;  %v1777_v55 = vld [vmem:[#allocation4 + $0x2c0] sm:$0xff] }
  0xb0   : > { %665 = vmatmul.f32.gmra.mxu3 %v541_v31  ;;  %1787 = vmatpush.msra.mxu1 %v1782_v58 }
  0xb1   : > { %2561 = vmatpush.msra.mxu0 %v2558_v48  ;;  %2304 = vmatpush.msra.mxu3 %v2299_v57 }
  0xb2   : > { %1788 = vmatpush.msra.mxu1 %v1781_v11 }
  0xb3   : > { %2562 = vmatpush.msra.mxu0 %v2557_v0  ;;  %2305 = vmatpush.msra.mxu3 %v2298_v5 }
  0xb4   : > { %593 = vmatmul.f32.gmra.mxu0 %v517_v39  ;;  %1789 = vmatpush.msra.mxu1 %v1780_v15 }
  0xb5   : > { %2306 = vmatpush.msra.mxu3 %v2297_v14 }
  0xb6   : > { %620 = vmatmul.f32.gmra.mxu1 %v3501_v41  ;;  %644 = vmatmul.f32.gmra.mxu2 %v3503_v44 }
  0xb7   : > { %2307 = vmatpush.msra.mxu3 %v2296_v22  ;;  %1790 = vmatpush.msra.mxu1 %v1779_v23  ;;  %v1492_v23 = vld [vmem:[#allocation2 + $0x108] sm:$0xff] }
  0xb8   : > { %668 = vmatmul.f32.gmra.mxu3 %v542_v47 }
  0xb9   : > { %2308 = vmatpush.msra.mxu3 %v2295_v7  ;;  %v2550_v7 = vld [vmem:[#allocation4 + $0x430] sm:$0xff] }
  0xbc   : > { %596 = vmatmul.f32.gmra.mxu0 %v518_v49 }
  0xbe   : > { %769 = vmatmul.f32.vlgmr.msrb.gmra.mxu1 %v704_v50  ;;  %1027 = vmatmul.f32.vlgmr.msrb.gmra.mxu2 %v962_v54 }
  0xc0   : > { %1285 = vmatmul.f32.vlgmr.msrb.gmra.mxu3 %v3458_v6  ;;  %v2040_v6 = vld [vmem:[#allocation4 + $0x360] sm:$0xff] }
  0xc1   : > { %2047 = vmatpush.msra.mxu2 %v2040_v6  ;;  %v974_v6 = vld [vmem:[#allocation2 + $0xc9] sm:$0xff] }
  0xc4   : > { %1543 = vmatmul.f32.vlgmr.msrb.gmra.mxu0 %v3368_v12 }
  0xc6   : > { %772 = vmatmul.f32.gmra.mxu1 %v705_v59  ;;  %1030 = vmatmul.f32.gmra.mxu2 %v963_v63  ;;  %v973_v59 = vld [vmem:[#allocation2 + $0xb1] sm:$0xff] }
  0xc8   : > { %1288 = vmatmul.f32.gmra.mxu3 %v3473_v36  ;;  %v2556_v36 = vld [vmem:[#allocation4 + $0x460] sm:$0xff] }
  0xc9   : > { %2563 = vmatpush.msra.mxu0 %v2556_v36 }
  0xcc   : > { %1546 = vmatmul.f32.gmra.mxu0 %v3378_v21 }
  0xce   : > { %775 = vmatmul.f32.gmra.mxu1 %v3368_v12  ;;  %1033 = vmatmul.f32.gmra.mxu2 %v964_v1  ;;  %v966_v12 = vld [vmem:[#allocation2 + $0x49] sm:$0xff] }
  0xd0   : > { %1291 = vmatmul.f32.gmra.mxu3 %v3483_v62  ;;  %v2039_v62 = vld [vmem:[#allocation4 + $0x358] sm:$0xff] }
  0xd1   : > { %2048 = vmatpush.msra.mxu2 %v2039_v62  ;;  %v975_v62 = vld [vmem:[#allocation2 + $0xd1] sm:$0xff] }
  0xd4   : > { %1549 = vmatmul.f32.gmra.mxu0 %v3407_v53 }
  0xd6   : > { %778 = vmatmul.f32.gmra.mxu1 %v3378_v21  ;;  %1036 = vmatmul.f32.gmra.mxu2 %v965_v13  ;;  %v2555_v21 = vld [vmem:[#allocation4 + $0x458] sm:$0xff] }
  0xd7   : > { %2564 = vmatpush.msra.mxu0 %v2555_v21  ;;  %v1776_v13 = vld [vmem:[#allocation4 + $0x2b8] sm:$0xff]  ;;  %v976_v21 = vld [vmem:[#allocation2 + $0xe9] sm:$0xff] }
  0xd8   : > { %1294 = vmatmul.f32.gmra.mxu3 %v3492_v24  ;;  %v969_v24 = vld [vmem:[#allocation2 + $0x71] sm:$0xff] }
  0xdc   : > { %1552 = vmatmul.f32.gmra.mxu0 %v3431_v29 }
  0xde   : > { %781 = vmatmul.f32.gmra.mxu1 %v3407_v53  ;;  %1039 = vmatmul.f32.gmra.mxu2 %v966_v12  ;;  %v2038_v53 = vld [vmem:[#allocation4 + $0x350] sm:$0xff] }
  0xdf   : > { %2049 = vmatpush.msra.mxu2 %v2038_v53 }
  0xe0   : > { %1297 = vmatmul.f32.gmra.mxu3 %v517_v39 }
  0xe4   : > { %1555 = vmatmul.f32.gmra.mxu0 %v3456_v2 }
  0xe6   : > { %784 = vmatmul.f32.gmra.mxu1 %v3431_v29  ;;  %1042 = vmatmul.f32.gmra.mxu2 %v967_v19  ;;  %v2554_v29 = vld [vmem:[#allocation4 + $0x450] sm:$0xff] }
  0xe7   : > { %2565 = vmatpush.msra.mxu0 %v2554_v29 }
  0xe8   : > { %1300 = vmatmul.f32.gmra.mxu3 %v518_v49  ;;  %v972_v49 = vld [vmem:[#allocation2 + $0xa9] sm:$0xff] }
  0xec   : > { %1558 = vmatmul.f32.gmra.mxu0 %v3471_v33 }
  0xee   : > { %787 = vmatmul.f32.gmra.mxu1 %v3456_v2  ;;  %1045 = vmatmul.f32.gmra.mxu2 %v968_v20  ;;  %v1234_v20 = vld [vmem:[#allocation2 + $0x107] sm:$0xff] }
  0xf0   : > { %1303 = vmatmul.f32.gmra.mxu3 %v3385_v30  ;;  %v2037_v30 = vld [vmem:[#allocation4 + $0x348] sm:$0xff] }
  0xf1   : > { %2050 = vmatpush.msra.mxu2 %v2037_v30  ;;  %v977_v30 = vld [vmem:[#allocation2 + $0xf1] sm:$0xff] }
  0xf4   : > { %1561 = vmatmul.f32.gmra.mxu0 %v3324_v25 }
  0xf6   : > { %790 = vmatmul.f32.gmra.mxu1 %v3471_v33  ;;  %1048 = vmatmul.f32.gmra.mxu2 %v969_v24  ;;  %v1775_v24 = vld [vmem:[#allocation4 + $0x2b0] sm:$0xff] }
  0xf8   : > { %1306 = vmatmul.f32.gmra.mxu3 %v3411_v60  ;;  %v1778_v60 = vld [vmem:[#allocation4 + $0x2c8] sm:$0xff] }
  0xf9   : > { %1791 = vmatpush.msra.mxu1 %v1778_v60 }
  0xfb   : > { %v3526_v2 = vpop.f32.mrf.mxu1  ;;  %1792 = vmatpush.msra.mxu1 %v1777_v55  ;;  %v2033_v55 = vld [vmem:[#allocation4 + $0x328] sm:$0xff] }
  0xfc   : > { %1564 = vmatmul.f32.gmra.mxu0 %v3338_v40 }
  0xfd   : > { %1793 = vmatpush.msra.mxu1 %v1776_v13  ;;  %v1774_v13 = vld [vmem:[#allocation4 + $0x2a8] sm:$0xff] }
  0xfe   : > { %793 = vmatmul.f32.gmra.mxu1 %v3324_v25  ;;  %1051 = vmatmul.f32.gmra.mxu2 %v970_v26  ;;  %v2553_v25 = vld [vmem:[#allocation4 + $0x448] sm:$0xff] }
  0xff   : > { %2566 = vmatpush.msra.mxu0 %v2553_v25  ;;  %1794 = vmatpush.msra.mxu1 %v1775_v24  ;;  %v1493_v25 = vld [vmem:[#allocation2 + $0x110] sm:$0xff] }
 0x100   : > { %1309 = vmatmul.f32.gmra.mxu3 %v3439_v45 }
 0x101   : > { %v3531_v31 = vpop.f32.mrf.mxu2  ;;  %v3533_v33 = vpop.f32.mrf.mxu0  ;;  %1795 = vmatpush.msra.mxu1 %v1774_v13 }
 0x103   : > { %v3535_v34 = vpop.f32.mrf.mxu1  ;;  %v3537_v35 = vpop.f32.mrf.mxu3 }
 0x104   : > { %1567 = vmatmul.f32.gmra.mxu0 %v3352_v56 }
 0x106   : > { %796 = vmatmul.f32.gmra.mxu1 %v3338_v40  ;;  %1054 = vmatmul.f32.gmra.mxu2 %v971_v8  ;;  %v2036_v40 = vld [vmem:[#allocation4 + $0x340] sm:$0xff] }
 0x107   : > { %2051 = vmatpush.msra.mxu2 %v2036_v40 }
 0x108   : > { %1312 = vmatmul.f32.gmra.mxu3 %v3462_v17  ;;  %v2294_v17 = vld [vmem:[#allocation4 + $0x3c0] sm:$0xff] }
 0x109   : > { %v3542_v45 = vpop.f32.mrf.mxu2  ;;  %v3544_v39 = vpop.f32.mrf.mxu0  ;;  %2309 = vmatpush.msra.mxu3 %v2294_v17  ;;  %v978_v17 = vld [vmem:[#allocation2 + $0x109] sm:$0xff] }
 0x10b   : > { %v3546_v47 = vpop.f32.mrf.mxu1  ;;  %v3548_v48 = vpop.f32.mrf.mxu3 }
 0x10c   : > { %1570 = vmatmul.f32.gmra.mxu0 %v3356_v61 }
 0x10e   : > { %799 = vmatmul.f32.gmra.mxu1 %v3352_v56  ;;  %1057 = vmatmul.f32.gmra.mxu2 %v972_v49  ;;  %v2552_v56 = vld [vmem:[#allocation4 + $0x440] sm:$0xff] }
 0x10f   : > { %2567 = vmatpush.msra.mxu0 %v2552_v56 }
 0x110   : > { %1315 = vmatmul.f32.gmra.mxu3 %v3476_v42 }
 0x111   : > { %v3553_v50 = vpop.f32.mrf.mxu2  ;;  %v3555_v54 = vpop.f32.mrf.mxu0 }
 0x113   : > { %v3557_v57 = vpop.f32.mrf.mxu1  ;;  %v3559_v58 = vpop.f32.mrf.mxu3 }
 0x114   : > { %1573 = vmatmul.f32.gmra.mxu0 %v3373_v16 }
 0x116   : > { %802 = vmatmul.f32.gmra.mxu1 %v3356_v61  ;;  %1060 = vmatmul.f32.gmra.mxu2 %v973_v59  ;;  %v2035_v61 = vld [vmem:[#allocation4 + $0x338] sm:$0xff]  ;;  %v2291_v59 = vld [vmem:[#allocation4 + $0x3a8] sm:$0xff] }
 0x117   : > { %2052 = vmatpush.msra.mxu2 %v2035_v61  ;;  %v1494_v61 = vld [vmem:[#allocation2 + $0x128] sm:$0xff] }
 0x118   : > { %1318 = vmatmul.f32.gmra.mxu3 %v3485_v3  ;;  %v2293_v3 = vld [vmem:[#allocation4 + $0x3b8] sm:$0xff] }
 0x119   : > { %v3564_v42 = vpop.f32.mrf.mxu2  ;;  %v3566_v63 = vpop.f32.mrf.mxu0  ;;  %2310 = vmatpush.msra.mxu3 %v2293_v3 }
 0x11b   : > { %v3568_v0 = vpop.f32.mrf.mxu1  ;;  %v3570_v1 = vpop.f32.mrf.mxu3 }
 0x11c   : > { %1576 = vmatmul.f32.gmra.mxu0 %v3394_v37 }
 0x11e   : > { %805 = vmatmul.f32.gmra.mxu1 %v3373_v16  ;;  %1063 = vmatmul.f32.gmra.mxu2 %v974_v6  ;;  %v2551_v16 = vld [vmem:[#allocation4 + $0x438] sm:$0xff] }
 0x11f   : > { %2568 = vmatpush.msra.mxu0 %v2551_v16 }
 0x120   : > { %1321 = vmatmul.f32.gmra.mxu3 %v3494_v27 }
 0x121   : > { %v3575_v5 = vpop.f32.mrf.mxu2  ;;  %v3577_v11 = vpop.f32.mrf.mxu0  ;;  %2569 = vmatpush.msra.mxu0 %v2550_v7  ;;  %v980_v7 = vld [vmem:[#allocation2 + $0x129] sm:$0xff] }
 0x123   : > { %v3579_v36 = vpop.f32.mrf.mxu1  ;;  %v3581_v12 = vpop.f32.mrf.mxu3 }
 0x124   : > { %1579 = vmatmul.f32.gmra.mxu0 %v3418_v9 }
 0x126   : > { %808 = vmatmul.f32.gmra.mxu1 %v3394_v37  ;;  %1066 = vmatmul.f32.gmra.mxu2 %v975_v62  ;;  %v2034_v37 = vld [vmem:[#allocation4 + $0x330] sm:$0xff] }
 0x127   : > { %2053 = vmatpush.msra.mxu2 %v2034_v37 }
 0x128   : > { %1324 = vmatmul.f32.gmra.mxu3 %v3501_v41  ;;  %v2292_v41 = vld [vmem:[#allocation4 + $0x3b0] sm:$0xff] }
 0x129   : > { %v3586_v27 = vpop.f32.mrf.mxu2  ;;  %v3588_v14 = vpop.f32.mrf.mxu0  ;;  %2311 = vmatpush.msra.mxu3 %v2292_v41  ;;  %2054 = vmatpush.msra.mxu2 %v2033_v55 }
 0x12b   : > { %v3590_v15 = vpop.f32.mrf.mxu1  ;;  %v3592_v19 = vpop.f32.mrf.mxu3  ;;  %2312 = vmatpush.msra.mxu3 %v2291_v59 }
 0x12c   : > { %1582 = vmatmul.f32.gmra.mxu0 %v3445_v51 }
 0x12e   : > { %811 = vmatmul.f32.gmra.mxu1 %v3418_v9  ;;  %1069 = vmatmul.f32.gmra.mxu2 %v976_v21  ;;  %v1235_v9 = vld [vmem:[#allocation2 + $0x10f] sm:$0xff] }
 0x12f   : > { %v979_v21 = vld [vmem:[#allocation2 + $0x111] sm:$0xff] }
 0x130   : > { %1327 = vmatmul.f32.gmra.mxu3 %v1234_v20 }
 0x131   : > { %v3596_v53 = vpop.f32.mrf.mxu2  ;;  %v3598_v22 = vpop.f32.mrf.mxu0 }
 0x133   : > { %v3600_v29 = vpop.f32.mrf.mxu1  ;;  %v3602_v26 = vpop.f32.mrf.mxu3 }
 0x134   : > { %1585 = vmatmul.f32.gmra.mxu0 %v1492_v23 }
 0x136   : > { %814 = vmatmul.f32.gmra.mxu1 %v3445_v51  ;;  %1072 = vmatmul.f32.gmra.mxu2 %v977_v30 }
 0x138   : > { %1330 = vmatmul.f32.gmra.mxu3 %v1235_v9 }
 0x139   : > { %v3605_v60 = vpop.f32.mrf.mxu2  ;;  %v3607_v8 = vpop.f32.mrf.mxu0 }
 0x13b   : > { %v3609_v49 = vpop.f32.mrf.mxu3  ;;  %v770_v40 = vpop.f32.mrf.mxu1 }
 0x13c   : > { %1588 = vmatmul.f32.gmra.mxu0 %v1493_v25  ;;  %v898_v51 = vadd.f32 %v770_v40, %v3533_v33 }
 0x13e   : > { %817 = vmatmul.f32.gmra.mxu1 %v1492_v23  ;;  %1075 = vmatmul.f32.gmra.mxu2 %v978_v17  ;;  %v3112_v17 = vld [vmem:[#allocation2 + $0x130] sm:$0xff] }
 0x140   : > { %1333 = vmatmul.f32.gmra.mxu3 %v3441_v46  ;;  %v2549_v46 = vld [vmem:[#allocation4 + $0x428] sm:$0xff] }
 0x141   : > { %v1028_v56 = vpop.f32.mrf.mxu2  ;;  %v1544_v6 = vpop.f32.mrf.mxu0  ;;  %2570 = vmatpush.msra.mxu0 %v2549_v46 }
 0x142   : > { %v1156_v3 = vadd.f32 %v1028_v56, %v898_v51 }
 0x143   : > { %v773_v62 = vpop.f32.mrf.mxu1  ;;  %v1286_v16 = vpop.f32.mrf.mxu3 }
 0x144   : > { %v1414_v20 = vadd.f32 %v1286_v16, %v1156_v3  ;;  %1591 = vmatmul.f32.gmra.mxu0 %v1494_v61  ;;  %v899_v33 = vadd.f32 %v773_v62, %v3544_v39  ;;  %v981_v62 = vld [vmem:[#allocation2 + $0x131] sm:$0xff] }
 0x146   : > { %v3613_v37 = vadd.f32 %v1544_v6, %v1414_v20  ;;  %820 = vmatmul.f32.gmra.mxu1 %v1493_v25  ;;  %1078 = vmatmul.f32.gmra.mxu2 %v979_v21  ;;  %v2032_v25 = vld [vmem:[#allocation4 + $0x320] sm:$0xff]  ;;  %v3113_v21 = vld [vmem:[#allocation2 + $0x148] sm:$0xff] }
 0x147   : > { %2055 = vmatpush.msra.mxu2 %v2032_v25  ;;  %v1773_v6 = vld [vmem:[#allocation4 + $0x2a0] sm:$0xff] }
 0x148   : > { %1336 = vmatmul.f32.gmra.mxu3 %v3464_v18  ;;  %v2290_v18 = vld [vmem:[#allocation4 + $0x3a0] sm:$0xff]  ;;  %1796 = vmatpush.msra.mxu1 %v1773_v6 }
 0x149   : > { %v1031_v41 = vpop.f32.mrf.mxu2  ;;  %v1547_v23 = vpop.f32.mrf.mxu0  ;;  %2313 = vmatpush.msra.mxu3 %v2290_v18 }
 0x14a   : > { %v1157_v24 = vadd.f32 %v1031_v41, %v899_v33 }
 0x14b   : > { %v776_v30 = vpop.f32.mrf.mxu1  ;;  %v1289_v9 = vpop.f32.mrf.mxu3 }
 0x14c   : > { %v1415_v40 = vadd.f32 %v1289_v9, %v1157_v24  ;;  %1594 = vmatmul.f32.gmra.mxu0 %v3112_v17  ;;  %v900_v39 = vadd.f32 %v776_v30, %v3555_v54  ;;  %v982_v24 = vld [vmem:[#allocation2 + $0x149] sm:$0xff] }
 0x14e   : > { %v3617_v55 = vadd.f32 %v1547_v23, %v1415_v40  ;;  %823 = vmatmul.f32.gmra.mxu1 %v1494_v61  ;;  %1081 = vmatmul.f32.gmra.mxu2 %v980_v7  ;;  %v2031_v7 = vld [vmem:[#allocation4 + $0x318] sm:$0xff] }
 0x14f   : > { %2056 = vmatpush.msra.mxu2 %v2031_v7 }
 0x150   : > { %1339 = vmatmul.f32.gmra.mxu3 %v3478_v43  ;;  %v2548_v43 = vld [vmem:[#allocation4 + $0x420] sm:$0xff] }
 0x151   : > { %v1034_v51 = vpop.f32.mrf.mxu2  ;;  %v1550_v59 = vpop.f32.mrf.mxu0  ;;  %2571 = vmatpush.msra.mxu0 %v2548_v43  ;;  %v1242_v43 = vld [vmem:[#allocation2 + $0x187] sm:$0xff] }
 0x152   : > { %v1158_v56 = vadd.f32 %v1034_v51, %v900_v39  ;;  %v1772_v39 = vld [vmem:[#allocation4 + $0x298] sm:$0xff] }
 0x153   : > { %v779_v3 = vpop.f32.mrf.mxu1  ;;  %v1292_v13 = vpop.f32.mrf.mxu3  ;;  %1797 = vmatpush.msra.mxu1 %v1772_v39 }
 0x154   : > { %v1416_v16 = vadd.f32 %v1292_v13, %v1158_v56  ;;  %1597 = vmatmul.f32.gmra.mxu0 %v3113_v21  ;;  %v901_v54 = vadd.f32 %v779_v3, %v3566_v63  ;;  %v2289_v63 = vld [vmem:[#allocation4 + $0x398] sm:$0xff]  ;;  %v3114_v56 = vld [vmem:[#allocation2 + $0x150] sm:$0xff] }
 0x155   : > { %2314 = vmatpush.msra.mxu3 %v2289_v63  ;;  %v985_v63 = vld [vmem:[#allocation2 + $0x171] sm:$0xff] }
 0x156   : > { %v3621_v61 = vadd.f32 %v1550_v59, %v1416_v16  ;;  %826 = vmatmul.f32.gmra.mxu1 %v3112_v17  ;;  %1084 = vmatmul.f32.gmra.mxu2 %v981_v62 }
 0x158   : > { %1342 = vmatmul.f32.gmra.mxu3 %v3487_v4 }
 0x159   : > { %v1037_v20 = vpop.f32.mrf.mxu2  ;;  %v1553_v33 = vpop.f32.mrf.mxu0 }
 0x15a   : > { %v1159_v46 = vadd.f32 %v1037_v20, %v901_v54 }
 0x15b   : > { %v782_v41 = vpop.f32.mrf.mxu1  ;;  %v1295_v23 = vpop.f32.mrf.mxu3 }
 0x15c   : > { %v1417_v30 = vadd.f32 %v1295_v23, %v1159_v46  ;;  %1600 = vmatmul.f32.gmra.mxu0 %v465_v38  ;;  %v902_v4 = vadd.f32 %v782_v41, %v3577_v11  ;;  %v2547_v11 = vld [vmem:[#allocation4 + $0x418] sm:$0xff]  ;;  %v1500_v23 = vld [vmem:[#allocation2 + $0x188] sm:$0xff] }
 0x15d   : > { %2572 = vmatpush.msra.mxu0 %v2547_v11 }
 0x15e   : > { %v3627_v9 = vadd.f32 %v1553_v33, %v1417_v30  ;;  %829 = vmatmul.f32.gmra.mxu1 %v3113_v21  ;;  %1087 = vmatmul.f32.gmra.mxu2 %v982_v24  ;;  %v984_v21 = vld [vmem:[#allocation2 + $0x169] sm:$0xff] }
 0x15f   : > { %v2288_v33 = vld [vmem:[#allocation4 + $0x390] sm:$0xff] }
 0x160   : > { %1345 = vmatmul.f32.gmra.mxu3 %v3496_v28  ;;  %v1771_v30 = vld [vmem:[#allocation4 + $0x290] sm:$0xff] }
 0x161   : > { %v1040_v40 = vpop.f32.mrf.mxu2  ;;  %v1556_v17 = vpop.f32.mrf.mxu0  ;;  %2315 = vmatpush.msra.mxu3 %v2288_v33  ;;  %1798 = vmatpush.msra.mxu1 %v1771_v30 }
 0x162   : > { %v1160_v25 = vadd.f32 %v1040_v40, %v902_v4 }
 0x163   : > { %v785_v18 = vpop.f32.mrf.mxu1  ;;  %v1298_v51 = vpop.f32.mrf.mxu3 }
 0x164   : > { %v1418_v38 = vadd.f32 %v1298_v51, %v1160_v25  ;;  %1603 = vmatmul.f32.gmra.mxu0 %v3420_v10  ;;  %v903_v28 = vadd.f32 %v785_v18, %v3588_v14  ;;  %v2030_v14 = vld [vmem:[#allocation4 + $0x310] sm:$0xff] }
 0x165   : > { %2057 = vmatpush.msra.mxu2 %v2030_v14  ;;  %v2546_v25 = vld [vmem:[#allocation4 + $0x410] sm:$0xff]  ;;  %v1770_v14 = vld [vmem:[#allocation4 + $0x288] sm:$0xff] }
 0x166   : > { %v3632_v59 = vadd.f32 %v1556_v17, %v1418_v38  ;;  %832 = vmatmul.f32.gmra.mxu1 %v3114_v56  ;;  %1090 = vmatmul.f32.gmra.mxu2 %v983_v32  ;;  %v1501_v51 = vld [vmem:[#allocation2 + $0x190] sm:$0xff] }
 0x167   : > { %2573 = vmatpush.msra.mxu0 %v2546_v25  ;;  %1799 = vmatpush.msra.mxu1 %v1770_v14  ;;  %v1504_v14 = vld [vmem:[#allocation2 + $0x1c8] sm:$0xff] }
 0x168   : > { %1348 = vmatmul.f32.gmra.mxu3 %v3503_v44 }
 0x169   : > { %v1043_v6 = vpop.f32.mrf.mxu2  ;;  %v1559_v3 = vpop.f32.mrf.mxu0 }
 0x16a   : > { %v1161_v13 = vadd.f32 %v1043_v6, %v903_v28  ;;  %v986_v28 = vld [vmem:[#allocation2 + $0x189] sm:$0xff] }
 0x16b   : > { %v788_v62 = vpop.f32.mrf.mxu1  ;;  %v1301_v16 = vpop.f32.mrf.mxu3  ;;  %v1244_v6 = vld [vmem:[#allocation2 + $0x1a7] sm:$0xff] }
 0x16c   : > { %v1419_v54 = vadd.f32 %v1301_v16, %v1161_v13  ;;  %1606 = vmatmul.f32.gmra.mxu0 %v3447_v52  ;;  %v904_v44 = vadd.f32 %v788_v62, %v3598_v22  ;;  %v2287_v13 = vld [vmem:[#allocation4 + $0x388] sm:$0xff] }
 0x16d   : > { %2316 = vmatpush.msra.mxu3 %v2287_v13 }
 0x16e   : > { %v3637_v20 = vadd.f32 %v1559_v3, %v1419_v54  ;;  %835 = vmatmul.f32.gmra.mxu1 %v3420_v10  ;;  %1093 = vmatmul.f32.gmra.mxu2 %v984_v21  ;;  %v1243_v10 = vld [vmem:[#allocation2 + $0x18f] sm:$0xff] }
 0x16f   : > { %v1502_v21 = vld [vmem:[#allocation2 + $0x1a8] sm:$0xff]  ;;  %v372_v54 = vld [vmem:[%s3212_s10 + $0xf0] sm:$0xff] }
 0x170   : > { %1351 = vmatmul.f32.gmra.mxu3 %v1242_v43 }
 0x171   : > { %v1046_v46 = vpop.f32.mrf.mxu2  ;;  %v1562_v41 = vpop.f32.mrf.mxu0 }
 0x172   : > { %v1162_v24 = vadd.f32 %v1046_v46, %v904_v44  ;;  %v3115_v44 = vld [vmem:[%s3821_s1] ss:$0 sm:$0xff] }
 0x173   : > { %v791_v7 = vpop.f32.mrf.mxu1  ;;  %v1304_v4 = vpop.f32.mrf.mxu3  ;;  %v408_v33 = vmul.f32 %v3115_v44, %v372_v54 }
 0x174   : > { %v1420_v40 = vadd.f32 %v1304_v4, %v1162_v24  ;;  %1609 = vmatmul.f32.gmra.mxu0 %v1500_v23  ;;  %v905_v22 = vadd.f32 %v791_v7, %v3607_v8  ;;  %v1245_v7 = vld [vmem:[#allocation2 + $0x1af] sm:$0xff] }
 0x176   : > { %v3641_v17 = vadd.f32 %v1562_v41, %v1420_v40  ;;  %838 = vmatmul.f32.gmra.mxu1 %v3447_v52  ;;  %1096 = vmatmul.f32.gmra.mxu2 %v985_v63  ;;  %v2029_v52 = vld [vmem:[#allocation4 + $0x308] sm:$0xff] }
 0x177   : > { %2058 = vmatpush.msra.mxu2 %v2029_v52 }
 0x178   : > { %1354 = vmatmul.f32.gmra.mxu3 %v1243_v10  ;;  %v2545_v10 = vld [vmem:[#allocation4 + $0x408] sm:$0xff] }
 0x179   : > { %v1049_v39 = vpop.f32.mrf.mxu2  ;;  %v1565_v18 = vpop.f32.mrf.mxu0  ;;  %2574 = vmatpush.msra.mxu0 %v2545_v10 }
 0x17a   : > { %v1163_v32 = vadd.f32 %v1049_v39, %v905_v22  ;;  %v1503_v39 = vld [vmem:[#allocation2 + $0x1b0] sm:$0xff] }
 0x17b   : > { %v794_v38 = vpop.f32.mrf.mxu1  ;;  %v1307_v56 = vpop.f32.mrf.mxu3 }
 0x17c   : > { %v1421_v11 = vadd.f32 %v1307_v56, %v1163_v32  ;;  %1612 = vmatmul.f32.gmra.mxu0 %v1501_v51  ;;  %v906_v8 = vadd.f32 %v794_v38, %v3526_v2  ;;  %v3116_v2 = vld [vmem:[%s3822_s2] ss:$0 sm:$0xff] }
 0x17d   : > { %v3655_v30 = vadd.f32 %v3116_v2, %v408_v33  ;;  %v1769_v33 = vld [vmem:[#allocation4 + $0x280] sm:$0xff] }
 0x17e   : > { %v3645_v3 = vadd.f32 %v1565_v18, %v1421_v11  ;;  %841 = vmatmul.f32.gmra.mxu1 %v1500_v23  ;;  %1099 = vmatmul.f32.gmra.mxu2 %v986_v28  ;;  %v987_v23 = vld [vmem:[#allocation2 + $0x191] sm:$0xff] }
 0x17f   : > { %v476_v63 = vmax.f32 %v3655_v30, 0.0  ;;  %v373_v18 = vld [vmem:[%s3212_s10 + $0xf8] sm:$0xff]  ;;  %1800 = vmatpush.msra.mxu1 %v1769_v33  ;;  %v2253_v30 = vld [vmem:[#allocation2 + $0x48] sm:$0xff] }
 0x180   : > { %1357 = vmatmul.f32.gmra.mxu3 %v1244_v6  ;;  %v409_v38 = vmul.f32 %v3115_v44, %v373_v18 }
 0x181   : > { %v1052_v62 = vpop.f32.mrf.mxu2  ;;  %v1568_v16 = vpop.f32.mrf.mxu0  ;;  %509 = vst [vmem:[#allocation2 + $0x208] sm:$0xff] %v476_v63 }
 0x182   : > { %v1164_v43 = vadd.f32 %v1052_v62, %v906_v8  ;;  %v3664_v6 = vadd.f32 %v3116_v2, %v409_v38  ;;  %v2028_v8 = vld [vmem:[#allocation4 + $0x300] sm:$0xff]  ;;  %v990_v38 = vld [vmem:[#allocation2 + $0x1c9] sm:$0xff] }
 0x183   : > { %v797_v46 = vpop.f32.mrf.mxu1  ;;  %v1310_v41 = vpop.f32.mrf.mxu3  ;;  %2059 = vmatpush.msra.mxu2 %v2028_v8 }
 0x184   : > { %v1422_v24 = vadd.f32 %v1310_v41, %v1164_v43  ;;  %1615 = vmatmul.f32.gmra.mxu0 %v1502_v21  ;;  %v907_v40 = vadd.f32 %v797_v46, %v3535_v34  ;;  %v1246_v34 = vld [vmem:[#allocation2 + $0x1c7] sm:$0xff]  ;;  %v477_v13 = vmax.f32 %v3664_v6, 0.0  ;;  %v989_v41 = vld [vmem:[#allocation2 + $0x1b1] sm:$0xff] }
 0x185   : > { %v2254_v6 = vld [vmem:[#allocation2 + $0x50] sm:$0xff] }
 0x186   : > { %v3657_v4 = vadd.f32 %v1568_v16, %v1422_v24  ;;  %844 = vmatmul.f32.gmra.mxu1 %v1501_v51  ;;  %1102 = vmatmul.f32.gmra.mxu2 %v987_v23  ;;  %v988_v51 = vld [vmem:[#allocation2 + $0x1a9] sm:$0xff]  ;;  %v2286_v16 = vld [vmem:[#allocation4 + $0x380] sm:$0xff]  ;;  %510 = vst [vmem:[#allocation2 + $0x210] sm:$0xff] %v477_v13 }
 0x187   : > { %2317 = vmatpush.msra.mxu3 %v2286_v16  ;;  %v1247_v24 = vld [vmem:[#allocation2 + $0x1cf] sm:$0xff] }
 0x188   : > { %1360 = vmatmul.f32.gmra.mxu3 %v1245_v7  ;;  %v2544_v7 = vld [vmem:[#allocation4 + $0x400] sm:$0xff] }
 0x189   : > { %v1055_v22 = vpop.f32.mrf.mxu2  ;;  %v1571_v25 = vpop.f32.mrf.mxu0  ;;  %2575 = vmatpush.msra.mxu0 %v2544_v7 }
 0x18a   : > { %v1165_v32 = vadd.f32 %v1055_v22, %v907_v40  ;;  %v1505_v22 = vld [vmem:[#allocation2 + $0x1d0] sm:$0xff] }
 0x18b   : > { %v800_v56 = vpop.f32.mrf.mxu1  ;;  %v1313_v28 = vpop.f32.mrf.mxu3 }
 0x18c   : > { %v1423_v11 = vadd.f32 %v1313_v28, %v1165_v32  ;;  %1618 = vmatmul.f32.gmra.mxu0 %v1503_v39  ;;  %v908_v62 = vadd.f32 %v800_v56, %v3546_v47  ;;  %v1248_v28 = vld [vmem:[#allocation2 + $0x1e7] sm:$0xff] }
 0x18e   : > { %v3666_v52 = vadd.f32 %v1571_v25, %v1423_v11  ;;  %847 = vmatmul.f32.gmra.mxu1 %v1502_v21  ;;  %1105 = vmatmul.f32.gmra.mxu2 %v988_v51 }
 0x190   : > { %1363 = vmatmul.f32.gmra.mxu3 %v1246_v34  ;;  %v1506_v34 = vld [vmem:[#allocation2 + $0x1e8] sm:$0xff] }
 0x191   : > { %v1058_v54 = vpop.f32.mrf.mxu2  ;;  %v1574_v43 = vpop.f32.mrf.mxu0 }
 0x192   : > { %v1166_v44 = vadd.f32 %v1058_v54, %v908_v62  ;;  %v991_v54 = vld [vmem:[#allocation2 + $0x1d1] sm:$0xff] }
 0x193   : > { %v803_v46 = vpop.f32.mrf.mxu1  ;;  %v1316_v21 = vpop.f32.mrf.mxu3 }
 0x194   : > { %v1424_v23 = vadd.f32 %v1316_v21, %v1166_v44  ;;  %1621 = vmatmul.f32.gmra.mxu0 %v1504_v14  ;;  %v909_v47 = vadd.f32 %v803_v46, %v3557_v57  ;;  %v1249_v44 = vld [vmem:[#allocation2 + $0x1ef] sm:$0xff] }
 0x195   : > { %v1507_v21 = vld [vmem:[#allocation2 + $0x1f0] sm:$0xff] }
 0x196   : > { %v3672_v2 = vadd.f32 %v1574_v43, %v1424_v23  ;;  %850 = vmatmul.f32.gmra.mxu1 %v1503_v39  ;;  %1108 = vmatmul.f32.gmra.mxu2 %v989_v41 }
 0x198   : > { %1366 = vmatmul.f32.gmra.mxu3 %v1247_v24 }
 0x199   : > { %v1061_v40 = vpop.f32.mrf.mxu2  ;;  %v1577_v10 = vpop.f32.mrf.mxu0 }
 0x19a   : > { %v1167_v25 = vadd.f32 %v1061_v40, %v909_v47  ;;  %v992_v47 = vld [vmem:[#allocation2 + $0x1e9] sm:$0xff] }
 0x19b   : > { %v806_v18 = vpop.f32.mrf.mxu1  ;;  %v1319_v32 = vpop.f32.mrf.mxu3  ;;  %v1250_v40 = vld [vmem:[#allocation2 + $0x207] sm:$0xff] }
 0x19c   : > { %v1425_v56 = vadd.f32 %v1319_v32, %v1167_v25  ;;  %1624 = vmatmul.f32.gmra.mxu0 %v1505_v22  ;;  %v910_v39 = vadd.f32 %v806_v18, %v3568_v0 }
 0x19e   : > { %v3675_v51 = vadd.f32 %v1577_v10, %v1425_v56  ;;  %853 = vmatmul.f32.gmra.mxu1 %v1504_v14  ;;  %1111 = vmatmul.f32.gmra.mxu2 %v990_v38  ;;  %v993_v56 = vld [vmem:[#allocation2 + $0x1f1] sm:$0xff] }
 0x1a0   : > { %1369 = vmatmul.f32.gmra.mxu3 %v1248_v28 }
 0x1a1   : > { %v1064_v57 = vpop.f32.mrf.mxu2  ;;  %v1580_v11 = vpop.f32.mrf.mxu0 }
 0x1a2   : > { %v1168_v8 = vadd.f32 %v1064_v57, %v910_v39  ;;  %v1251_v39 = vld [vmem:[#allocation2 + $0x20f] sm:$0xff] }
 0x1a3   : > { %v809_v62 = vpop.f32.mrf.mxu1  ;;  %v1322_v16 = vpop.f32.mrf.mxu3 }
 0x1a4   : > { %v1426_v43 = vadd.f32 %v1322_v16, %v1168_v8  ;;  %1627 = vmatmul.f32.gmra.mxu0 %v1506_v34  ;;  %v911_v14 = vadd.f32 %v809_v62, %v3579_v36 }
 0x1a6   : > { %v3678_v33 = vadd.f32 %v1580_v11, %v1426_v43  ;;  %856 = vmatmul.f32.gmra.mxu1 %v1505_v22  ;;  %1114 = vmatmul.f32.gmra.mxu2 %v991_v54  ;;  %v1736_v54 = vld [vmem:[#allocation2 + $0x29] sm:$0xff] }
 0x1a7   : > { %v1995_v43 = vld [vmem:[#allocation2 + $0x47] sm:$0xff] }
 0x1a8   : > { %1372 = vmatmul.f32.gmra.mxu3 %v1249_v44 }
 0x1a9   : > { %v1067_v46 = vpop.f32.mrf.mxu2  ;;  %v1583_v0 = vpop.f32.mrf.mxu0 }
 0x1aa   : > { %v1169_v41 = vadd.f32 %v1067_v46, %v911_v14 }
 0x1ab   : > { %v812_v23 = vpop.f32.mrf.mxu1  ;;  %v1325_v24 = vpop.f32.mrf.mxu3 }
 0x1ac   : > { %v1427_v7 = vadd.f32 %v1325_v24, %v1169_v41  ;;  %1630 = vmatmul.f32.gmra.mxu0 %v1507_v21  ;;  %v912_v22 = vadd.f32 %v812_v23, %v3590_v15  ;;  %v1737_v24 = vld [vmem:[#allocation2 + $0x31] sm:$0xff] }
 0x1ae   : > { %v3681_v10 = vadd.f32 %v1583_v0, %v1427_v7  ;;  %859 = vmatmul.f32.gmra.mxu1 %v1506_v34  ;;  %1117 = vmatmul.f32.gmra.mxu2 %v992_v47  ;;  %v2511_v0 = vld [vmem:[#allocation2 + $0x49] sm:$0xff] }
 0x1af   : > { %v1996_v47 = vld [vmem:[#allocation2 + $0x4f] sm:$0xff] }
 0x1b0   : > { %1375 = vmatmul.f32.gmra.mxu3 %v1250_v40 }
 0x1b1   : > { %v1070_v25 = vpop.f32.mrf.mxu2  ;;  %v1586_v36 = vpop.f32.mrf.mxu0 }
 0x1b2   : > { %v1170_v18 = vadd.f32 %v1070_v25, %v912_v22  ;;  %v2512_v25 = vld [vmem:[#allocation2 + $0x51] sm:$0xff] }
 0x1b3   : > { %v815_v32 = vpop.f32.mrf.mxu1  ;;  %v1328_v38 = vpop.f32.mrf.mxu3 }
 0x1b4   : > { %v1428_v28 = vadd.f32 %v1328_v38, %v1170_v18  ;;  %1633 = vmatmul.f32.gmra.mxu0 %v476_v63  ;;  %v913_v11 = vadd.f32 %v815_v32, %v3600_v29  ;;  %v1997_v38 = vld [vmem:[#allocation2 + $0x67] sm:$0xff] }
 0x1b6   : > { %v3686_v57 = vadd.f32 %v1586_v36, %v1428_v28  ;;  %862 = vmatmul.f32.gmra.mxu1 %v1507_v21  ;;  %1120 = vmatmul.f32.gmra.mxu2 %v993_v56  ;;  %v2255_v28 = vld [vmem:[#allocation2 + $0x68] sm:$0xff] }
 0x1b8   : > { %1378 = vmatmul.f32.gmra.mxu3 %v1251_v39 }
 0x1b9   : > { %v1073_v15 = vpop.f32.mrf.mxu2  ;;  %v1589_v34 = vpop.f32.mrf.mxu0 }
 0x1ba   : > { %v1171_v8 = vadd.f32 %v1073_v15, %v913_v11 }
 0x1bb   : > { %v818_v62 = vpop.f32.mrf.mxu1  ;;  %v1331_v16 = vpop.f32.mrf.mxu3 }
 0x1bc   : > { %v1429_v44 = vadd.f32 %v1331_v16, %v1171_v8  ;;  %1636 = vmatmul.f32.gmra.mxu0 %v477_v13  ;;  %v914_v14 = vadd.f32 %v818_v62, %v3531_v31 }
 0x1be   : > { %v3691_v63 = vadd.f32 %v1589_v34, %v1429_v44  ;;  %1801 = vmatmul.f32.vlgmr.msra.gmra.mxu1 %v1736_v54  ;;  %2060 = vmatmul.f32.vlgmr.msra.gmra.mxu2 %v1995_v43  ;;  %v2513_v34 = vld [vmem:[#allocation2 + $0x69] sm:$0xff] }
 0x1bf   : > { %v1998_v54 = vld [vmem:[#allocation2 + $0x6f] sm:$0xff] }
 0x1c0   : > { %2318 = vmatmul.f32.vlgmr.msra.gmra.mxu3 %v2253_v30  ;;  %v2256_v44 = vld [vmem:[#allocation2 + $0x70] sm:$0xff] }
 0x1c1   : > { %v1076_v29 = vpop.f32.mrf.mxu2  ;;  %v1592_v46 = vpop.f32.mrf.mxu0 }
 0x1c2   : > { %v1172_v21 = vadd.f32 %v1076_v29, %v914_v14 }
 0x1c3   : > { %v821_v41 = vpop.f32.mrf.mxu1  ;;  %v1334_v23 = vpop.f32.mrf.mxu3 }
 0x1c4   : > { %v1430_v7 = vadd.f32 %v1334_v23, %v1172_v21  ;;  %2576 = vmatmul.f32.vlgmr.msra.gmra.mxu0 %v2511_v0  ;;  %v915_v40 = vadd.f32 %v821_v41, %v3542_v45  ;;  %v1999_v23 = vld [vmem:[#allocation2 + $0x87] sm:$0xff] }
 0x1c6   : > { %v3694_v13 = vadd.f32 %v1592_v46, %v1430_v7  ;;  %1804 = vmatmul.f32.gmra.mxu1 %v1737_v24  ;;  %2063 = vmatmul.f32.gmra.mxu2 %v1996_v47  ;;  %v2514_v46 = vld [vmem:[#allocation2 + $0x71] sm:$0xff]  ;;  %v2257_v47 = vld [vmem:[#allocation2 + $0x88] sm:$0xff] }
 0x1c8   : > { %2321 = vmatmul.f32.gmra.mxu3 %v2254_v6 }
 0x1c9   : > { %v1079_v31 = vpop.f32.mrf.mxu2  ;;  %v1595_v22 = vpop.f32.mrf.mxu0 }
 0x1ca   : > { %v1173_v36 = vadd.f32 %v1079_v31, %v915_v40  ;;  %v2515_v31 = vld [vmem:[#allocation2 + $0x89] sm:$0xff] }
 0x1cb   : > { %v824_v18 = vpop.f32.mrf.mxu1  ;;  %v1337_v32 = vpop.f32.mrf.mxu3 }
 0x1cc   : > { %v1431_v56 = vadd.f32 %v1337_v32, %v1173_v36  ;;  %2579 = vmatmul.f32.gmra.mxu0 %v2512_v25  ;;  %v916_v11 = vadd.f32 %v824_v18, %v3553_v50  ;;  %v2000_v18 = vld [vmem:[#allocation2 + $0x8f] sm:$0xff] }
 0x1ce   : > { %v3697_v39 = vadd.f32 %v1595_v22, %v1431_v56  ;;  %1807 = vmatmul.f32.gmra.mxu1 %v2511_v0  ;;  %2066 = vmatmul.f32.gmra.mxu2 %v1997_v38  ;;  %v2258_v38 = vld [vmem:[#allocation2 + $0x90] sm:$0xff] }
 0x1d0   : > { %2324 = vmatmul.f32.gmra.mxu3 %v2255_v28 }
 0x1d1   : > { %v1082_v15 = vpop.f32.mrf.mxu2  ;;  %v1598_v45 = vpop.f32.mrf.mxu0 }
 0x1d2   : > { %v1174_v8 = vadd.f32 %v1082_v15, %v916_v11  ;;  %v2516_v15 = vld [vmem:[#allocation2 + $0x91] sm:$0xff] }
 0x1d3   : > { %v827_v62 = vpop.f32.mrf.mxu1  ;;  %v1340_v16 = vpop.f32.mrf.mxu3 }
 0x1d4   : > { %v1432_v43 = vadd.f32 %v1340_v16, %v1174_v8  ;;  %2582 = vmatmul.f32.gmra.mxu0 %v2513_v34  ;;  %v917_v14 = vadd.f32 %v827_v62, %v3564_v42  ;;  %v2001_v62 = vld [vmem:[#allocation2 + $0xa7] sm:$0xff] }
 0x1d6   : > { %v3700_v30 = vadd.f32 %v1598_v45, %v1432_v43  ;;  %1810 = vmatmul.f32.gmra.mxu1 %v2512_v25  ;;  %2069 = vmatmul.f32.gmra.mxu2 %v1998_v54  ;;  %v2259_v54 = vld [vmem:[#allocation2 + $0xa8] sm:$0xff] }
 0x1d8   : > { %2327 = vmatmul.f32.gmra.mxu3 %v2256_v44 }
 0x1d9   : > { %v1085_v29 = vpop.f32.mrf.mxu2  ;;  %v1601_v50 = vpop.f32.mrf.mxu0 }
 0x1da   : > { %v1175_v0 = vadd.f32 %v1085_v29, %v917_v14  ;;  %v2517_v29 = vld [vmem:[#allocation2 + $0xa9] sm:$0xff] }
 0x1db   : > { %v830_v21 = vpop.f32.mrf.mxu1  ;;  %v1343_v41 = vpop.f32.mrf.mxu3 }
 0x1dc   : > { %v1433_v24 = vadd.f32 %v1343_v41, %v1175_v0  ;;  %2585 = vmatmul.f32.gmra.mxu0 %v2514_v46  ;;  %v918_v6 = vadd.f32 %v830_v21, %v3575_v5  ;;  %v2002_v21 = vld [vmem:[#allocation2 + $0xaf] sm:$0xff] }
 0x1de   : > { %v3703_v7 = vadd.f32 %v1601_v50, %v1433_v24  ;;  %1813 = vmatmul.f32.gmra.mxu1 %v2513_v34  ;;  %2072 = vmatmul.f32.gmra.mxu2 %v1999_v23  ;;  %v2260_v23 = vld [vmem:[#allocation2 + $0xb0] sm:$0xff] }
 0x1e0   : > { %2330 = vmatmul.f32.gmra.mxu3 %v2257_v47 }
 0x1e1   : > { %v1088_v40 = vpop.f32.mrf.mxu2  ;;  %v1604_v42 = vpop.f32.mrf.mxu0 }
 0x1e2   : > { %v1176_v22 = vadd.f32 %v1088_v40, %v918_v6  ;;  %v2518_v40 = vld [vmem:[#allocation2 + $0xb1] sm:$0xff] }
 0x1e3   : > { %v833_v25 = vpop.f32.mrf.mxu1  ;;  %v1346_v36 = vpop.f32.mrf.mxu3 }
 0x1e4   : > { %v1434_v32 = vadd.f32 %v1346_v36, %v1176_v22  ;;  %2588 = vmatmul.f32.gmra.mxu0 %v2515_v31  ;;  %v919_v28 = vadd.f32 %v833_v25, %v3586_v27  ;;  %v2003_v25 = vld [vmem:[#allocation2 + $0xc7] sm:$0xff] }
 0x1e6   : > { %v3706_v56 = vadd.f32 %v1604_v42, %v1434_v32  ;;  %1816 = vmatmul.f32.gmra.mxu1 %v2514_v46  ;;  %2075 = vmatmul.f32.gmra.mxu2 %v2000_v18  ;;  %v2261_v18 = vld [vmem:[#allocation2 + $0xc8] sm:$0xff] }
 0x1e8   : > { %2333 = vmatmul.f32.gmra.mxu3 %v2258_v38 }
 0x1e9   : > { %v1091_v11 = vpop.f32.mrf.mxu2  ;;  %v1607_v5 = vpop.f32.mrf.mxu0 }
 0x1ea   : > { %v1177_v45 = vadd.f32 %v1091_v11, %v919_v28  ;;  %v2519_v11 = vld [vmem:[#allocation2 + $0xc9] sm:$0xff] }
 0x1eb   : > { %v836_v34 = vpop.f32.mrf.mxu1  ;;  %v1349_v8 = vpop.f32.mrf.mxu3 }
 0x1ec   : > { %v1435_v16 = vadd.f32 %v1349_v8, %v1177_v45  ;;  %2591 = vmatmul.f32.gmra.mxu0 %v2516_v15  ;;  %v920_v44 = vadd.f32 %v836_v34, %v3596_v53  ;;  %v2004_v34 = vld [vmem:[#allocation2 + $0xcf] sm:$0xff] }
 0x1ee   : > { %v3709_v43 = vadd.f32 %v1607_v5, %v1435_v16  ;;  %1819 = vmatmul.f32.gmra.mxu1 %v2515_v31  ;;  %2078 = vmatmul.f32.gmra.mxu2 %v2001_v62  ;;  %v2262_v62 = vld [vmem:[#allocation2 + $0xd0] sm:$0xff] }
 0x1f0   : > { %2336 = vmatmul.f32.gmra.mxu3 %v2259_v54 }
 0x1f1   : > { %v1094_v14 = vpop.f32.mrf.mxu2  ;;  %v1610_v27 = vpop.f32.mrf.mxu0 }
 0x1f2   : > { %v1178_v50 = vadd.f32 %v1094_v14, %v920_v44  ;;  %v2520_v14 = vld [vmem:[#allocation2 + $0xd1] sm:$0xff] }
 0x1f3   : > { %v839_v46 = vpop.f32.mrf.mxu1  ;;  %v1352_v0 = vpop.f32.mrf.mxu3 }
 0x1f4   : > { %v1436_v41 = vadd.f32 %v1352_v0, %v1178_v50  ;;  %2594 = vmatmul.f32.gmra.mxu0 %v2517_v29  ;;  %v921_v47 = vadd.f32 %v839_v46, %v3605_v60  ;;  %v2005_v46 = vld [vmem:[#allocation2 + $0xe7] sm:$0xff] }
 0x1f6   : > { %v3712_v24 = vadd.f32 %v1610_v27, %v1436_v41  ;;  %1822 = vmatmul.f32.gmra.mxu1 %v2516_v15  ;;  %2081 = vmatmul.f32.gmra.mxu2 %v2002_v21  ;;  %v2263_v21 = vld [vmem:[#allocation2 + $0xe8] sm:$0xff] }
 0x1f8   : > { %2339 = vmatmul.f32.gmra.mxu3 %v2260_v23 }
 0x1f9   : > { %v1097_v6 = vpop.f32.mrf.mxu2  ;;  %v1613_v53 = vpop.f32.mrf.mxu0 }
 0x1fa   : > { %v1179_v42 = vadd.f32 %v1097_v6, %v921_v47  ;;  %v2521_v6 = vld [vmem:[#allocation2 + $0xe9] sm:$0xff] }
 0x1fb   : > { %v842_v31 = vpop.f32.mrf.mxu1  ;;  %v1355_v22 = vpop.f32.mrf.mxu3 }
 0x1fc   : > { %v1437_v36 = vadd.f32 %v1355_v22, %v1179_v42  ;;  %2597 = vmatmul.f32.gmra.mxu0 %v2518_v40  ;;  %v922_v38 = vadd.f32 %v842_v31, %v3537_v35  ;;  %v2006_v31 = vld [vmem:[#allocation2 + $0xef] sm:$0xff] }
 0x1fe   : > { %v3715_v32 = vadd.f32 %v1613_v53, %v1437_v36  ;;  %1825 = vmatmul.f32.gmra.mxu1 %v2517_v29  ;;  %2084 = vmatmul.f32.gmra.mxu2 %v2003_v25  ;;  %v2264_v25 = vld [vmem:[#allocation2 + $0xf0] sm:$0xff] }
 0x200   : > { %2342 = vmatmul.f32.gmra.mxu3 %v2261_v18 }
 0x201   : > { %v1100_v28 = vpop.f32.mrf.mxu2  ;;  %v1616_v60 = vpop.f32.mrf.mxu0 }
 0x202   : > { %v1180_v5 = vadd.f32 %v1100_v28, %v922_v38  ;;  %v2522_v28 = vld [vmem:[#allocation2 + $0xf1] sm:$0xff] }
 0x203   : > { %v845_v15 = vpop.f32.mrf.mxu1  ;;  %v1358_v45 = vpop.f32.mrf.mxu3 }
 0x204   : > { %v1438_v8 = vadd.f32 %v1358_v45, %v1180_v5  ;;  %2600 = vmatmul.f32.gmra.mxu0 %v2519_v11  ;;  %v923_v54 = vadd.f32 %v845_v15, %v3548_v48  ;;  %v2007_v15 = vld [vmem:[#allocation2 + $0x107] sm:$0xff] }
 0x206   : > { %v3718_v16 = vadd.f32 %v1616_v60, %v1438_v8  ;;  %1828 = vmatmul.f32.gmra.mxu1 %v2518_v40  ;;  %2087 = vmatmul.f32.gmra.mxu2 %v2004_v34  ;;  %v2265_v34 = vld [vmem:[#allocation2 + $0x108] sm:$0xff] }
 0x208   : > { %2345 = vmatmul.f32.gmra.mxu3 %v2262_v62 }
 0x209   : > { %v1103_v44 = vpop.f32.mrf.mxu2  ;;  %v1619_v35 = vpop.f32.mrf.mxu0 }
 0x20a   : > { %v1181_v27 = vadd.f32 %v1103_v44, %v923_v54  ;;  %v2523_v44 = vld [vmem:[#allocation2 + $0x109] sm:$0xff] }
 0x20b   : > { %v848_v29 = vpop.f32.mrf.mxu1  ;;  %v1361_v50 = vpop.f32.mrf.mxu3 }
 0x20c   : > { %v1439_v0 = vadd.f32 %v1361_v50, %v1181_v27  ;;  %2603 = vmatmul.f32.gmra.mxu0 %v2520_v14  ;;  %v924_v23 = vadd.f32 %v848_v29, %v3559_v58  ;;  %v2008_v29 = vld [vmem:[#allocation2 + $0x10f] sm:$0xff] }
 0x20e   : > { %v3721_v41 = vadd.f32 %v1619_v35, %v1439_v0  ;;  %1831 = vmatmul.f32.gmra.mxu1 %v2519_v11  ;;  %2090 = vmatmul.f32.gmra.mxu2 %v2005_v46  ;;  %v2266_v46 = vld [vmem:[#allocation2 + $0x110] sm:$0xff] }
 0x210   : > { %2348 = vmatmul.f32.gmra.mxu3 %v2263_v21 }
 0x211   : > { %v1106_v47 = vpop.f32.mrf.mxu2  ;;  %v1622_v48 = vpop.f32.mrf.mxu0 }
 0x212   : > { %v1182_v53 = vadd.f32 %v1106_v47, %v924_v23  ;;  %v2524_v47 = vld [vmem:[#allocation2 + $0x111] sm:$0xff] }
 0x213   : > { %v851_v40 = vpop.f32.mrf.mxu1  ;;  %v1364_v42 = vpop.f32.mrf.mxu3 }
 0x214   : > { %v1440_v22 = vadd.f32 %v1364_v42, %v1182_v53  ;;  %2606 = vmatmul.f32.gmra.mxu0 %v2521_v6  ;;  %v925_v18 = vadd.f32 %v851_v40, %v3570_v1  ;;  %v2009_v40 = vld [vmem:[#allocation2 + $0x127] sm:$0xff] }
 0x216   : > { %v3724_v36 = vadd.f32 %v1622_v48, %v1440_v22  ;;  %1834 = vmatmul.f32.gmra.mxu1 %v2520_v14  ;;  %2093 = vmatmul.f32.gmra.mxu2 %v2006_v31  ;;  %v2267_v31 = vld [vmem:[#allocation2 + $0x128] sm:$0xff] }
 0x218   : > { %2351 = vmatmul.f32.gmra.mxu3 %v2264_v25 }
 0x219   : > { %v1109_v38 = vpop.f32.mrf.mxu2  ;;  %v1625_v58 = vpop.f32.mrf.mxu0 }
 0x21a   : > { %v1183_v60 = vadd.f32 %v1109_v38, %v925_v18  ;;  %v2525_v38 = vld [vmem:[#allocation2 + $0x129] sm:$0xff] }
 0x21b   : > { %v854_v11 = vpop.f32.mrf.mxu1  ;;  %v1367_v5 = vpop.f32.mrf.mxu3 }
 0x21c   : > { %v1441_v45 = vadd.f32 %v1367_v5, %v1183_v60  ;;  %2609 = vmatmul.f32.gmra.mxu0 %v2522_v28  ;;  %v926_v62 = vadd.f32 %v854_v11, %v3581_v12  ;;  %v2010_v11 = vld [vmem:[#allocation2 + $0x12f] sm:$0xff] }
 0x21e   : > { %v3727_v8 = vadd.f32 %v1625_v58, %v1441_v45  ;;  %1837 = vmatmul.f32.gmra.mxu1 %v2521_v6  ;;  %2096 = vmatmul.f32.gmra.mxu2 %v2007_v15  ;;  %v2268_v15 = vld [vmem:[#allocation2 + $0x130] sm:$0xff] }
 0x220   : > { %2354 = vmatmul.f32.gmra.mxu3 %v2265_v34 }
 0x221   : > { %v1112_v54 = vpop.f32.mrf.mxu2  ;;  %v1628_v1 = vpop.f32.mrf.mxu0 }
 0x222   : > { %v1184_v35 = vadd.f32 %v1112_v54, %v926_v62  ;;  %v2526_v54 = vld [vmem:[#allocation2 + $0x131] sm:$0xff] }
 0x223   : > { %v857_v14 = vpop.f32.mrf.mxu1  ;;  %v1370_v27 = vpop.f32.mrf.mxu3 }
 0x224   : > { %v1442_v50 = vadd.f32 %v1370_v27, %v1184_v35  ;;  %2612 = vmatmul.f32.gmra.mxu0 %v2523_v44  ;;  %v927_v21 = vadd.f32 %v857_v14, %v3592_v19  ;;  %v2011_v14 = vld [vmem:[#allocation2 + $0x147] sm:$0xff] }
 0x226   : > { %v3730_v0 = vadd.f32 %v1628_v1, %v1442_v50  ;;  %1840 = vmatmul.f32.gmra.mxu1 %v2522_v28  ;;  %2099 = vmatmul.f32.gmra.mxu2 %v2008_v29  ;;  %v2269_v29 = vld [vmem:[#allocation2 + $0x148] sm:$0xff] }
 0x228   : > { %2357 = vmatmul.f32.gmra.mxu3 %v2266_v46 }
 0x229   : > { %v1115_v23 = vpop.f32.mrf.mxu2  ;;  %v1631_v12 = vpop.f32.mrf.mxu0 }
 0x22a   : > { %v1185_v48 = vadd.f32 %v1115_v23, %v927_v21  ;;  %v2527_v23 = vld [vmem:[#allocation2 + $0x149] sm:$0xff] }
 0x22b   : > { %v860_v6 = vpop.f32.mrf.mxu1  ;;  %v1373_v53 = vpop.f32.mrf.mxu3 }
 0x22c   : > { %v1443_v42 = vadd.f32 %v1373_v53, %v1185_v48  ;;  %2615 = vmatmul.f32.gmra.mxu0 %v2524_v47  ;;  %v928_v25 = vadd.f32 %v860_v6, %v3602_v26  ;;  %v2012_v6 = vld [vmem:[#allocation2 + $0x14f] sm:$0xff] }
 0x22e   : > { %v3733_v22 = vadd.f32 %v1631_v12, %v1443_v42  ;;  %1843 = vmatmul.f32.gmra.mxu1 %v2523_v44  ;;  %2102 = vmatmul.f32.gmra.mxu2 %v2009_v40  ;;  %v2270_v40 = vld [vmem:[#allocation2 + $0x150] sm:$0xff] }
 0x230   : > { %2360 = vmatmul.f32.gmra.mxu3 %v2267_v31 }
 0x231   : > { %v1118_v18 = vpop.f32.mrf.mxu2  ;;  %v1634_v19 = vpop.f32.mrf.mxu0 }
 0x232   : > { %v1186_v58 = vadd.f32 %v1118_v18, %v928_v25  ;;  %v2528_v18 = vld [vmem:[#allocation2 + $0x151] sm:$0xff] }
 0x233   : > { %v863_v28 = vpop.f32.mrf.mxu1  ;;  %v1376_v60 = vpop.f32.mrf.mxu3 }
 0x234   : > { %v1444_v5 = vadd.f32 %v1376_v60, %v1186_v58  ;;  %2618 = vmatmul.f32.gmra.mxu0 %v2525_v38  ;;  %v929_v34 = vadd.f32 %v863_v28, %v3609_v49  ;;  %v2013_v28 = vld [vmem:[#allocation2 + $0x167] sm:$0xff] }
 0x236   : > { %v3736_v45 = vadd.f32 %v1634_v19, %v1444_v5  ;;  %1846 = vmatmul.f32.gmra.mxu1 %v2524_v47  ;;  %2105 = vmatmul.f32.gmra.mxu2 %v2010_v11  ;;  %v2271_v11 = vld [vmem:[#allocation2 + $0x168] sm:$0xff] }
 0x238   : > { %2363 = vmatmul.f32.gmra.mxu3 %v2268_v15 }
 0x239   : > { %v1121_v62 = vpop.f32.mrf.mxu2  ;;  %v1637_v26 = vpop.f32.mrf.mxu0 }
 0x23a   : > { %v1187_v1 = vadd.f32 %v1121_v62, %v929_v34 }
 0x23b   : > { %v1379_v44 = vpop.f32.mrf.mxu3  ;;  %v1802_v35 = vpop.f32.mrf.mxu1 }
 0x23c   : > { %v1445_v27 = vadd.f32 %v1379_v44, %v1187_v1  ;;  %2621 = vmatmul.f32.gmra.mxu0 %v2526_v54  ;;  %v1930_v46 = vadd.f32 %v1802_v35, %v3613_v37  ;;  %v2529_v1 = vld [vmem:[#allocation2 + $0x169] sm:$0xff] }
 0x23e   : > { %v3739_v50 = vadd.f32 %v1637_v26, %v1445_v27  ;;  %1849 = vmatmul.f32.gmra.mxu1 %v2525_v38  ;;  %2108 = vmatmul.f32.gmra.mxu2 %v2011_v14 }
 0x240   : > { %2366 = vmatmul.f32.gmra.mxu3 %v2269_v29  ;;  %v2014_v29 = vld [vmem:[#allocation2 + $0x16f] sm:$0xff] }
 0x241   : > { %v2061_v49 = vpop.f32.mrf.mxu2  ;;  %v2577_v21 = vpop.f32.mrf.mxu0 }
 0x242   : > { %v2189_v12 = vadd.f32 %v2061_v49, %v1930_v46  ;;  %v2272_v49 = vld [vmem:[#allocation2 + $0x170] sm:$0xff] }
 0x243   : > { %v1805_v47 = vpop.f32.mrf.mxu1  ;;  %v2319_v48 = vpop.f32.mrf.mxu3 }
 0x244   : > { %v2447_v53 = vadd.f32 %v2319_v48, %v2189_v12  ;;  %2624 = vmatmul.f32.gmra.mxu0 %v2527_v23  ;;  %v1931_v31 = vadd.f32 %v1805_v47, %v3617_v55 }
 0x246   : > { %v2705_v42 = vadd.f32 %v2577_v21, %v2447_v53  ;;  %1852 = vmatmul.f32.gmra.mxu1 %v2526_v54  ;;  %2111 = vmatmul.f32.gmra.mxu2 %v2012_v6  ;;  %v2530_v6 = vld [vmem:[#allocation2 + $0x171] sm:$0xff] }
 0x248   : > { %2801 = vst [vmem:[%s3217_s13] sm:$0xff] %v2705_v42  ;;  %2369 = vmatmul.f32.gmra.mxu3 %v2270_v40  ;;  %v2874_v15 = vmul.f32 %v2705_v42, %v2705_v42 }
 0x249   : > { %v2064_v37 = vpop.f32.mrf.mxu2  ;;  %v2580_v25 = vpop.f32.mrf.mxu0 }
 0x24a   : > { %v2190_v19 = vadd.f32 %v2064_v37, %v1931_v31  ;;  %v2015_v37 = vld [vmem:[#allocation2 + $0x187] sm:$0xff] }
 0x24b   : > { %v1808_v38 = vpop.f32.mrf.mxu1  ;;  %v2322_v58 = vpop.f32.mrf.mxu3 }
 0x24c   : > { %v2448_v60 = vadd.f32 %v2322_v58, %v2190_v19  ;;  %2627 = vmatmul.f32.gmra.mxu0 %v2528_v18  ;;  %v1932_v34 = vadd.f32 %v1808_v38, %v3621_v61  ;;  %v2273_v19 = vld [vmem:[#allocation2 + $0x188] sm:$0xff] }
 0x24e   : > { %v2706_v5 = vadd.f32 %v2580_v25, %v2448_v60  ;;  %1855 = vmatmul.f32.gmra.mxu1 %v2527_v23  ;;  %2114 = vmatmul.f32.gmra.mxu2 %v2013_v28 }
 0x250   : > { %2802 = vst [vmem:[%s3217_s13 + $0x8] sm:$0xff] %v2706_v5  ;;  %v2834_v55 = vadd.f32 %v2706_v5, %v2705_v42  ;;  %v2875_v62 = vmul.f32 %v2706_v5, %v2706_v5  ;;  %2372 = vmatmul.f32.gmra.mxu3 %v2271_v11  ;;  %v2531_v11 = vld [vmem:[#allocation2 + $0x189] sm:$0xff] }
 0x251   : > { %v2067_v26 = vpop.f32.mrf.mxu2  ;;  %v2583_v54 = vpop.f32.mrf.mxu0 }
 0x252   : > { %v2906_v44 = vadd.f32 %v2875_v62, %v2874_v15  ;;  %v2191_v35 = vadd.f32 %v2067_v26, %v1932_v34  ;;  %v2016_v62 = vld [vmem:[#allocation2 + $0x18f] sm:$0xff] }
 0x253   : > { %v1811_v14 = vpop.f32.mrf.mxu1  ;;  %v2325_v27 = vpop.f32.mrf.mxu3 }
 0x254   : > { %v2449_v46 = vadd.f32 %v2325_v27, %v2191_v35  ;;  %2630 = vmatmul.f32.gmra.mxu0 %v2529_v1  ;;  %v1933_v61 = vadd.f32 %v1811_v14, %v3627_v9 }
 0x256   : > { %v2707_v21 = vadd.f32 %v2583_v54, %v2449_v46  ;;  %1858 = vmatmul.f32.gmra.mxu1 %v2528_v18  ;;  %2117 = vmatmul.f32.gmra.mxu2 %v2014_v29  ;;  %v2274_v54 = vld [vmem:[#allocation2 + $0x190] sm:$0xff] }
 0x257   : > { %v2532_v29 = vld [vmem:[#allocation2 + $0x191] sm:$0xff] }
 0x258   : > { %2803 = vst [vmem:[%s3217_s13 + $0x10] sm:$0xff] %v2707_v21  ;;  %v2835_v23 = vadd.f32 %v2834_v55, %v2707_v21  ;;  %v2876_v12 = vmul.f32 %v2707_v21, %v2707_v21  ;;  %2375 = vmatmul.f32.gmra.mxu3 %v2272_v49 }
 0x259   : > { %v2070_v47 = vpop.f32.mrf.mxu2  ;;  %v2586_v48 = vpop.f32.mrf.mxu0 }
 0x25a   : > { %v2907_v53 = vadd.f32 %v2906_v44, %v2876_v12  ;;  %v2192_v40 = vadd.f32 %v2070_v47, %v1933_v61  ;;  %v2275_v47 = vld [vmem:[#allocation2 + $0x1a8] sm:$0xff] }
 0x25b   : > { %v1814_v42 = vpop.f32.mrf.mxu1  ;;  %v2328_v31 = vpop.f32.mrf.mxu3 }
 0x25c   : > { %v2450_v25 = vadd.f32 %v2328_v31, %v2192_v40  ;;  %2633 = vmatmul.f32.gmra.mxu0 %v2530_v6  ;;  %v1934_v9 = vadd.f32 %v1814_v42, %v3632_v59  ;;  %v2533_v31 = vld [vmem:[#allocation2 + $0x1a9] sm:$0xff] }
 0x25e   : > { %v2708_v18 = vadd.f32 %v2586_v48, %v2450_v25  ;;  %1861 = vmatmul.f32.gmra.mxu1 %v2529_v1  ;;  %2120 = vmatmul.f32.gmra.mxu2 %v2015_v37 }
 0x260   : > { %2804 = vst [vmem:[%s3217_s13 + $0x18] sm:$0xff] %v2708_v18  ;;  %v2836_v38 = vadd.f32 %v2835_v23, %v2708_v18  ;;  %v2877_v58 = vmul.f32 %v2708_v18, %v2708_v18  ;;  %2378 = vmatmul.f32.gmra.mxu3 %v2273_v19  ;;  %v2017_v23 = vld [vmem:[#allocation2 + $0x1a7] sm:$0xff] }
 0x261   : > { %v2073_v28 = vpop.f32.mrf.mxu2  ;;  %v2589_v60 = vpop.f32.mrf.mxu0 }
 0x262   : > { %v2908_v5 = vadd.f32 %v2907_v53, %v2877_v58  ;;  %v2193_v15 = vadd.f32 %v2073_v28, %v1934_v9  ;;  %v2018_v9 = vld [vmem:[#allocation2 + $0x1af] sm:$0xff] }
 0x263   : > { %v1817_v34 = vpop.f32.mrf.mxu1  ;;  %v2331_v55 = vpop.f32.mrf.mxu3  ;;  %v2276_v58 = vld [vmem:[#allocation2 + $0x1b0] sm:$0xff] }
 0x264   : > { %v2451_v26 = vadd.f32 %v2331_v55, %v2193_v15  ;;  %2636 = vmatmul.f32.gmra.mxu0 %v2531_v11  ;;  %v1935_v59 = vadd.f32 %v1817_v34, %v3637_v20  ;;  %v2534_v34 = vld [vmem:[#allocation2 + $0x1b1] sm:$0xff] }
 0x266   : > { %v2709_v1 = vadd.f32 %v2589_v60, %v2451_v26  ;;  %1864 = vmatmul.f32.gmra.mxu1 %v2530_v6  ;;  %2123 = vmatmul.f32.gmra.mxu2 %v2016_v62 }
 0x268   : > { %2805 = vst [vmem:[%s3217_s13 + $0x20] sm:$0xff] %v2709_v1  ;;  %v2837_v44 = vadd.f32 %v2836_v38, %v2709_v1  ;;  %v2878_v35 = vmul.f32 %v2709_v1, %v2709_v1  ;;  %2381 = vmatmul.f32.gmra.mxu3 %v2274_v54  ;;  %v2019_v1 = vld [vmem:[#allocation2 + $0x1c7] sm:$0xff] }
 0x269   : > { %v2076_v14 = vpop.f32.mrf.mxu2  ;;  %v2592_v27 = vpop.f32.mrf.mxu0 }
 0x26a   : > { %v2909_v46 = vadd.f32 %v2908_v5, %v2878_v35  ;;  %v2194_v49 = vadd.f32 %v2076_v14, %v1935_v59 }
 0x26b   : > { %v1820_v21 = vpop.f32.mrf.mxu1  ;;  %v2334_v61 = vpop.f32.mrf.mxu3 }
 0x26c   : > { %v2452_v12 = vadd.f32 %v2334_v61, %v2194_v49  ;;  %2639 = vmatmul.f32.gmra.mxu0 %v2532_v29  ;;  %v1936_v20 = vadd.f32 %v1820_v21, %v3641_v17  ;;  %v2535_v49 = vld [vmem:[#allocation2 + $0x1c9] sm:$0xff] }
 0x26e   : > { %v2710_v48 = vadd.f32 %v2592_v27, %v2452_v12  ;;  %1867 = vmatmul.f32.gmra.mxu1 %v2531_v11  ;;  %2126 = vmatmul.f32.gmra.mxu2 %v2017_v23 }
 0x270   : > { %2806 = vst [vmem:[%s3217_s13 + $0x28] sm:$0xff] %v2710_v48  ;;  %v2838_v6 = vadd.f32 %v2837_v44, %v2710_v48  ;;  %v2879_v53 = vmul.f32 %v2710_v48, %v2710_v48  ;;  %2384 = vmatmul.f32.gmra.mxu3 %v2275_v47  ;;  %v2277_v44 = vld [vmem:[#allocation2 + $0x1c8] sm:$0xff] }
 0x271   : > { %v2079_v40 = vpop.f32.mrf.mxu2  ;;  %v2595_v42 = vpop.f32.mrf.mxu0  ;;  %v2020_v47 = vld [vmem:[#allocation2 + $0x1cf] sm:$0xff] }
 0x272   : > { %v2910_v37 = vadd.f32 %v2909_v46, %v2879_v53  ;;  %v2195_v25 = vadd.f32 %v2079_v40, %v1936_v20  ;;  %v2278_v20 = vld [vmem:[#allocation2 + $0x1d0] sm:$0xff] }
 0x273   : > { %v1823_v19 = vpop.f32.mrf.mxu1  ;;  %v2337_v18 = vpop.f32.mrf.mxu3 }
 0x274   : > { %v2453_v38 = vadd.f32 %v2337_v18, %v2195_v25  ;;  %2642 = vmatmul.f32.gmra.mxu0 %v2533_v31  ;;  %v1937_v17 = vadd.f32 %v1823_v19, %v3645_v3 }
 0x276   : > { %v2711_v28 = vadd.f32 %v2595_v42, %v2453_v38  ;;  %1870 = vmatmul.f32.gmra.mxu1 %v2532_v29  ;;  %2129 = vmatmul.f32.gmra.mxu2 %v2018_v9  ;;  %v2021_v38 = vld [vmem:[#allocation2 + $0x1e7] sm:$0xff] }
 0x278   : > { %2807 = vst [vmem:[%s3217_s13 + $0x30] sm:$0xff] %v2711_v28  ;;  %v2839_v60 = vadd.f32 %v2838_v6, %v2711_v28  ;;  %v2880_v11 = vmul.f32 %v2711_v28, %v2711_v28  ;;  %2387 = vmatmul.f32.gmra.mxu3 %v2276_v58  ;;  %v2279_v28 = vld [vmem:[#allocation2 + $0x1e8] sm:$0xff] }
 0x279   : > { %v2082_v5 = vpop.f32.mrf.mxu2  ;;  %v2598_v15 = vpop.f32.mrf.mxu0 }
 0x27a   : > { %v2911_v55 = vadd.f32 %v2910_v37, %v2880_v11  ;;  %v2196_v62 = vadd.f32 %v2082_v5, %v1937_v17  ;;  %v2536_v37 = vld [vmem:[#allocation2 + $0x1d1] sm:$0xff] }
 0x27b   : > { %v1826_v26 = vpop.f32.mrf.mxu1  ;;  %v2340_v54 = vpop.f32.mrf.mxu3 }
 0x27c   : > { %v2454_v59 = vadd.f32 %v2340_v54, %v2196_v62  ;;  %2645 = vmatmul.f32.gmra.mxu0 %v2534_v34  ;;  %v1938_v3 = vadd.f32 %v1826_v26, %v3657_v4 }
 0x27e   : > { %v2712_v35 = vadd.f32 %v2598_v15, %v2454_v59  ;;  %1873 = vmatmul.f32.gmra.mxu1 %v2533_v31  ;;  %2132 = vmatmul.f32.gmra.mxu2 %v2019_v1  ;;  %v2022_v1 = vld [vmem:[#allocation2 + $0x1ef] sm:$0xff] }
 0x280   : > { %2808 = vst [vmem:[%s3217_s13 + $0x38] sm:$0xff] %v2712_v35  ;;  %v2840_v14 = vadd.f32 %v2839_v60, %v2712_v35  ;;  %v2881_v27 = vmul.f32 %v2712_v35, %v2712_v35  ;;  %2390 = vmatmul.f32.gmra.mxu3 %v2277_v44  ;;  %v2280_v44 = vld [vmem:[#allocation2 + $0x1f0] sm:$0xff] }
 0x281   : > { %v2085_v29 = vpop.f32.mrf.mxu2  ;;  %v2601_v46 = vpop.f32.mrf.mxu0 }
 0x282   : > { %v2912_v21 = vadd.f32 %v2911_v55, %v2881_v27  ;;  %v2197_v61 = vadd.f32 %v2085_v29, %v1938_v3 }
 0x283   : > { %v1829_v23 = vpop.f32.mrf.mxu1  ;;  %v2343_v12 = vpop.f32.mrf.mxu3 }
 0x284   : > { %v2455_v48 = vadd.f32 %v2343_v12, %v2197_v61  ;;  %2648 = vmatmul.f32.gmra.mxu0 %v2535_v49  ;;  %v1939_v4 = vadd.f32 %v1829_v23, %v3666_v52  ;;  %v2023_v12 = vld [vmem:[#allocation2 + $0x207] sm:$0xff] }
 0x286   : > { %v2713_v6 = vadd.f32 %v2601_v46, %v2455_v48  ;;  %1876 = vmatmul.f32.gmra.mxu1 %v2534_v34  ;;  %2135 = vmatmul.f32.gmra.mxu2 %v2020_v47  ;;  %v2537_v34 = vld [vmem:[#allocation2 + $0x1e9] sm:$0xff]  ;;  %v2538_v46 = vld [vmem:[#allocation2 + $0x1f1] sm:$0xff] }
 0x287   : > { %v2281_v48 = vld [vmem:[#allocation2 + $0x208] sm:$0xff] }
 0x288   : > { %2809 = vst [vmem:[%s3217_s13 + $0x40] sm:$0xff] %v2713_v6  ;;  %v2841_v53 = vadd.f32 %v2840_v14, %v2713_v6  ;;  %v2882_v40 = vmul.f32 %v2713_v6, %v2713_v6  ;;  %2393 = vmatmul.f32.gmra.mxu3 %v2278_v20 }
 0x289   : > { %v2088_v42 = vpop.f32.mrf.mxu2  ;;  %v2604_v31 = vpop.f32.mrf.mxu0 }
 0x28a   : > { %v2913_v25 = vadd.f32 %v2912_v21, %v2882_v40  ;;  %v2198_v19 = vadd.f32 %v2088_v42, %v1939_v4  ;;  %v2539_v42 = vld [vmem:[#allocation2 + $0x209] sm:$0xff] }
 0x28b   : > { %v1832_v18 = vpop.f32.mrf.mxu1  ;;  %v2346_v9 = vpop.f32.mrf.mxu3 }
 0x28c   : > { %v2456_v58 = vadd.f32 %v2346_v9, %v2198_v19  ;;  %2651 = vmatmul.f32.gmra.mxu0 %v2536_v37  ;;  %v1940_v52 = vadd.f32 %v1832_v18, %v3672_v2  ;;  %v2024_v18 = vld [vmem:[#allocation2 + $0x20f] sm:$0xff] }
 0x28e   : > { %v2714_v17 = vadd.f32 %v2604_v31, %v2456_v58  ;;  %1879 = vmatmul.f32.gmra.mxu1 %v2535_v49  ;;  %2138 = vmatmul.f32.gmra.mxu2 %v2021_v38  ;;  %v2282_v38 = vld [vmem:[#allocation2 + $0x210] sm:$0xff] }
 0x290   : > { %2810 = vst [vmem:[%s3217_s13 + $0x48] sm:$0xff] %v2714_v17  ;;  %v2842_v60 = vadd.f32 %v2841_v53, %v2714_v17  ;;  %v2883_v11 = vmul.f32 %v2714_v17, %v2714_v17  ;;  %2396 = vmatmul.f32.gmra.mxu3 %v2279_v28 }
 0x291   : > { %v2091_v5 = vpop.f32.mrf.mxu2  ;;  %v2607_v15 = vpop.f32.mrf.mxu0 }
 0x292   : > { %v2914_v55 = vadd.f32 %v2913_v25, %v2883_v11  ;;  %v2199_v62 = vadd.f32 %v2091_v5, %v1940_v52  ;;  %v2540_v11 = vld [vmem:[#allocation2 + $0x211] sm:$0xff] }
 0x293   : > { %v1835_v26 = vpop.f32.mrf.mxu1  ;;  %v2349_v54 = vpop.f32.mrf.mxu3 }
 0x294   : > { %v2457_v59 = vadd.f32 %v2349_v54, %v2199_v62  ;;  %2654 = vmatmul.f32.gmra.mxu0 %v2537_v34  ;;  %v1941_v2 = vadd.f32 %v1835_v26, %v3675_v51  ;;  %v2025_v62 = vld [vmem:[#allocation2 + $0x227] sm:$0xff] }
 0x295   : > { %v2283_v54 = vld [vmem:[#allocation2 + $0x228] sm:$0xff] }
 0x296   : > { %v2715_v35 = vadd.f32 %v2607_v15, %v2457_v59  ;;  %1882 = vmatmul.f32.gmra.mxu1 %v2536_v37  ;;  %2141 = vmatmul.f32.gmra.mxu2 %v2022_v1 }
 0x298   : > { %2811 = vst [vmem:[%s3217_s13 + $0x50] sm:$0xff] %v2715_v35  ;;  %v2843_v3 = vadd.f32 %v2842_v60, %v2715_v35  ;;  %v2884_v14 = vmul.f32 %v2715_v35, %v2715_v35  ;;  %2399 = vmatmul.f32.gmra.mxu3 %v2280_v44 }
 0x299   : > { %v2094_v27 = vpop.f32.mrf.mxu2  ;;  %v2610_v29 = vpop.f32.mrf.mxu0 }
 0x29a   : > { %v2915_v49 = vadd.f32 %v2914_v55, %v2884_v14  ;;  %v2200_v21 = vadd.f32 %v2094_v27, %v1941_v2 }
 0x29b   : > { %v1838_v61 = vpop.f32.mrf.mxu1  ;;  %v2352_v23 = vpop.f32.mrf.mxu3 }
 0x29c   : > { %v2458_v47 = vadd.f32 %v2352_v23, %v2200_v21  ;;  %2657 = vmatmul.f32.gmra.mxu0 %v2538_v46  ;;  %v1942_v51 = vadd.f32 %v1838_v61, %v3678_v33  ;;  %v2284_v61 = vld [vmem:[#allocation2 + $0x230] sm:$0xff] }
 0x29e   : > { %v2716_v20 = vadd.f32 %v2610_v29, %v2458_v47  ;;  %1885 = vmatmul.f32.gmra.mxu1 %v2537_v34  ;;  %2144 = vmatmul.f32.gmra.mxu2 %v2023_v12 }
 0x2a0   : > { %2812 = vst [vmem:[%s3217_s13 + $0x58] sm:$0xff] %v2716_v20  ;;  %v2844_v6 = vadd.f32 %v2843_v3, %v2716_v20  ;;  %v2885_v4 = vmul.f32 %v2716_v20, %v2716_v20  ;;  %2402 = vmatmul.f32.gmra.mxu3 %v2281_v48  ;;  %v2541_v3 = vld [vmem:[#allocation2 + $0x229] sm:$0xff] }
 0x2a1   : > { %v2097_v53 = vpop.f32.mrf.mxu2  ;;  %v2613_v40 = vpop.f32.mrf.mxu0 }
 0x2a2   : > { %v2916_v31 = vadd.f32 %v2915_v49, %v2885_v4  ;;  %v2201_v37 = vadd.f32 %v2097_v53, %v1942_v51  ;;  %v2026_v49 = vld [vmem:[#allocation2 + $0x22f] sm:$0xff] }
 0x2a3   : > { %v1841_v25 = vpop.f32.mrf.mxu1  ;;  %v2355_v19 = vpop.f32.mrf.mxu3  ;;  %v2542_v51 = vld [vmem:[#allocation2 + $0x231] sm:$0xff] }
 0x2a4   : > { %v2459_v9 = vadd.f32 %v2355_v19, %v2201_v37  ;;  %2660 = vmatmul.f32.gmra.mxu0 %v2539_v42  ;;  %v1943_v33 = vadd.f32 %v1841_v25, %v3681_v10 }
 0x2a6   : > { %v2717_v58 = vadd.f32 %v2613_v40, %v2459_v9  ;;  %1888 = vmatmul.f32.gmra.mxu1 %v2538_v46  ;;  %2147 = vmatmul.f32.gmra.mxu2 %v2024_v18 }
 0x2a8   : > { %2813 = vst [vmem:[%s3217_s13 + $0x60] sm:$0xff] %v2717_v58  ;;  %v2845_v28 = vadd.f32 %v2844_v6, %v2717_v58  ;;  %v2886_v17 = vmul.f32 %v2717_v58, %v2717_v58  ;;  %2405 = vmatmul.f32.gmra.mxu3 %v2282_v38 }
 0x2a9   : > { %v2100_v52 = vpop.f32.mrf.mxu2  ;;  %v2616_v60 = vpop.f32.mrf.mxu0 }
 0x2aa   : > { %v2917_v5 = vadd.f32 %v2916_v31, %v2886_v17  ;;  %v2202_v15 = vadd.f32 %v2100_v52, %v1943_v33 }
 0x2ab   : > { %v1844_v34 = vpop.f32.mrf.mxu1  ;;  %v2358_v55 = vpop.f32.mrf.mxu3 }
 0x2ac   : > { %v2460_v26 = vadd.f32 %v2358_v55, %v2202_v15  ;;  %2663 = vmatmul.f32.gmra.mxu0 %v2540_v11  ;;  %v1944_v10 = vadd.f32 %v1844_v34, %v3686_v57 }
 0x2ae   : > { %v2718_v1 = vadd.f32 %v2616_v60, %v2460_v26  ;;  %1891 = vmatmul.f32.gmra.mxu1 %v2539_v42  ;;  %2150 = vmatmul.f32.gmra.mxu2 %v2025_v62 }
 0x2b0   : > { %2814 = vst [vmem:[%s3217_s13 + $0x68] sm:$0xff] %v2718_v1  ;;  %v2846_v59 = vadd.f32 %v2845_v28, %v2718_v1  ;;  %v2887_v44 = vmul.f32 %v2718_v1, %v2718_v1  ;;  %2408 = vmatmul.f32.gmra.mxu3 %v2283_v54 }
 0x2b1   : > { %v2103_v35 = vpop.f32.mrf.mxu2  ;;  %v2619_v2 = vpop.f32.mrf.mxu0 }
 0x2b2   : > { %v2918_v14 = vadd.f32 %v2917_v5, %v2887_v44  ;;  %v2203_v27 = vadd.f32 %v2103_v35, %v1944_v10 }
 0x2b3   : > { %v1847_v29 = vpop.f32.mrf.mxu1  ;;  %v2361_v46 = vpop.f32.mrf.mxu3 }
 0x2b4   : > { %v2461_v21 = vadd.f32 %v2361_v46, %v2203_v27  ;;  %2666 = vmatmul.f32.gmra.mxu0 %v2541_v3  ;;  %v1945_v57 = vadd.f32 %v1847_v29, %v3691_v63 }
 0x2b6   : > { %v2719_v23 = vadd.f32 %v2619_v2, %v2461_v21  ;;  %1894 = vmatmul.f32.gmra.mxu1 %v2540_v11  ;;  %2153 = vmatmul.f32.gmra.mxu2 %v2026_v49 }
 0x2b8   : > { %2815 = vst [vmem:[%s3217_s13 + $0x70] sm:$0xff] %v2719_v23  ;;  %v2847_v12 = vadd.f32 %v2846_v59, %v2719_v23  ;;  %v2888_v47 = vmul.f32 %v2719_v23, %v2719_v23  ;;  %2411 = vmatmul.f32.gmra.mxu3 %v2284_v61 }
 0x2b9   : > { %v2106_v48 = vpop.f32.mrf.mxu2  ;;  %v2622_v20 = vpop.f32.mrf.mxu0 }
 0x2ba   : > { %v2919_v6 = vadd.f32 %v2918_v14, %v2888_v47  ;;  %v2204_v4 = vadd.f32 %v2106_v48, %v1945_v57 }
 0x2bb   : > { %v1850_v53 = vpop.f32.mrf.mxu1  ;;  %v2364_v40 = vpop.f32.mrf.mxu3 }
 0x2bc   : > { %v2462_v42 = vadd.f32 %v2364_v40, %v2204_v4  ;;  %2669 = vmatmul.f32.gmra.mxu0 %v2542_v51  ;;  %v1946_v37 = vadd.f32 %v1850_v53, %v3694_v13 }
 0x2be   : > { %v2720_v31 = vadd.f32 %v2622_v20, %v2462_v42 }
 0x2c0   : > { %2816 = vst [vmem:[%s3217_s13 + $0x78] sm:$0xff] %v2720_v31  ;;  %v2848_v63 = vadd.f32 %v2847_v12, %v2720_v31  ;;  %v2889_v25 = vmul.f32 %v2720_v31, %v2720_v31 }
 0x2c1   : > { %v2109_v19 = vpop.f32.mrf.mxu2  ;;  %v2625_v18 = vpop.f32.mrf.mxu0 }
 0x2c2   : > { %v2920_v9 = vadd.f32 %v2919_v6, %v2889_v25  ;;  %v2205_v38 = vadd.f32 %v2109_v19, %v1946_v37 }
 0x2c3   : > { %v1853_v58 = vpop.f32.mrf.mxu1  ;;  %v2367_v33 = vpop.f32.mrf.mxu3 }
 0x2c4   : > { %v2463_v28 = vadd.f32 %v2367_v33, %v2205_v38  ;;  %v1947_v52 = vadd.f32 %v1853_v58, %v3697_v39 }
 0x2c6   : > { %v2721_v17 = vadd.f32 %v2625_v18, %v2463_v28 }
 0x2c8   : > { %2817 = vst [vmem:[%s3217_s13 + $0x80] sm:$0xff] %v2721_v17  ;;  %v2849_v60 = vadd.f32 %v2848_v63, %v2721_v17  ;;  %v2890_v11 = vmul.f32 %v2721_v17, %v2721_v17 }
 0x2c9   : > { %v2112_v5 = vpop.f32.mrf.mxu2  ;;  %v2628_v15 = vpop.f32.mrf.mxu0 }
 0x2ca   : > { %v2921_v13 = vadd.f32 %v2920_v9, %v2890_v11  ;;  %v2206_v34 = vadd.f32 %v2112_v5, %v1947_v52 }
 0x2cb   : > { %v1856_v55 = vpop.f32.mrf.mxu1  ;;  %v2370_v62 = vpop.f32.mrf.mxu3 }
 0x2cc   : > { %v2464_v26 = vadd.f32 %v2370_v62, %v2206_v34  ;;  %v1948_v1 = vadd.f32 %v1856_v55, %v3700_v30 }
 0x2ce   : > { %v2722_v54 = vadd.f32 %v2628_v15, %v2464_v26 }
 0x2d0   : > { %2818 = vst [vmem:[%s3217_s13 + $0x88] sm:$0xff] %v2722_v54  ;;  %v2850_v10 = vadd.f32 %v2849_v60, %v2722_v54  ;;  %v2891_v59 = vmul.f32 %v2722_v54, %v2722_v54 }
 0x2d1   : > { %v2115_v44 = vpop.f32.mrf.mxu2  ;;  %v2631_v35 = vpop.f32.mrf.mxu0 }
 0x2d2   : > { %v2922_v39 = vadd.f32 %v2921_v13, %v2891_v59  ;;  %v2207_v2 = vadd.f32 %v2115_v44, %v1948_v1 }
 0x2d3   : > { %v1859_v3 = vpop.f32.mrf.mxu1  ;;  %v2373_v14 = vpop.f32.mrf.mxu3 }
 0x2d4   : > { %v2465_v27 = vadd.f32 %v2373_v14, %v2207_v2  ;;  %v1949_v46 = vadd.f32 %v1859_v3, %v3703_v7 }
 0x2d6   : > { %v2723_v29 = vadd.f32 %v2631_v35, %v2465_v27 }
 0x2d8   : > { %2819 = vst [vmem:[%s3217_s13 + $0x90] sm:$0xff] %v2723_v29  ;;  %v2851_v49 = vadd.f32 %v2850_v10, %v2723_v29  ;;  %v2892_v21 = vmul.f32 %v2723_v29, %v2723_v29 }
 0x2d9   : > { %v2118_v61 = vpop.f32.mrf.mxu2  ;;  %v2634_v23 = vpop.f32.mrf.mxu0 }
 0x2da   : > { %v2923_v30 = vadd.f32 %v2922_v39, %v2892_v21  ;;  %v2208_v57 = vadd.f32 %v2118_v61, %v1949_v46 }
 0x2db   : > { %v1862_v12 = vpop.f32.mrf.mxu1  ;;  %v2376_v47 = vpop.f32.mrf.mxu3 }
 0x2dc   : > { %v2466_v48 = vadd.f32 %v2376_v47, %v2208_v57  ;;  %v1950_v51 = vadd.f32 %v1862_v12, %v3706_v56 }
 0x2de   : > { %v2724_v20 = vadd.f32 %v2634_v23, %v2466_v48 }
 0x2e0   : > { %2820 = vst [vmem:[%s3217_s13 + $0x98] sm:$0xff] %v2724_v20  ;;  %v2852_v6 = vadd.f32 %v2851_v49, %v2724_v20  ;;  %v2893_v4 = vmul.f32 %v2724_v20, %v2724_v20 }
 0x2e1   : > { %v2121_v53 = vpop.f32.mrf.mxu2  ;;  %v2637_v40 = vpop.f32.mrf.mxu0 }
 0x2e2   : > { %v2924_v7 = vadd.f32 %v2923_v30, %v2893_v4  ;;  %v2209_v42 = vadd.f32 %v2121_v53, %v1950_v51 }
 0x2e3   : > { %v1865_v31 = vpop.f32.mrf.mxu1  ;;  %v2379_v37 = vpop.f32.mrf.mxu3 }
 0x2e4   : > { %v2467_v63 = vadd.f32 %v2379_v37, %v2209_v42  ;;  %v1951_v19 = vadd.f32 %v1865_v31, %v3709_v43 }
 0x2e6   : > { %v2725_v25 = vadd.f32 %v2637_v40, %v2467_v63 }
 0x2e8   : > { %2821 = vst [vmem:[%s3217_s13 + $0xa0] sm:$0xff] %v2725_v25  ;;  %v2853_v18 = vadd.f32 %v2852_v6, %v2725_v25  ;;  %v2894_v9 = vmul.f32 %v2725_v25, %v2725_v25 }
 0x2e9   : > { %v2124_v38 = vpop.f32.mrf.mxu2  ;;  %v2640_v58 = vpop.f32.mrf.mxu0 }
 0x2ea   : > { %v2925_v56 = vadd.f32 %v2924_v7, %v2894_v9  ;;  %v2210_v33 = vadd.f32 %v2124_v38, %v1951_v19 }
 0x2eb   : > { %v1868_v28 = vpop.f32.mrf.mxu1  ;;  %v2382_v17 = vpop.f32.mrf.mxu3 }
 0x2ec   : > { %v2468_v52 = vadd.f32 %v2382_v17, %v2210_v33  ;;  %v1952_v11 = vadd.f32 %v1868_v28, %v3712_v24 }
 0x2ee   : > { %v2726_v60 = vadd.f32 %v2640_v58, %v2468_v52 }
 0x2f0   : > { %2822 = vst [vmem:[%s3217_s13 + $0xa8] sm:$0xff] %v2726_v60  ;;  %v2854_v5 = vadd.f32 %v2853_v18, %v2726_v60  ;;  %v2895_v15 = vmul.f32 %v2726_v60, %v2726_v60 }
 0x2f1   : > { %v2127_v13 = vpop.f32.mrf.mxu2  ;;  %v2643_v34 = vpop.f32.mrf.mxu0 }
 0x2f2   : > { %v2926_v43 = vadd.f32 %v2925_v56, %v2895_v15  ;;  %v2211_v55 = vadd.f32 %v2127_v13, %v1952_v11 }
 0x2f3   : > { %v1871_v62 = vpop.f32.mrf.mxu1  ;;  %v2385_v26 = vpop.f32.mrf.mxu3 }
 0x2f4   : > { %v2469_v54 = vadd.f32 %v2385_v26, %v2211_v55  ;;  %v1953_v10 = vadd.f32 %v1871_v62, %v3715_v32 }
 0x2f6   : > { %v2727_v1 = vadd.f32 %v2643_v34, %v2469_v54 }
 0x2f8   : > { %2823 = vst [vmem:[%s3217_s13 + $0xb0] sm:$0xff] %v2727_v1  ;;  %v2855_v59 = vadd.f32 %v2854_v5, %v2727_v1  ;;  %v2896_v44 = vmul.f32 %v2727_v1, %v2727_v1 }
 0x2f9   : > { %v2130_v35 = vpop.f32.mrf.mxu2  ;;  %v2646_v39 = vpop.f32.mrf.mxu0 }
 0x2fa   : > { %v2927_v24 = vadd.f32 %v2926_v43, %v2896_v44  ;;  %v2212_v2 = vadd.f32 %v2130_v35, %v1953_v10 }
 0x2fb   : > { %v1874_v3 = vpop.f32.mrf.mxu1  ;;  %v2388_v14 = vpop.f32.mrf.mxu3 }
 0x2fc   : > { %v2470_v27 = vadd.f32 %v2388_v14, %v2212_v2  ;;  %v1954_v46 = vadd.f32 %v1874_v3, %v3718_v16 }
 0x2fe   : > { %v2728_v29 = vadd.f32 %v2646_v39, %v2470_v27 }
 0x300   : > { %2824 = vst [vmem:[%s3217_s13 + $0xb8] sm:$0xff] %v2728_v29  ;;  %v2856_v49 = vadd.f32 %v2855_v59, %v2728_v29  ;;  %v2897_v21 = vmul.f32 %v2728_v29, %v2728_v29 }
 0x301   : > { %v2133_v61 = vpop.f32.mrf.mxu2  ;;  %v2649_v23 = vpop.f32.mrf.mxu0 }
 0x302   : > { %v2928_v32 = vadd.f32 %v2927_v24, %v2897_v21  ;;  %v2213_v30 = vadd.f32 %v2133_v61, %v1954_v46 }
 0x303   : > { %v1877_v57 = vpop.f32.mrf.mxu1  ;;  %v2391_v12 = vpop.f32.mrf.mxu3 }
 0x304   : > { %v2471_v47 = vadd.f32 %v2391_v12, %v2213_v30  ;;  %v1955_v20 = vadd.f32 %v1877_v57, %v3721_v41 }
 0x306   : > { %v2729_v48 = vadd.f32 %v2649_v23, %v2471_v47 }
 0x308   : > { %2825 = vst [vmem:[%s3217_s13 + $0xc0] sm:$0xff] %v2729_v48  ;;  %v2857_v51 = vadd.f32 %v2856_v49, %v2729_v48  ;;  %v2898_v6 = vmul.f32 %v2729_v48, %v2729_v48 }
 0x309   : > { %v2136_v4 = vpop.f32.mrf.mxu2  ;;  %v2652_v53 = vpop.f32.mrf.mxu0 }
 0x30a   : > { %v2929_v16 = vadd.f32 %v2928_v32, %v2898_v6  ;;  %v2214_v40 = vadd.f32 %v2136_v4, %v1955_v20 }
 0x30b   : > { %v1880_v7 = vpop.f32.mrf.mxu1  ;;  %v2394_v42 = vpop.f32.mrf.mxu3 }
 0x30c   : > { %v2472_v31 = vadd.f32 %v2394_v42, %v2214_v40  ;;  %v1956_v63 = vadd.f32 %v1880_v7, %v3724_v36 }
 0x30e   : > { %v2730_v37 = vadd.f32 %v2652_v53, %v2472_v31 }
 0x310   : > { %2826 = vst [vmem:[%s3217_s13 + $0xc8] sm:$0xff] %v2730_v37  ;;  %v2858_v25 = vadd.f32 %v2857_v51, %v2730_v37  ;;  %v2899_v19 = vmul.f32 %v2730_v37, %v2730_v37 }
 0x311   : > { %v2139_v18 = vpop.f32.mrf.mxu2  ;;  %v2655_v9 = vpop.f32.mrf.mxu0 }
 0x312   : > { %v2930_v41 = vadd.f32 %v2929_v16, %v2899_v19  ;;  %v2215_v38 = vadd.f32 %v2139_v18, %v1956_v63 }
 0x313   : > { %v1883_v58 = vpop.f32.mrf.mxu1  ;;  %v2397_v56 = vpop.f32.mrf.mxu3 }
 0x314   : > { %v2473_v33 = vadd.f32 %v2397_v56, %v2215_v38  ;;  %v1957_v17 = vadd.f32 %v1883_v58, %v3727_v8 }
 0x316   : > { %v2731_v28 = vadd.f32 %v2655_v9, %v2473_v33 }
 0x318   : > { %2827 = vst [vmem:[%s3217_s13 + $0xd0] sm:$0xff] %v2731_v28  ;;  %v2859_v52 = vadd.f32 %v2858_v25, %v2731_v28  ;;  %v2900_v60 = vmul.f32 %v2731_v28, %v2731_v28 }
 0x319   : > { %v2142_v11 = vpop.f32.mrf.mxu2  ;;  %v2658_v5 = vpop.f32.mrf.mxu0 }
 0x31a   : > { %v2931_v36 = vadd.f32 %v2930_v41, %v2900_v60  ;;  %v2216_v15 = vadd.f32 %v2142_v11, %v1957_v17  ;;  %v2833_v60 = vld [vmem:[%s3825_s5] sm:$0x1] }
 0x31b   : > { %v1886_v13 = vpop.f32.mrf.mxu1  ;;  %v2400_v34 = vpop.f32.mrf.mxu3 }
 0x31c   : > { %v2474_v43 = vadd.f32 %v2400_v34, %v2216_v15  ;;  %v1958_v62 = vadd.f32 %v1886_v13, %v3730_v0 }
 0x31e   : > { %v2732_v55 = vadd.f32 %v2658_v5, %v2474_v43 }
 0x320   : > { %2828 = vst [vmem:[%s3217_s13 + $0xd8] sm:$0xff] %v2732_v55  ;;  %v2860_v26 = vadd.f32 %v2859_v52, %v2732_v55  ;;  %v2901_v54 = vmul.f32 %v2732_v55, %v2732_v55 }
 0x321   : > { %v2145_v1 = vpop.f32.mrf.mxu2  ;;  %v2661_v10 = vpop.f32.mrf.mxu0 }
 0x322   : > { %v2932_v8 = vadd.f32 %v2931_v36, %v2901_v54  ;;  %v2217_v59 = vadd.f32 %v2145_v1, %v1958_v62  ;;  %v2873_v36 = vld [vmem:[%s3826_s6] sm:$0x1] }
 0x323   : > { %v1889_v44 = vpop.f32.mrf.mxu1  ;;  %v2403_v35 = vpop.f32.mrf.mxu3 }
 0x324   : > { %v2475_v39 = vadd.f32 %v2403_v35, %v2217_v59  ;;  %v1959_v2 = vadd.f32 %v1889_v44, %v3733_v22 }
 0x326   : > { %v2733_v24 = vadd.f32 %v2661_v10, %v2475_v39 }
 0x328   : > { %2829 = vst [vmem:[%s3217_s13 + $0xe0] sm:$0xff] %v2733_v24  ;;  %v2861_v3 = vadd.f32 %v2860_v26, %v2733_v24  ;;  %v2902_v14 = vmul.f32 %v2733_v24, %v2733_v24 }
 0x329   : > { %v2148_v27 = vpop.f32.mrf.mxu2  ;;  %v2664_v29 = vpop.f32.mrf.mxu0 }
 0x32a   : > { %v2933_v0 = vadd.f32 %v2932_v8, %v2902_v14  ;;  %v2218_v46 = vadd.f32 %v2148_v27, %v1959_v2 }
 0x32b   : > { %v1892_v49 = vpop.f32.mrf.mxu1  ;;  %v2406_v21 = vpop.f32.mrf.mxu3 }
 0x32c   : > { %v2476_v61 = vadd.f32 %v2406_v21, %v2218_v46  ;;  %v1960_v32 = vadd.f32 %v1892_v49, %v3736_v45 }
 0x32e   : > { %v2734_v23 = vadd.f32 %v2664_v29, %v2476_v61 }
 0x330   : > { %2830 = vst [vmem:[%s3217_s13 + $0xe8] sm:$0xff] %v2734_v23  ;;  %v2862_v30 = vadd.f32 %v2861_v3, %v2734_v23  ;;  %v2903_v57 = vmul.f32 %v2734_v23, %v2734_v23 }
 0x331   : > { %v2151_v12 = vpop.f32.mrf.mxu2  ;;  %v2667_v47 = vpop.f32.mrf.mxu0 }
 0x332   : > { %v2934_v22 = vadd.f32 %v2933_v0, %v2903_v57  ;;  %v2219_v48 = vadd.f32 %v2151_v12, %v1960_v32 }
 0x333   : > { %v2409_v20 = vpop.f32.mrf.mxu3  ;;  %v1895_v6 = vpop.f32.mrf.mxu1 }
 0x334   : > { %v2477_v51 = vadd.f32 %v2409_v20, %v2219_v48  ;;  %v1961_v53 = vadd.f32 %v1895_v6, %v3739_v50 }
 0x336   : > { %v2735_v4 = vadd.f32 %v2667_v47, %v2477_v51 }
 0x338   : > { %2831 = vst [vmem:[%s3217_s13 + $0xf0] sm:$0xff] %v2735_v4  ;;  %v2863_v16 = vadd.f32 %v2862_v30, %v2735_v4  ;;  %v2904_v40 = vmul.f32 %v2735_v4, %v2735_v4 }
 0x339   : > { %v2154_v7 = vpop.f32.mrf.mxu2  ;;  %v2670_v37 = vpop.f32.mrf.mxu0 }
 0x33a   : > { %v2935_v42 = vadd.f32 %v2934_v22, %v2904_v40  ;;  %v2220_v45 = vadd.f32 %v2154_v7, %v1961_v53 }
 0x33b   : > { %v2412_v31 = vpop.f32.mrf.mxu3 }
 0x33c   : > { %v2478_v63 = vadd.f32 %v2412_v31, %v2220_v45 }
 0x33e   : > { %v2736_v25 = vadd.f32 %v2670_v37, %v2478_v63 }
 0x340   : > { %2832 = vst [vmem:[%s3217_s13 + $0xf8] sm:$0xff] %v2736_v25  ;;  %v2864_v19 = vadd.f32 %v2863_v16, %v2736_v25  ;;  %v2905_v18 = vmul.f32 %v2736_v25, %v2736_v25 }
 0x342   : > { %v2865_v9 = vrot.slane %v2864_v19, 4  ;;  %v2936_v41 = vadd.f32 %v2935_v42, %v2905_v18 }
 0x344   : > { %v2866_v38 = vadd.f32 %v2865_v9, %v2864_v19  ;;  %v2937_v58 = vrot.slane %v2936_v41, 4 }
 0x346   : > { %v2867_v56 = vrot.slane %v2866_v38, 2  ;;  %v2938_v33 = vadd.f32 %v2937_v58, %v2936_v41 }
 0x348   : > { %v2868_v50 = vadd.f32 %v2867_v56, %v2866_v38  ;;  %v2939_v28 = vrot.slane %v2938_v33, 2 }
 0x34a   : > { %v2869_v17 = vrot.slane %v2868_v50, 1  ;;  %v2940_v52 = vadd.f32 %v2939_v28, %v2938_v33 }
 0x34c   : > { %v2870_v11 = vadd.f32 %v2869_v17, %v2868_v50  ;;  %v2941_v5 = vrot.slane %v2940_v52, 1 }
 0x34e   : > { %v2871_v15 = vadd.f32 %v2870_v11, %v2833_v60  ;;  %v2942_v13 = vadd.f32 %v2941_v5, %v2940_v52 }
 0x350   : > { %2872 = vst [vmem:[%s3825_s5] sm:$0x1] %v2871_v15  ;;  %v2943_v34 = vadd.f32 %v2942_v13, %v2873_v36 }
 0x352   : > { %2944 = vst [vmem:[%s3826_s6] sm:$0x1] %v2943_v34 }
 0x353 PF: > { %s18_s21 = sadd.s32 1, %s3157_s21  }
 0x354   : > { %p15_p8 = scmp.ge.s32.totalorder %s18_s21, 4  }
 0x356   :  { %17 = sbr.rel (!%p15_p8) target bundleno = 1 (0x1), region = 101 }
 0x35b   :  { %2978 = vsyncpa [#allocation5], 1 }
 0x35c   :  { %2980 = vsyncpa [#allocation5 + $0x1], 1 }

</bundles_post_ra>
